<compile_context>
chip_gen: v6e
topology: v6e:2x2x1
jax: 0.10.0
libtpu: 0.0.40
codegen_flags: <defaults>
</compile_context>

<pallas_src>
import math
import numpy as np
import jax
import jax.numpy as jnp
from jax.experimental import pallas as pl
from jax.experimental.pallas import tpu as pltpu

# ----------------------- small config consistent with MSLD -------------------
BATCH = 2
IMG_H, IMG_W = 32, 64            # divisible by STRIDE (im2col assumes this)
STRIDE = 8                       # backbone stride
IN_CH = 3
ANCHOR_FEAT_CH = 8               # backbone output channels == anchor_feat_channels
S = 8                            # number of offsets
N_OFFSETS = S
N_STRIPS = S - 1
FMAP_H = math.ceil(IMG_H / STRIDE)   # 4
FMAP_W = math.ceil(IMG_W / STRIDE)   # 8
LATERAL_N = 2
BOTTOM_N = 2
A_PAD = 128                      # anchors padded to a full lane width
OUT_DIM = 5 + N_OFFSETS          # 13
OUT_PAD = 128                    # head output padded to a lane-dense slab
D_FEAT = ANCHOR_FEAT_CH * FMAP_H # 32
K_PATCH = IN_CH * STRIDE * STRIDE  # 192

LEFT_ANGLES = [72., 60., 49., 39., 30., 22.]
RIGHT_ANGLES = [108., 120., 131., 141., 150., 158.]
BOTTOM_ANGLES = [165., 150., 141., 131., 120., 108., 100., 90., 80., 72.,
                 60., 49., 39., 30., 15.]


# ----------------------------- anchor generation -----------------------------
def _generate_anchor(start, angle, anchor_ys, n_tail):
    anchor = np.zeros(2 + 2 + 1 + n_tail, dtype=np.float32)
    angle = angle * math.pi / 180.0
    start_x, start_y = start
    anchor[2] = 1 - start_y
    anchor[3] = start_x
    anchor[5:] = (start_x + (1 - anchor_ys - 1 + start_y) / math.tan(angle)) * IMG_W
    return anchor


def generate_anchors():
    anchor_ys = np.linspace(1, 0, N_OFFSETS, dtype=np.float32)
    anchor_cut_ys = np.linspace(1, 0, FMAP_H, dtype=np.float32)

    def side(angles, nb_origins, x=None, y=None):
        if x is None:
            starts = [(xx, y) for xx in np.linspace(1.0, 0.0, num=nb_origins)]
        else:
            starts = [(x, yy) for yy in np.linspace(1.0, 0.0, num=nb_origins)]
        anchors = np.zeros((nb_origins * len(angles), 5 + N_OFFSETS), np.float32)
        cuts = np.zeros((nb_origins * len(angles), 5 + FMAP_H), np.float32)
        for i, st in enumerate(starts):
            for j, ang in enumerate(angles):
                k = i * len(angles) + j
                anchors[k] = _generate_anchor(st, ang, anchor_ys, N_OFFSETS)
                cuts[k] = _generate_anchor(st, ang, anchor_cut_ys, FMAP_H)
        return anchors, cuts

    la, lc = side(LEFT_ANGLES, LATERAL_N, x=0.0)
    ra, rc = side(RIGHT_ANGLES, LATERAL_N, x=1.0)
    ba, bc = side(BOTTOM_ANGLES, BOTTOM_N, y=1.0)
    anchors = np.concatenate([la, ba, ra], 0)
    anchors_cut = np.concatenate([lc, bc, rc], 0)
    return anchors, anchors_cut


def compute_anchor_cut_indices(anchors_cut):
    # mirrors MSLD.compute_anchor_cut_indices (per-channel indices are identical,
    # so we keep the (A, fH) reduced form; keeps the reference's `> fmap_w`
    # boundary convention for the invalid mask)
    unclamped = np.flip(np.round(anchors_cut[:, 5:] / STRIDE), axis=1).astype(np.int32)
    cut_xs = np.clip(unclamped, 0, FMAP_W - 1)
    invalid = (unclamped < 0) | (unclamped > FMAP_W)
    return cut_xs, invalid


# ------------------------------- fused Pallas kernel --------------------------
def msld_fused_kernel(patches_ref, conv_w_ref, conv_b_ref, sel_ref, place_ref,
                      lmask_ref, umask_ref, w_att_ref, b_att_ref,
                      w1_ref, w2_ref, base_ref, out_ref):
    nb = patches_ref.shape[0]          # batches in this block: 1 (per-batch grid) or BATCH (folded)
    hw = FMAP_H * FMAP_W

    # backbone stand-in: stride-8 patchify conv as one im2col matmul over all
    # batches in this block (doubles MXU row occupancy when the batch is folded)
    if nb == 1:
        feat_hw_all = jnp.dot(patches_ref[0], conv_w_ref[...],
                              preferred_element_type=jnp.float32) + conv_b_ref[...]
    else:
        p = patches_ref[...].reshape(nb * hw, K_PATCH)
        feat_hw_all = jnp.dot(p, conv_w_ref[...],
                              preferred_element_type=jnp.float32) + conv_b_ref[...]

    lm = lmask_ref[...]                # (A_PAD, A_PAD), col < row
    um = umask_ref[...]                # (A_PAD, A_PAD), col > row
    w_att = w_att_ref[...]
    b_att = b_att_ref[...]
    w1 = w1_ref[...]
    w2 = w2_ref[...]
    base = base_ref[...]

    for b in range(nb):                # tiny static unroll (nb <= BATCH)
        feat_hw = feat_hw_all[b * hw:(b + 1) * hw, :]                # (fH*fW, C)

        # static anchor-feature gather, fully register-resident:
        #   feat[a, y*C + c] = feat_hw[y*fW + cut_x[a, y], c]   (0 if invalid)
        feat = jnp.zeros((A_PAD, D_FEAT), jnp.float32)
        for y in range(FMAP_H):
            band = feat_hw[y * FMAP_W:(y + 1) * FMAP_W, :]           # (fW, C)
            picked = jnp.dot(sel_ref[y], band,
                             preferred_element_type=jnp.float32)     # (A_PAD, C)
            feat = feat + jnp.dot(picked, place_ref[y],
                                  preferred_element_type=jnp.float32)

        # attention scores; padded columns carry a -1e30 bias so exp -> 0 and
        # the softmax over A_PAD columns equals the reference over A-1 columns.
        scores = jnp.dot(feat, w_att, preferred_element_type=jnp.float32) + b_att
        m = jnp.max(scores, axis=1, keepdims=True)
        e = jnp.exp(scores - m)                                      # unnormalized softmax
        inv_l = pl.reciprocal(jnp.sum(e, axis=1, keepdims=True), approx=True)

        # zero-diagonal attention from UNNORMALIZED exponentials (normalization
        # deferred past the matmul):
        #   att_e[i, j] = e[i, j] (j < i), e[i, j-1] (j > i), 0 (j == i)
        att_e = e * lm + pltpu.roll(e, shift=1, axis=1) * um
        att_feat = (jnp.dot(att_e, feat, preferred_element_type=jnp.float32)
                    * inv_l)                                          # (A_PAD, D)

        # cls/reg head in split-weight form (no [att_feat, feat] concat) with
        # anchors + biases pre-folded into `base`; output slab is 128-lane
        # dense (unmasked vst), sliced back to 13 columns in the wrapper.
        out_ref[b] = (jnp.dot(att_feat, w1, preferred_element_type=jnp.float32)
                      + jnp.dot(feat, w2, preferred_element_type=jnp.float32)
                      + base)


def msld_fused(patches, params, *, per_batch_grid):
    B = patches.shape[0]
    if per_batch_grid:
        # v7x: one batch per TensorCore (2 TCs/chip).
        grid = (B,)
        patches_spec = pl.BlockSpec((1, FMAP_H * FMAP_W, K_PATCH), lambda b: (b, 0, 0))
        out_spec = pl.BlockSpec((1, A_PAD, OUT_PAD), lambda b: (b, 0, 0))
        semantics = ("parallel",)
    else:
        # v5e/v6e: single TC -> fold the whole batch into one invocation
        # (no per-step grid overhead, no double-buffering of constant weights).
        grid = (1,)
        patches_spec = pl.BlockSpec((B, FMAP_H * FMAP_W, K_PATCH), lambda i: (0, 0, 0))
        out_spec = pl.BlockSpec((B, A_PAD, OUT_PAD), lambda i: (0, 0, 0))
        semantics = ("arbitrary",)

    c2 = lambda i: (0, 0)
    c3 = lambda i: (0, 0, 0)

    return pl.pallas_call(
        msld_fused_kernel,
        out_shape=jax.ShapeDtypeStruct((B, A_PAD, OUT_PAD), jnp.float32),
        grid=grid,
        in_specs=[
            patches_spec,
            pl.BlockSpec((K_PATCH, ANCHOR_FEAT_CH), c2),          # conv_w
            pl.BlockSpec((1, ANCHOR_FEAT_CH), c2),                # conv_b
            pl.BlockSpec((FMAP_H, A_PAD, FMAP_W), c3),            # sel (one-hot gather)
            pl.BlockSpec((FMAP_H, ANCHOR_FEAT_CH, D_FEAT), c3),   # place (column placement)
            pl.BlockSpec((A_PAD, A_PAD), c2),                     # lower mask
            pl.BlockSpec((A_PAD, A_PAD), c2),                     # upper mask
            pl.BlockSpec((D_FEAT, A_PAD), c2),                    # w_att
            pl.BlockSpec((1, A_PAD), c2),                         # b_att
            pl.BlockSpec((D_FEAT, OUT_PAD), c2),                  # w1 (att-feat half)
            pl.BlockSpec((D_FEAT, OUT_PAD), c2),                  # w2 (feat half)
            pl.BlockSpec((A_PAD, OUT_PAD), c2),                   # base (anchors+biases)
        ],
        out_specs=out_spec,
        compiler_params=pltpu.CompilerParams(dimension_semantics=semantics),
    )(patches, params['conv_w'], params['conv_b'], params['sel'], params['place'],
      params['lmask'], params['umask'], params['w_att'], params['b_att'],
      params['w1'], params['w2'], params['base'])


# ------------------------------- forward (glue) -------------------------------
def msld_forward(x, params, n_anchors, *, per_batch_grid):
    B = x.shape[0]
    # TODO(synk): resnet34 backbone source is not part of the reference module;
    # stand-in is a single stride-STRIDE patchify conv fused into the kernel.
    # This im2col is pure layout work expected to fuse into the transfer
    # (verify in the profile; fold into the kernel if it shows as its own op).
    patches = x.reshape(B, IN_CH, FMAP_H, STRIDE, FMAP_W, STRIDE)
    patches = patches.transpose(0, 2, 4, 1, 3, 5).reshape(
        B, FMAP_H * FMAP_W, K_PATCH)
    # TODO(synk): MultiSpectralAttentionLayer / SingleMultiSpectralAttentionLayer
    # (FcaNet DCT channel attention) are not defined in the reference source;
    # identity stand-ins.
    out = msld_fused(patches, params, per_batch_grid=per_batch_grid)  # (B, A_PAD, OUT_PAD)
    # TODO(synk): line-NMS is an external CUDA op with data-dependent control
    # flow; we return the raw (B, A, 5+S) proposal tensor instead.
    return out[:, :n_anchors, :OUT_DIM]


def _use_per_batch_grid():
    # v7x-class chips have 2 TensorCores per chip: shard the batch across them.
    # Single-TC chips (v5e/v6e) fold the whole batch into one invocation.
    try:
        kind = jax.devices()[0].device_kind.lower()
    except Exception:
        return False
    return "7" in kind


# --------------------------------- parameters ---------------------------------
def init_params(key):
    anchors_np, anchors_cut_np = generate_anchors()
    A = anchors_np.shape[0]                              # 54
    assert A <= A_PAD
    cut_xs_np, invalid_np = compute_anchor_cut_indices(anchors_cut_np)

    # static one-hot gather tensor: sel[y, a, x] = 1 iff x == cut_xs[a, y] and valid
    sel = np.zeros((FMAP_H, A_PAD, FMAP_W), np.float32)
    for a in range(A):
        for y in range(FMAP_H):
            if not invalid_np[a, y]:
                sel[y, a, cut_xs_np[a, y]] = 1.0

    # static placement matrices: row-y gather lands in feat columns y*C .. y*C+C-1
    place = np.zeros((FMAP_H, ANCHOR_FEAT_CH, D_FEAT), np.float32)
    for y in range(FMAP_H):
        for c in range(ANCHOR_FEAT_CH):
            place[y, c, y * ANCHOR_FEAT_CH + c] = 1.0

    # zero-diagonal scatter masks (constant inputs; no iota/where in-kernel)
    idx = np.arange(A_PAD)
    lmask = (idx[None, :] < idx[:, None]).astype(np.float32)   # col < row
    umask = (idx[None, :] > idx[:, None]).astype(np.float32)   # col > row

    # kernel feature layout is [y, c]; reference layout is [c, y]  ->  row permutation
    perm = np.array([c * FMAP_H + y
                     for y in range(FMAP_H) for c in range(ANCHOR_FEAT_CH)], np.int32)

    k0, k1, k2, k3 = jax.random.split(key, 4)
    # backbone stand-in patchify conv
    conv_w = jax.random.normal(k0, (K_PATCH, ANCHOR_FEAT_CH), jnp.float32) * 0.05
    conv_b = jnp.zeros((1, ANCHOR_FEAT_CH), jnp.float32)

    # head parameters in reference nn.Linear layout (initialize_layer: std=0.001, bias 0)
    w_att = np.asarray(jax.random.normal(k1, (D_FEAT, A - 1), jnp.float32)) * 0.001
    b_att = np.zeros((A - 1,), np.float32)
    w_cls = np.asarray(jax.random.normal(k2, (2 * D_FEAT, 2), jnp.float32)) * 0.001
    b_cls = np.zeros((2,), np.float32)
    w_reg = np.asarray(jax.random.normal(k3, (2 * D_FEAT, N_OFFSETS + 1), jnp.float32)) * 0.001
    b_reg = np.zeros((N_OFFSETS + 1,), np.float32)

    # attention weight: permuted rows, columns zero-padded to A_PAD; padded
    # columns get a -1e30 bias so exp underflows to exactly 0.
    w_att_k = np.zeros((D_FEAT, A_PAD), np.float32)
    w_att_k[:, :A - 1] = w_att[perm, :]
    b_att_k = np.full((1, A_PAD), -1e30, np.float32)
    b_att_k[0, :A - 1] = b_att

    # combined head weights, padded to a 128-lane output slab:
    # cols 0:2 <- cls half, cols 4:13 <- reg half, everything else 0
    def pack_head(w_half_cls, w_half_reg):
        w = np.zeros((D_FEAT, OUT_PAD), np.float32)
        w[:, 0:2] = w_half_cls[perm, :]
        w[:, 4:OUT_DIM] = w_half_reg[perm, :]
        return w
    w1 = pack_head(w_cls[:D_FEAT], w_reg[:D_FEAT])   # multiplies attention_features
    w2 = pack_head(w_cls[D_FEAT:], w_reg[D_FEAT:])   # multiplies anchor features

    # additive base: anchors with cols 0:2 replaced by b_cls, b_reg folded into cols 4:13
    base = np.zeros((A_PAD, OUT_PAD), np.float32)
    base[:A, :OUT_DIM] = anchors_np
    base[:A, 0:2] = b_cls[None, :]
    base[:A, 4:OUT_DIM] += b_reg[None, :]

    params = {
        'conv_w': conv_w, 'conv_b': conv_b,
        'sel': jnp.asarray(sel), 'place': jnp.asarray(place),
        'lmask': jnp.asarray(lmask), 'umask': jnp.asarray(umask),
        'w_att': jnp.asarray(w_att_k), 'b_att': jnp.asarray(b_att_k),
        'w1': jnp.asarray(w1), 'w2': jnp.asarray(w2),
        'base': jnp.asarray(base),
    }
    return params, A


if __name__ == "__main__":
    key = jax.random.PRNGKey(0)
    params, n_anchors = init_params(key)
    x = jax.random.normal(jax.random.PRNGKey(0), (BATCH, IN_CH, IMG_H, IMG_W),
                          jnp.float32)

    per_batch = _use_per_batch_grid()
    fwd = jax.jit(lambda xx: msld_forward(xx, params, n_anchors,
                                          per_batch_grid=per_batch))
    out = fwd(x)
    jax.block_until_ready(out)
    assert out.shape == (BATCH, n_anchors, 5 + N_OFFSETS)
    assert bool(jnp.all(jnp.isfinite(out)))
    print("KERNEL_OK")
</pallas_src>

<mosaic_0001>
module attributes {stable_mosaic.version = 11 : i64} {
  func.func @msld_fused_kernel(%arg0: i32, %arg1: memref<2x32x192xf32, #tpu.memory_space<vmem>>, %arg2: memref<192x8xf32, #tpu.memory_space<vmem>>, %arg3: memref<1x8xf32, #tpu.memory_space<vmem>>, %arg4: memref<4x128x8xf32, #tpu.memory_space<vmem>>, %arg5: memref<4x8x32xf32, #tpu.memory_space<vmem>>, %arg6: memref<128x128xf32, #tpu.memory_space<vmem>>, %arg7: memref<128x128xf32, #tpu.memory_space<vmem>>, %arg8: memref<32x128xf32, #tpu.memory_space<vmem>>, %arg9: memref<1x128xf32, #tpu.memory_space<vmem>>, %arg10: memref<32x128xf32, #tpu.memory_space<vmem>>, %arg11: memref<32x128xf32, #tpu.memory_space<vmem>>, %arg12: memref<128x128xf32, #tpu.memory_space<vmem>>, %arg13: memref<2x128x128xf32, #tpu.memory_space<vmem>>) attributes {dimension_semantics = [#tpu.dimension_semantics<arbitrary>], iteration_bounds = array<i64: 1>, scalar_prefetch = 0 : i64, scratch_operands = 0 : i64, tpu.core_type = #tpu.core_type<tc>, window_params = [{pipeline_mode = #tpu.pipeline_mode<synchronous>, transform_indices = @transform_0, window_bounds = array<i64: 2, 32, 192>}, {pipeline_mode = #tpu.pipeline_mode<synchronous>, transform_indices = @transform_1, window_bounds = array<i64: 192, 8>}, {pipeline_mode = #tpu.pipeline_mode<synchronous>, transform_indices = @transform_2, window_bounds = array<i64: 1, 8>}, {pipeline_mode = #tpu.pipeline_mode<synchronous>, transform_indices = @transform_3, window_bounds = array<i64: 4, 128, 8>}, {pipeline_mode = #tpu.pipeline_mode<synchronous>, transform_indices = @transform_4, window_bounds = array<i64: 4, 8, 32>}, {pipeline_mode = #tpu.pipeline_mode<synchronous>, transform_indices = @transform_5, window_bounds = array<i64: 128, 128>}, {pipeline_mode = #tpu.pipeline_mode<synchronous>, transform_indices = @transform_6, window_bounds = array<i64: 128, 128>}, {pipeline_mode = #tpu.pipeline_mode<synchronous>, transform_indices = @transform_7, window_bounds = array<i64: 32, 128>}, {pipeline_mode = #tpu.pipeline_mode<synchronous>, transform_indices = @transform_8, window_bounds = array<i64: 1, 128>}, {pipeline_mode = #tpu.pipeline_mode<synchronous>, transform_indices = @transform_9, window_bounds = array<i64: 32, 128>}, {pipeline_mode = #tpu.pipeline_mode<synchronous>, transform_indices = @transform_10, window_bounds = array<i64: 32, 128>}, {pipeline_mode = #tpu.pipeline_mode<synchronous>, transform_indices = @transform_11, window_bounds = array<i64: 128, 128>}, {pipeline_mode = #tpu.pipeline_mode<synchronous>, transform_indices = @transform_12, window_bounds = array<i64: 2, 128, 128>}]} {
    %c0 = arith.constant 0 : index
    %c0_0 = arith.constant 0 : index
    %c0_1 = arith.constant 0 : index
    %0 = vector.load %arg1[%c0, %c0_0, %c0_1] : memref<2x32x192xf32, #tpu.memory_space<vmem>>, vector<2x32x192xf32>
    %1 = vector.shape_cast %0 : vector<2x32x192xf32> to vector<64x192xf32>
    %c0_2 = arith.constant 0 : index
    %c0_3 = arith.constant 0 : index
    %2 = vector.load %arg2[%c0_2, %c0_3] : memref<192x8xf32, #tpu.memory_space<vmem>>, vector<192x8xf32>
    %cst = arith.constant dense<0.000000e+00> : vector<64x8xf32>
    %3 = tpu.matmul %1, %2, %cst {dimension_numbers = #tpu.dot_dimension_numbers<[1], [0], [0], [1], [0, 0, 1, 1], [], []>} : vector<64x192xf32>, vector<192x8xf32>, vector<64x8xf32> -> vector<64x8xf32>
    %c0_4 = arith.constant 0 : index
    %c0_5 = arith.constant 0 : index
    %4 = vector.load %arg3[%c0_4, %c0_5] : memref<1x8xf32, #tpu.memory_space<vmem>>, vector<1x8xf32>
    %5 = vector.broadcast %4 : vector<1x8xf32> to vector<64x8xf32>
    %6 = arith.addf %3, %5 : vector<64x8xf32>
    %c0_6 = arith.constant 0 : index
    %c0_7 = arith.constant 0 : index
    %7 = vector.load %arg6[%c0_6, %c0_7] : memref<128x128xf32, #tpu.memory_space<vmem>>, vector<128x128xf32>
    %c0_8 = arith.constant 0 : index
    %c0_9 = arith.constant 0 : index
    %8 = vector.load %arg7[%c0_8, %c0_9] : memref<128x128xf32, #tpu.memory_space<vmem>>, vector<128x128xf32>
    %c0_10 = arith.constant 0 : index
    %c0_11 = arith.constant 0 : index
    %9 = vector.load %arg8[%c0_10, %c0_11] : memref<32x128xf32, #tpu.memory_space<vmem>>, vector<32x128xf32>
    %c0_12 = arith.constant 0 : index
    %c0_13 = arith.constant 0 : index
    %10 = vector.load %arg9[%c0_12, %c0_13] : memref<1x128xf32, #tpu.memory_space<vmem>>, vector<1x128xf32>
    %c0_14 = arith.constant 0 : index
    %c0_15 = arith.constant 0 : index
    %11 = vector.load %arg10[%c0_14, %c0_15] : memref<32x128xf32, #tpu.memory_space<vmem>>, vector<32x128xf32>
    %c0_16 = arith.constant 0 : index
    %c0_17 = arith.constant 0 : index
    %12 = vector.load %arg11[%c0_16, %c0_17] : memref<32x128xf32, #tpu.memory_space<vmem>>, vector<32x128xf32>
    %c0_18 = arith.constant 0 : index
    %c0_19 = arith.constant 0 : index
    %13 = vector.load %arg12[%c0_18, %c0_19] : memref<128x128xf32, #tpu.memory_space<vmem>>, vector<128x128xf32>
    %14 = vector.extract_strided_slice %6 {offsets = [0, 0], sizes = [32, 8], strides = [1, 1]} : vector<64x8xf32> to vector<32x8xf32>
    %cst_20 = arith.constant 0.000000e+00 : f32
    %15 = vector.broadcast %cst_20 : f32 to vector<128x32xf32>
    %16 = vector.extract_strided_slice %14 {offsets = [0, 0], sizes = [8, 8], strides = [1, 1]} : vector<32x8xf32> to vector<8x8xf32>
    %c0_21 = arith.constant 0 : index
    %c0_22 = arith.constant 0 : index
    %c0_23 = arith.constant 0 : index
    %17 = vector.load %arg4[%c0_21, %c0_22, %c0_23] : memref<4x128x8xf32, #tpu.memory_space<vmem>>, vector<1x128x8xf32>
    %18 = vector.shape_cast %17 : vector<1x128x8xf32> to vector<128x8xf32>
    %cst_24 = arith.constant dense<0.000000e+00> : vector<128x8xf32>
    %19 = tpu.matmul %18, %16, %cst_24 {dimension_numbers = #tpu.dot_dimension_numbers<[1], [0], [0], [1], [0, 0, 1, 1], [], []>} : vector<128x8xf32>, vector<8x8xf32>, vector<128x8xf32> -> vector<128x8xf32>
    %c0_25 = arith.constant 0 : index
    %c0_26 = arith.constant 0 : index
    %c0_27 = arith.constant 0 : index
    %20 = vector.load %arg5[%c0_25, %c0_26, %c0_27] : memref<4x8x32xf32, #tpu.memory_space<vmem>>, vector<1x8x32xf32>
    %21 = vector.shape_cast %20 : vector<1x8x32xf32> to vector<8x32xf32>
    %cst_28 = arith.constant dense<0.000000e+00> : vector<128x32xf32>
    %22 = tpu.matmul %19, %21, %cst_28 {dimension_numbers = #tpu.dot_dimension_numbers<[1], [0], [0], [1], [0, 0, 1, 1], [], []>} : vector<128x8xf32>, vector<8x32xf32>, vector<128x32xf32> -> vector<128x32xf32>
    %23 = arith.addf %15, %22 : vector<128x32xf32>
    %24 = vector.extract_strided_slice %14 {offsets = [8, 0], sizes = [8, 8], strides = [1, 1]} : vector<32x8xf32> to vector<8x8xf32>
    %c1 = arith.constant 1 : index
    %c0_29 = arith.constant 0 : index
    %c0_30 = arith.constant 0 : index
    %25 = vector.load %arg4[%c1, %c0_29, %c0_30] : memref<4x128x8xf32, #tpu.memory_space<vmem>>, vector<1x128x8xf32>
    %26 = vector.shape_cast %25 : vector<1x128x8xf32> to vector<128x8xf32>
    %cst_31 = arith.constant dense<0.000000e+00> : vector<128x8xf32>
    %27 = tpu.matmul %26, %24, %cst_31 {dimension_numbers = #tpu.dot_dimension_numbers<[1], [0], [0], [1], [0, 0, 1, 1], [], []>} : vector<128x8xf32>, vector<8x8xf32>, vector<128x8xf32> -> vector<128x8xf32>
    %c1_32 = arith.constant 1 : index
    %c0_33 = arith.constant 0 : index
    %c0_34 = arith.constant 0 : index
    %28 = vector.load %arg5[%c1_32, %c0_33, %c0_34] : memref<4x8x32xf32, #tpu.memory_space<vmem>>, vector<1x8x32xf32>
    %29 = vector.shape_cast %28 : vector<1x8x32xf32> to vector<8x32xf32>
    %cst_35 = arith.constant dense<0.000000e+00> : vector<128x32xf32>
    %30 = tpu.matmul %27, %29, %cst_35 {dimension_numbers = #tpu.dot_dimension_numbers<[1], [0], [0], [1], [0, 0, 1, 1], [], []>} : vector<128x8xf32>, vector<8x32xf32>, vector<128x32xf32> -> vector<128x32xf32>
    %31 = arith.addf %23, %30 : vector<128x32xf32>
    %32 = vector.extract_strided_slice %14 {offsets = [16, 0], sizes = [8, 8], strides = [1, 1]} : vector<32x8xf32> to vector<8x8xf32>
    %c2 = arith.constant 2 : index
    %c0_36 = arith.constant 0 : index
    %c0_37 = arith.constant 0 : index
    %33 = vector.load %arg4[%c2, %c0_36, %c0_37] : memref<4x128x8xf32, #tpu.memory_space<vmem>>, vector<1x128x8xf32>
    %34 = vector.shape_cast %33 : vector<1x128x8xf32> to vector<128x8xf32>
    %cst_38 = arith.constant dense<0.000000e+00> : vector<128x8xf32>
    %35 = tpu.matmul %34, %32, %cst_38 {dimension_numbers = #tpu.dot_dimension_numbers<[1], [0], [0], [1], [0, 0, 1, 1], [], []>} : vector<128x8xf32>, vector<8x8xf32>, vector<128x8xf32> -> vector<128x8xf32>
    %c2_39 = arith.constant 2 : index
    %c0_40 = arith.constant 0 : index
    %c0_41 = arith.constant 0 : index
    %36 = vector.load %arg5[%c2_39, %c0_40, %c0_41] : memref<4x8x32xf32, #tpu.memory_space<vmem>>, vector<1x8x32xf32>
    %37 = vector.shape_cast %36 : vector<1x8x32xf32> to vector<8x32xf32>
    %cst_42 = arith.constant dense<0.000000e+00> : vector<128x32xf32>
    %38 = tpu.matmul %35, %37, %cst_42 {dimension_numbers = #tpu.dot_dimension_numbers<[1], [0], [0], [1], [0, 0, 1, 1], [], []>} : vector<128x8xf32>, vector<8x32xf32>, vector<128x32xf32> -> vector<128x32xf32>
    %39 = arith.addf %31, %38 : vector<128x32xf32>
    %40 = vector.extract_strided_slice %14 {offsets = [24, 0], sizes = [8, 8], strides = [1, 1]} : vector<32x8xf32> to vector<8x8xf32>
    %c3 = arith.constant 3 : index
    %c0_43 = arith.constant 0 : index
    %c0_44 = arith.constant 0 : index
    %41 = vector.load %arg4[%c3, %c0_43, %c0_44] : memref<4x128x8xf32, #tpu.memory_space<vmem>>, vector<1x128x8xf32>
    %42 = vector.shape_cast %41 : vector<1x128x8xf32> to vector<128x8xf32>
    %cst_45 = arith.constant dense<0.000000e+00> : vector<128x8xf32>
    %43 = tpu.matmul %42, %40, %cst_45 {dimension_numbers = #tpu.dot_dimension_numbers<[1], [0], [0], [1], [0, 0, 1, 1], [], []>} : vector<128x8xf32>, vector<8x8xf32>, vector<128x8xf32> -> vector<128x8xf32>
    %c3_46 = arith.constant 3 : index
    %c0_47 = arith.constant 0 : index
    %c0_48 = arith.constant 0 : index
    %44 = vector.load %arg5[%c3_46, %c0_47, %c0_48] : memref<4x8x32xf32, #tpu.memory_space<vmem>>, vector<1x8x32xf32>
    %45 = vector.shape_cast %44 : vector<1x8x32xf32> to vector<8x32xf32>
    %cst_49 = arith.constant dense<0.000000e+00> : vector<128x32xf32>
    %46 = tpu.matmul %43, %45, %cst_49 {dimension_numbers = #tpu.dot_dimension_numbers<[1], [0], [0], [1], [0, 0, 1, 1], [], []>} : vector<128x8xf32>, vector<8x32xf32>, vector<128x32xf32> -> vector<128x32xf32>
    %47 = arith.addf %39, %46 : vector<128x32xf32>
    %cst_50 = arith.constant dense<0.000000e+00> : vector<128x128xf32>
    %48 = tpu.matmul %47, %9, %cst_50 {dimension_numbers = #tpu.dot_dimension_numbers<[1], [0], [0], [1], [0, 0, 1, 1], [], []>} : vector<128x32xf32>, vector<32x128xf32>, vector<128x128xf32> -> vector<128x128xf32>
    %49 = vector.broadcast %10 : vector<1x128xf32> to vector<128x128xf32>
    %50 = arith.addf %48, %49 : vector<128x128xf32>
    %cst_51 = arith.constant dense<0xFF800000> : vector<128xf32>
    %51 = vector.multi_reduction <maximumf>, %50, %cst_51 [1] : vector<128x128xf32> to vector<128xf32>
    %52 = vector.shape_cast %51 : vector<128xf32> to vector<128x1xf32>
    %53 = vector.broadcast %52 : vector<128x1xf32> to vector<128x128xf32>
    %54 = arith.subf %50, %53 : vector<128x128xf32>
    %55 = math.exp %54 : vector<128x128xf32>
    %cst_52 = arith.constant dense<0.000000e+00> : vector<128xf32>
    %56 = vector.multi_reduction <add>, %55, %cst_52 [1] : vector<128x128xf32> to vector<128xf32>
    %57 = vector.shape_cast %56 : vector<128xf32> to vector<128x1xf32>
    %58 = tpu.reciprocal %57 {approx = true} : vector<128x1xf32> -> vector<128x1xf32>
    %59 = arith.mulf %55, %7 : vector<128x128xf32>
    %c1_i32 = arith.constant 1 : i32
    %60 = tpu.dynamic_rotate %55 by %c1_i32 dim 1 : vector<128x128xf32>, i32 -> vector<128x128xf32>
    %61 = arith.mulf %60, %8 : vector<128x128xf32>
    %62 = arith.addf %59, %61 : vector<128x128xf32>
    %cst_53 = arith.constant dense<0.000000e+00> : vector<128x32xf32>
    %63 = tpu.matmul %62, %47, %cst_53 {dimension_numbers = #tpu.dot_dimension_numbers<[1], [0], [0], [1], [0, 0, 1, 1], [], []>} : vector<128x128xf32>, vector<128x32xf32>, vector<128x32xf32> -> vector<128x32xf32>
    %64 = vector.broadcast %58 : vector<128x1xf32> to vector<128x32xf32>
    %65 = arith.mulf %63, %64 : vector<128x32xf32>
    %cst_54 = arith.constant dense<0.000000e+00> : vector<128x128xf32>
    %66 = tpu.matmul %65, %11, %cst_54 {dimension_numbers = #tpu.dot_dimension_numbers<[1], [0], [0], [1], [0, 0, 1, 1], [], []>} : vector<128x32xf32>, vector<32x128xf32>, vector<128x128xf32> -> vector<128x128xf32>
    %cst_55 = arith.constant dense<0.000000e+00> : vector<128x128xf32>
    %67 = tpu.matmul %47, %12, %cst_55 {dimension_numbers = #tpu.dot_dimension_numbers<[1], [0], [0], [1], [0, 0, 1, 1], [], []>} : vector<128x32xf32>, vector<32x128xf32>, vector<128x128xf32> -> vector<128x128xf32>
    %68 = arith.addf %66, %67 : vector<128x128xf32>
    %69 = arith.addf %68, %13 : vector<128x128xf32>
    %c0_56 = arith.constant 0 : index
    %c0_57 = arith.constant 0 : index
    %c0_58 = arith.constant 0 : index
    %70 = vector.load %arg13[%c0_56, %c0_57, %c0_58] : memref<2x128x128xf32, #tpu.memory_space<vmem>>, vector<1x128x128xf32>
    %71 = vector.shape_cast %70 : vector<1x128x128xf32> to vector<128x128xf32>
    %72 = vector.shape_cast %69 : vector<128x128xf32> to vector<1x128x128xf32>
    tpu.vector_store %arg13[%c0_56, %c0_57, %c0_58], %72 {strides = array<i32>} : memref<2x128x128xf32, #tpu.memory_space<vmem>>, vector<1x128x128xf32>,
    %73 = vector.extract_strided_slice %6 {offsets = [32, 0], sizes = [32, 8], strides = [1, 1]} : vector<64x8xf32> to vector<32x8xf32>
    %cst_59 = arith.constant 0.000000e+00 : f32
    %74 = vector.broadcast %cst_59 : f32 to vector<128x32xf32>
    %75 = vector.extract_strided_slice %73 {offsets = [0, 0], sizes = [8, 8], strides = [1, 1]} : vector<32x8xf32> to vector<8x8xf32>
    %c0_60 = arith.constant 0 : index
    %c0_61 = arith.constant 0 : index
    %c0_62 = arith.constant 0 : index
    %76 = vector.load %arg4[%c0_60, %c0_61, %c0_62] : memref<4x128x8xf32, #tpu.memory_space<vmem>>, vector<1x128x8xf32>
    %77 = vector.shape_cast %76 : vector<1x128x8xf32> to vector<128x8xf32>
    %cst_63 = arith.constant dense<0.000000e+00> : vector<128x8xf32>
    %78 = tpu.matmul %77, %75, %cst_63 {dimension_numbers = #tpu.dot_dimension_numbers<[1], [0], [0], [1], [0, 0, 1, 1], [], []>} : vector<128x8xf32>, vector<8x8xf32>, vector<128x8xf32> -> vector<128x8xf32>
    %c0_64 = arith.constant 0 : index
    %c0_65 = arith.constant 0 : index
    %c0_66 = arith.constant 0 : index
    %79 = vector.load %arg5[%c0_64, %c0_65, %c0_66] : memref<4x8x32xf32, #tpu.memory_space<vmem>>, vector<1x8x32xf32>
    %80 = vector.shape_cast %79 : vector<1x8x32xf32> to vector<8x32xf32>
    %cst_67 = arith.constant dense<0.000000e+00> : vector<128x32xf32>
    %81 = tpu.matmul %78, %80, %cst_67 {dimension_numbers = #tpu.dot_dimension_numbers<[1], [0], [0], [1], [0, 0, 1, 1], [], []>} : vector<128x8xf32>, vector<8x32xf32>, vector<128x32xf32> -> vector<128x32xf32>
    %82 = arith.addf %74, %81 : vector<128x32xf32>
    %83 = vector.extract_strided_slice %73 {offsets = [8, 0], sizes = [8, 8], strides = [1, 1]} : vector<32x8xf32> to vector<8x8xf32>
    %c1_68 = arith.constant 1 : index
    %c0_69 = arith.constant 0 : index
    %c0_70 = arith.constant 0 : index
    %84 = vector.load %arg4[%c1_68, %c0_69, %c0_70] : memref<4x128x8xf32, #tpu.memory_space<vmem>>, vector<1x128x8xf32>
    %85 = vector.shape_cast %84 : vector<1x128x8xf32> to vector<128x8xf32>
    %cst_71 = arith.constant dense<0.000000e+00> : vector<128x8xf32>
    %86 = tpu.matmul %85, %83, %cst_71 {dimension_numbers = #tpu.dot_dimension_numbers<[1], [0], [0], [1], [0, 0, 1, 1], [], []>} : vector<128x8xf32>, vector<8x8xf32>, vector<128x8xf32> -> vector<128x8xf32>
    %c1_72 = arith.constant 1 : index
    %c0_73 = arith.constant 0 : index
    %c0_74 = arith.constant 0 : index
    %87 = vector.load %arg5[%c1_72, %c0_73, %c0_74] : memref<4x8x32xf32, #tpu.memory_space<vmem>>, vector<1x8x32xf32>
    %88 = vector.shape_cast %87 : vector<1x8x32xf32> to vector<8x32xf32>
    %cst_75 = arith.constant dense<0.000000e+00> : vector<128x32xf32>
    %89 = tpu.matmul %86, %88, %cst_75 {dimension_numbers = #tpu.dot_dimension_numbers<[1], [0], [0], [1], [0, 0, 1, 1], [], []>} : vector<128x8xf32>, vector<8x32xf32>, vector<128x32xf32> -> vector<128x32xf32>
    %90 = arith.addf %82, %89 : vector<128x32xf32>
    %91 = vector.extract_strided_slice %73 {offsets = [16, 0], sizes = [8, 8], strides = [1, 1]} : vector<32x8xf32> to vector<8x8xf32>
    %c2_76 = arith.constant 2 : index
    %c0_77 = arith.constant 0 : index
    %c0_78 = arith.constant 0 : index
    %92 = vector.load %arg4[%c2_76, %c0_77, %c0_78] : memref<4x128x8xf32, #tpu.memory_space<vmem>>, vector<1x128x8xf32>
    %93 = vector.shape_cast %92 : vector<1x128x8xf32> to vector<128x8xf32>
    %cst_79 = arith.constant dense<0.000000e+00> : vector<128x8xf32>
    %94 = tpu.matmul %93, %91, %cst_79 {dimension_numbers = #tpu.dot_dimension_numbers<[1], [0], [0], [1], [0, 0, 1, 1], [], []>} : vector<128x8xf32>, vector<8x8xf32>, vector<128x8xf32> -> vector<128x8xf32>
    %c2_80 = arith.constant 2 : index
    %c0_81 = arith.constant 0 : index
    %c0_82 = arith.constant 0 : index
    %95 = vector.load %arg5[%c2_80, %c0_81, %c0_82] : memref<4x8x32xf32, #tpu.memory_space<vmem>>, vector<1x8x32xf32>
    %96 = vector.shape_cast %95 : vector<1x8x32xf32> to vector<8x32xf32>
    %cst_83 = arith.constant dense<0.000000e+00> : vector<128x32xf32>
    %97 = tpu.matmul %94, %96, %cst_83 {dimension_numbers = #tpu.dot_dimension_numbers<[1], [0], [0], [1], [0, 0, 1, 1], [], []>} : vector<128x8xf32>, vector<8x32xf32>, vector<128x32xf32> -> vector<128x32xf32>
    %98 = arith.addf %90, %97 : vector<128x32xf32>
    %99 = vector.extract_strided_slice %73 {offsets = [24, 0], sizes = [8, 8], strides = [1, 1]} : vector<32x8xf32> to vector<8x8xf32>
    %c3_84 = arith.constant 3 : index
    %c0_85 = arith.constant 0 : index
    %c0_86 = arith.constant 0 : index
    %100 = vector.load %arg4[%c3_84, %c0_85, %c0_86] : memref<4x128x8xf32, #tpu.memory_space<vmem>>, vector<1x128x8xf32>
    %101 = vector.shape_cast %100 : vector<1x128x8xf32> to vector<128x8xf32>
    %cst_87 = arith.constant dense<0.000000e+00> : vector<128x8xf32>
    %102 = tpu.matmul %101, %99, %cst_87 {dimension_numbers = #tpu.dot_dimension_numbers<[1], [0], [0], [1], [0, 0, 1, 1], [], []>} : vector<128x8xf32>, vector<8x8xf32>, vector<128x8xf32> -> vector<128x8xf32>
    %c3_88 = arith.constant 3 : index
    %c0_89 = arith.constant 0 : index
    %c0_90 = arith.constant 0 : index
    %103 = vector.load %arg5[%c3_88, %c0_89, %c0_90] : memref<4x8x32xf32, #tpu.memory_space<vmem>>, vector<1x8x32xf32>
    %104 = vector.shape_cast %103 : vector<1x8x32xf32> to vector<8x32xf32>
    %cst_91 = arith.constant dense<0.000000e+00> : vector<128x32xf32>
    %105 = tpu.matmul %102, %104, %cst_91 {dimension_numbers = #tpu.dot_dimension_numbers<[1], [0], [0], [1], [0, 0, 1, 1], [], []>} : vector<128x8xf32>, vector<8x32xf32>, vector<128x32xf32> -> vector<128x32xf32>
    %106 = arith.addf %98, %105 : vector<128x32xf32>
    %cst_92 = arith.constant dense<0.000000e+00> : vector<128x128xf32>
    %107 = tpu.matmul %106, %9, %cst_92 {dimension_numbers = #tpu.dot_dimension_numbers<[1], [0], [0], [1], [0, 0, 1, 1], [], []>} : vector<128x32xf32>, vector<32x128xf32>, vector<128x128xf32> -> vector<128x128xf32>
    %108 = vector.broadcast %10 : vector<1x128xf32> to vector<128x128xf32>
    %109 = arith.addf %107, %108 : vector<128x128xf32>
    %cst_93 = arith.constant dense<0xFF800000> : vector<128xf32>
    %110 = vector.multi_reduction <maximumf>, %109, %cst_93 [1] : vector<128x128xf32> to vector<128xf32>
    %111 = vector.shape_cast %110 : vector<128xf32> to vector<128x1xf32>
    %112 = vector.broadcast %111 : vector<128x1xf32> to vector<128x128xf32>
    %113 = arith.subf %109, %112 : vector<128x128xf32>
    %114 = math.exp %113 : vector<128x128xf32>
    %cst_94 = arith.constant dense<0.000000e+00> : vector<128xf32>
    %115 = vector.multi_reduction <add>, %114, %cst_94 [1] : vector<128x128xf32> to vector<128xf32>
    %116 = vector.shape_cast %115 : vector<128xf32> to vector<128x1xf32>
    %117 = tpu.reciprocal %116 {approx = true} : vector<128x1xf32> -> vector<128x1xf32>
    %118 = arith.mulf %114, %7 : vector<128x128xf32>
    %c1_i32_95 = arith.constant 1 : i32
    %119 = tpu.dynamic_rotate %114 by %c1_i32_95 dim 1 : vector<128x128xf32>, i32 -> vector<128x128xf32>
    %120 = arith.mulf %119, %8 : vector<128x128xf32>
    %121 = arith.addf %118, %120 : vector<128x128xf32>
    %cst_96 = arith.constant dense<0.000000e+00> : vector<128x32xf32>
    %122 = tpu.matmul %121, %106, %cst_96 {dimension_numbers = #tpu.dot_dimension_numbers<[1], [0], [0], [1], [0, 0, 1, 1], [], []>} : vector<128x128xf32>, vector<128x32xf32>, vector<128x32xf32> -> vector<128x32xf32>
    %123 = vector.broadcast %117 : vector<128x1xf32> to vector<128x32xf32>
    %124 = arith.mulf %122, %123 : vector<128x32xf32>
    %cst_97 = arith.constant dense<0.000000e+00> : vector<128x128xf32>
    %125 = tpu.matmul %124, %11, %cst_97 {dimension_numbers = #tpu.dot_dimension_numbers<[1], [0], [0], [1], [0, 0, 1, 1], [], []>} : vector<128x32xf32>, vector<32x128xf32>, vector<128x128xf32> -> vector<128x128xf32>
    %cst_98 = arith.constant dense<0.000000e+00> : vector<128x128xf32>
    %126 = tpu.matmul %106, %12, %cst_98 {dimension_numbers = #tpu.dot_dimension_numbers<[1], [0], [0], [1], [0, 0, 1, 1], [], []>} : vector<128x32xf32>, vector<32x128xf32>, vector<128x128xf32> -> vector<128x128xf32>
    %127 = arith.addf %125, %126 : vector<128x128xf32>
    %128 = arith.addf %127, %13 : vector<128x128xf32>
    %c1_99 = arith.constant 1 : index
    %c0_100 = arith.constant 0 : index
    %c0_101 = arith.constant 0 : index
    %129 = vector.load %arg13[%c1_99, %c0_100, %c0_101] : memref<2x128x128xf32, #tpu.memory_space<vmem>>, vector<1x128x128xf32>
    %130 = vector.shape_cast %129 : vector<1x128x128xf32> to vector<128x128xf32>
    %131 = vector.shape_cast %128 : vector<128x128xf32> to vector<1x128x128xf32>
    tpu.vector_store %arg13[%c1_99, %c0_100, %c0_101], %131 {strides = array<i32>} : memref<2x128x128xf32, #tpu.memory_space<vmem>>, vector<1x128x128xf32>,
    return
  }
  func.func @transform_0(%arg0: i32) -> (i32, i32, i32) {
    %c0_i32 = arith.constant 0 : i32
    %c0_i32_0 = arith.constant 0 : i32
    %c0_i32_1 = arith.constant 0 : i32
    %c0_i32_2 = arith.constant 0 : i32
    return %c0_i32, %c0_i32_0, %c0_i32_1 : i32, i32, i32
  }
  func.func @transform_1(%arg0: i32) -> (i32, i32) {
    %c0_i32 = arith.constant 0 : i32
    %c0_i32_0 = arith.constant 0 : i32
    %c0_i32_1 = arith.constant 0 : i32
    return %c0_i32, %c0_i32_0 : i32, i32
  }
  func.func @transform_2(%arg0: i32) -> (i32, i32) {
    %c0_i32 = arith.constant 0 : i32
    %c0_i32_0 = arith.constant 0 : i32
    %c0_i32_1 = arith.constant 0 : i32
    return %c0_i32, %c0_i32_0 : i32, i32
  }
  func.func @transform_3(%arg0: i32) -> (i32, i32, i32) {
    %c0_i32 = arith.constant 0 : i32
    %c0_i32_0 = arith.constant 0 : i32
    %c0_i32_1 = arith.constant 0 : i32
    %c0_i32_2 = arith.constant 0 : i32
    return %c0_i32, %c0_i32_0, %c0_i32_1 : i32, i32, i32
  }
  func.func @transform_4(%arg0: i32) -> (i32, i32, i32) {
    %c0_i32 = arith.constant 0 : i32
    %c0_i32_0 = arith.constant 0 : i32
    %c0_i32_1 = arith.constant 0 : i32
    %c0_i32_2 = arith.constant 0 : i32
    return %c0_i32, %c0_i32_0, %c0_i32_1 : i32, i32, i32
  }
  func.func @transform_5(%arg0: i32) -> (i32, i32) {
    %c0_i32 = arith.constant 0 : i32
    %c0_i32_0 = arith.constant 0 : i32
    %c0_i32_1 = arith.constant 0 : i32
    return %c0_i32, %c0_i32_0 : i32, i32
  }
  func.func @transform_6(%arg0: i32) -> (i32, i32) {
    %c0_i32 = arith.constant 0 : i32
    %c0_i32_0 = arith.constant 0 : i32
    %c0_i32_1 = arith.constant 0 : i32
    return %c0_i32, %c0_i32_0 : i32, i32
  }
  func.func @transform_7(%arg0: i32) -> (i32, i32) {
    %c0_i32 = arith.constant 0 : i32
    %c0_i32_0 = arith.constant 0 : i32
    %c0_i32_1 = arith.constant 0 : i32
    return %c0_i32, %c0_i32_0 : i32, i32
  }
  func.func @transform_8(%arg0: i32) -> (i32, i32) {
    %c0_i32 = arith.constant 0 : i32
    %c0_i32_0 = arith.constant 0 : i32
    %c0_i32_1 = arith.constant 0 : i32
    return %c0_i32, %c0_i32_0 : i32, i32
  }
  func.func @transform_9(%arg0: i32) -> (i32, i32) {
    %c0_i32 = arith.constant 0 : i32
    %c0_i32_0 = arith.constant 0 : i32
    %c0_i32_1 = arith.constant 0 : i32
    return %c0_i32, %c0_i32_0 : i32, i32
  }
  func.func @transform_10(%arg0: i32) -> (i32, i32) {
    %c0_i32 = arith.constant 0 : i32
    %c0_i32_0 = arith.constant 0 : i32
    %c0_i32_1 = arith.constant 0 : i32
    return %c0_i32, %c0_i32_0 : i32, i32
  }
  func.func @transform_11(%arg0: i32) -> (i32, i32) {
    %c0_i32 = arith.constant 0 : i32
    %c0_i32_0 = arith.constant 0 : i32
    %c0_i32_1 = arith.constant 0 : i32
    return %c0_i32, %c0_i32_0 : i32, i32
  }
  func.func @transform_12(%arg0: i32) -> (i32, i32, i32) {
    %c0_i32 = arith.constant 0 : i32
    %c0_i32_0 = arith.constant 0 : i32
    %c0_i32_1 = arith.constant 0 : i32
    %c0_i32_2 = arith.constant 0 : i32
    return %c0_i32, %c0_i32_0, %c0_i32_1 : i32, i32, i32
  }
}

</mosaic_0001>

<bundles_post_ra>
// kernel: _lambda_.1
= control target key start
LH: loop header
LB: loop body
LE: loop exit
PB: predicated region body
PF: predicated region fallthrough
CT: control target
= control target key end

     0   :  { %v7300_v0 = vmov 0.0   ;;  %vm88_vm0 = vcmask 523264   ;;  %vm295_vm1 = vcmask 64512   ;;  %vm1936_vm2 = vcmask 261120   ;;  %s7301_s29 = smov 1   ;;  %s9395_s1 = inlined_call_operand.vmem [shape: f32[192,8], index: 1, kind: input, shape index: {}]   ;;  %s9396_s0 = inlined_call_operand.vmem [shape: f32[2,32,192], index: 0, kind: input, shape index: {}]   ;;  %s9397_s3 = inlined_call_operand.vmem [shape: f32[4,128,8], index: 3, kind: input, shape index: {}]   ;;  %s9398_s2 = inlined_call_operand.vmem [shape: f32[1,8], index: 2, kind: input, shape index: {}]   ;;  %s9399_s4 = inlined_call_operand.vmem [shape: f32[4,8,32], index: 4, kind: input, shape index: {}]   ;;  %s9400_s7 = inlined_call_operand.vmem [shape: f32[32,128], index: 7, kind: input, shape index: {}]   ;;  %s9401_s10 = inlined_call_operand.vmem [shape: f32[32,128], index: 10, kind: input, shape index: {}]   ;;  %s9402_s8 = inlined_call_operand.vmem [shape: f32[1,128], index: 8, kind: input, shape index: {}]   ;;  %s9403_s9 = inlined_call_operand.vmem [shape: f32[32,128], index: 9, kind: input, shape index: {}]   ;;  %s9404_s5 = inlined_call_operand.vmem [shape: f32[128,128], index: 5, kind: input, shape index: {}]   ;;  %s9405_s6 = inlined_call_operand.vmem [shape: f32[128,128], index: 6, kind: input, shape index: {}]   ;;  %s9406_s11 = inlined_call_operand.vmem [shape: f32[128,128], index: 11, kind: input, shape index: {}]   ;;  %s9407_s12 = inlined_call_operand.vmem [shape: f32[2,128,128], index: 12, kind: output, shape index: {}]  }
   0x1   :  { %113 = vmatprep.subr.mxu0 %v7300_v0  ;;  %v72_v1 = vld [vmem:[%s9395_s1 + $0x78] sm:$0xff]  ;;  %v71_v2 = vld [vmem:[%s9395_s1 + $0x70] sm:$0xff]  ;;  %v70_v3 = vld [vmem:[%s9395_s1 + $0x68] sm:$0xff] }
   0x2   :  { %114 = vmatpush1.msra.mxu0 %v72_v1  ;;  %v69_v4 = vld [vmem:[%s9395_s1 + $0x60] sm:$0xff]  ;;  %v68_v5 = vld [vmem:[%s9395_s1 + $0x58] sm:$0xff]  ;;  %v67_v6 = vld [vmem:[%s9395_s1 + $0x50] sm:$0xff] }
   0x3   :  { %115 = vmatprep.subr.mxu0 %v7300_v0  ;;  %v42_v7 = vld [vmem:[%s9396_s0 + $0x8] sm:$0xff]  ;;  %v65_v9 = vld [vmem:[%s9395_s1 + $0x40] sm:$0xff]  ;;  %v64_v10 = vld [vmem:[%s9395_s1 + $0x38] sm:$0xff] }
   0x4   :  { %116 = vmatpush1.msra.mxu0 %v71_v2  ;;  %5451 = vmatprep.mubr.msk.f32.mxu0 %vm88_vm0, %v42_v7  ;;  %v66_v8 = vld [vmem:[%s9395_s1 + $0x48] sm:$0xff]  ;;  %v63_v11 = vld [vmem:[%s9395_s1 + $0x30] sm:$0xff]  ;;  %v61_v13 = vld [vmem:[%s9395_s1 + $0x20] sm:$0xff] }
   0x5   :  { %117 = vmatprep.subr.mxu0 %v7300_v0  ;;  %v62_v12 = vld [vmem:[%s9395_s1 + $0x28] sm:$0xff]  ;;  %v60_v14 = vld [vmem:[%s9395_s1 + $0x18] sm:$0xff]  ;;  %v59_v15 = vld [vmem:[%s9395_s1 + $0x10] sm:$0xff] }
   0x6   :  { %118 = vmatpush1.msra.mxu0 %v70_v3  ;;  %v58_v16 = vld [vmem:[%s9395_s1 + $0x8] sm:$0xff]  ;;  %v57_v17 = vld [vmem:[%s9395_s1] sm:$0xff]  ;;  %v80_v18 = vld [vmem:[%s9395_s1 + $0xb8] sm:$0xff] }
   0x7   :  { %119 = vmatprep.subr.mxu0 %v7300_v0  ;;  %v79_v19 = vld [vmem:[%s9395_s1 + $0xb0] sm:$0xff]  ;;  %v78_v20 = vld [vmem:[%s9395_s1 + $0xa8] sm:$0xff]  ;;  %v77_v21 = vld [vmem:[%s9395_s1 + $0xa0] sm:$0xff] }
   0x8   :  { %120 = vmatpush1.msra.mxu0 %v69_v4  ;;  %v76_v22 = vld [vmem:[%s9395_s1 + $0x98] sm:$0xff]  ;;  %v75_v23 = vld [vmem:[%s9395_s1 + $0x90] sm:$0xff]  ;;  %v74_v24 = vld [vmem:[%s9395_s1 + $0x88] sm:$0xff] }
   0x9   :  { %121 = vmatprep.subr.mxu0 %v7300_v0  ;;  %v73_v25 = vld [vmem:[%s9395_s1 + $0x80] sm:$0xff]  ;;  %v44_v27 = vld [vmem:[%s9396_s0 + $0x18] sm:$0xff]  ;;  %v43_v28 = vld [vmem:[%s9396_s0 + $0x10] sm:$0xff] }
   0xa   :  { %122 = vmatpush1.msra.mxu0 %v68_v5  ;;  %v41_v26 = vld [vmem:[%s9396_s0] sm:$0xff]  ;;  %v46_v30 = vld [vmem:[%s9396_s0 + $0x28] sm:$0xff]  ;;  %v48_v32 = vld [vmem:[%s9396_s0 + $0x38] sm:$0xff] }
   0xb   :  { %123 = vmatprep.subr.mxu0 %v7300_v0  ;;  %v279_v29 = vld [vmem:[%s9397_s3] sm:$0xff]  ;;  %v47_v33 = vld [vmem:[%s9396_s0 + $0x30] sm:$0xff]  ;;  %v50_v34 = vld [vmem:[%s9396_s0 + $0x48] sm:$0xff] }
   0xc   :  { %124 = vmatpush1.msra.mxu0 %v67_v6  ;;  %6388 = vmatprep.mubr.msk.f32.mxu1 %vm295_vm1, %v279_v29  ;;  %v45_v31 = vld [vmem:[%s9396_s0 + $0x20] sm:$0xff]  ;;  %v52_v36 = vld [vmem:[%s9396_s0 + $0x58] sm:$0xff]  ;;  %v51_v37 = vld [vmem:[%s9396_s0 + $0x50] sm:$0xff] }
   0xd   :  { %125 = vmatprep.subr.mxu0 %v7300_v0  ;;  %v49_v35 = vld [vmem:[%s9396_s0 + $0x40] sm:$0xff]  ;;  %v54_v38 = vld [vmem:[%s9396_s0 + $0x68] sm:$0xff]  ;;  %v56_v40 = vld [vmem:[%s9396_s0 + $0x78] sm:$0xff] }
   0xe   :  { %126 = vmatpush1.msra.mxu0 %v66_v8  ;;  %v53_v39 = vld [vmem:[%s9396_s0 + $0x60] sm:$0xff]  ;;  %v55_v41 = vld [vmem:[%s9396_s0 + $0x70] sm:$0xff]  ;;  %v280_v46 = vld [vmem:[%s9397_s3 + $0x8] sm:$0xff] }
   0xf   :  { %127 = vmatprep.subr.mxu0 %v7300_v0  ;;  %v7526_v42 = vld [vmem:[%s9398_s2] ss:$0 sm:$0xff]  ;;  %v281_v47 = vld [vmem:[%s9397_s3 + $0x10] sm:$0xff]  ;;  %v282_v51 = vld [vmem:[%s9397_s3 + $0x18] sm:$0xff] }
  0x10   :  { %128 = vmatpush1.msra.mxu0 %v65_v9  ;;  %v283_v52 = vld [vmem:[%s9397_s3 + $0x20] sm:$0xff]  ;;  %v284_v53 = vld [vmem:[%s9397_s3 + $0x28] sm:$0xff]  ;;  %v285_v54 = vld [vmem:[%s9397_s3 + $0x30] sm:$0xff] }
  0x11   :  { %129 = vmatprep.subr.mxu0 %v7300_v0  ;;  %v286_v55 = vld [vmem:[%s9397_s3 + $0x38] sm:$0xff]  ;;  %v287_v56 = vld [vmem:[%s9397_s3 + $0x40] sm:$0xff]  ;;  %v288_v57 = vld [vmem:[%s9397_s3 + $0x48] sm:$0xff] }
  0x12   :  { %130 = vmatpush1.msra.mxu0 %v64_v10  ;;  %v289_v58 = vld [vmem:[%s9397_s3 + $0x50] sm:$0xff]  ;;  %v290_v59 = vld [vmem:[%s9397_s3 + $0x58] sm:$0xff]  ;;  %v291_v60 = vld [vmem:[%s9397_s3 + $0x60] sm:$0xff] }
  0x13   :  { %131 = vmatprep.subr.mxu0 %v7300_v0  ;;  %v292_v61 = vld [vmem:[%s9397_s3 + $0x68] sm:$0xff]  ;;  %v293_v62 = vld [vmem:[%s9397_s3 + $0x70] sm:$0xff]  ;;  %v294_v63 = vld [vmem:[%s9397_s3 + $0x78] sm:$0xff] }
  0x14   :  { %132 = vmatpush1.msra.mxu0 %v63_v11  ;;  %v5476_v1 = vld [vmem:[%s9397_s3 + $0x88] sm:$0xff]  ;;  %v5477_v2 = vld [vmem:[%s9397_s3 + $0x90] sm:$0xff]  ;;  %v5478_v3 = vld [vmem:[%s9397_s3 + $0x98] sm:$0xff] }
  0x15   :  { %133 = vmatprep.subr.mxu0 %v7300_v0  ;;  %v5479_v4 = vld [vmem:[%s9397_s3 + $0xa0] sm:$0xff]  ;;  %v5480_v5 = vld [vmem:[%s9397_s3 + $0xa8] sm:$0xff]  ;;  %v5481_v6 = vld [vmem:[%s9397_s3 + $0xb0] sm:$0xff] }
  0x16   :  { %134 = vmatpush1.msra.mxu0 %v62_v12  ;;  %v5482_v7 = vld [vmem:[%s9397_s3 + $0xb8] sm:$0xff]  ;;  %v5483_v8 = vld [vmem:[%s9397_s3 + $0xc0] sm:$0xff]  ;;  %v5484_v9 = vld [vmem:[%s9397_s3 + $0xc8] sm:$0xff] }
  0x17   :  { %135 = vmatprep.subr.mxu0 %v7300_v0  ;;  %v5485_v10 = vld [vmem:[%s9397_s3 + $0xd0] sm:$0xff]  ;;  %v5486_v11 = vld [vmem:[%s9397_s3 + $0xd8] sm:$0xff]  ;;  %v5487_v12 = vld [vmem:[%s9397_s3 + $0xe0] sm:$0xff] }
  0x18   :  { %136 = vmatpush1.msra.mxu0 %v61_v13  ;;  %v5488_v13 = vld [vmem:[%s9397_s3 + $0xe8] sm:$0xff] }
  0x19   :  { %137 = vmatprep.subr.mxu0 %v7300_v0 }
  0x1a   :  { %138 = vmatpush1.msra.mxu0 %v60_v14  ;;  %v5489_v14 = vld [vmem:[%s9397_s3 + $0xf0] sm:$0xff] }
  0x1b   :  { %139 = vmatprep.subr.mxu0 %v7300_v0 }
  0x1c   :  { %140 = vmatpush1.msra.mxu0 %v59_v15  ;;  %v5490_v15 = vld [vmem:[%s9397_s3 + $0xf8] sm:$0xff] }
  0x1d   :  { %141 = vmatprep.subr.mxu0 %v7300_v0 }
  0x1e   :  { %142 = vmatpush1.msra.mxu0 %v58_v16  ;;  %v489_v16 = vld [vmem:[%s9399_s4] sm:$0xff] }
  0x1f   :  { %143 = vmatprep.subr.mxu0 %v7300_v0 }
  0x20   :  { %144 = vmatpush1.msra.mxu0 %v57_v17  ;;  %v7660_v17 = vld [vmem:[%s9399_s4 + $0x8] sm:$0xff] }
  0x21   :  { %161 = vmatprep.subr.mxu0 %v7300_v0 }
  0x22   :  { %162 = vmatpush2.msra.mxu0 %v80_v18 }
  0x23   :  { %163 = vmatprep.subr.mxu0 %v7300_v0 }
  0x24   :  { %164 = vmatpush2.msra.mxu0 %v79_v19 }
  0x25   :  { %165 = vmatprep.subr.mxu0 %v7300_v0 }
  0x26   :  { %166 = vmatpush2.msra.mxu0 %v78_v20 }
  0x27   :  { %167 = vmatprep.subr.mxu0 %v7300_v0 }
  0x28   :  { %168 = vmatpush2.msra.mxu0 %v77_v21 }
  0x29   :  { %169 = vmatprep.subr.mxu0 %v7300_v0 }
  0x2a   :  { %170 = vmatpush2.msra.mxu0 %v76_v22 }
  0x2b   :  { %171 = vmatprep.subr.mxu0 %v7300_v0 }
  0x2c   :  { %172 = vmatpush2.msra.mxu0 %v75_v23 }
  0x2d   :  { %173 = vmatprep.subr.mxu0 %v7300_v0 }
  0x2e   :  { %174 = vmatpush2.msra.mxu0 %v74_v24 }
  0x2f   :  { %175 = vmatprep.subr.mxu0 %v7300_v0  ;;  %v5475_v0 = vld [vmem:[%s9397_s3 + $0x80] sm:$0xff] }
  0x30   :  { %176 = vmatpush2.msra.mxu0 %v73_v25 }
  0x31   :  { %178 = vmatmul.mubr.f32.vlgmr.msra.gmra.mxu0 %v41_v26  ;;  %6464 = vmatprep.subr.mxu0 %v489_v16 }
  0x32   :  { %5452 = vmatprep.mubr.msk.f32.mxu0 %vm88_vm0, %v44_v27  ;;  %6465 = vmatpush3.msra.mxu0 %v489_v16 }
  0x35   :  { %183 = vmatmul.mubr.f32.gmra.mxu0 %v43_v28 }
  0x36   :  { %5453 = vmatprep.mubr.msk.f32.mxu0 %vm88_vm0, %v46_v30 }
  0x39   :  { %188 = vmatmul.mubr.f32.gmra.mxu0 %v45_v31 }
  0x3a   :  { %5454 = vmatprep.mubr.msk.f32.mxu0 %vm88_vm0, %v48_v32 }
  0x3d   :  { %193 = vmatmul.mubr.f32.gmra.mxu0 %v47_v33 }
  0x3e   :  { %5455 = vmatprep.mubr.msk.f32.mxu0 %vm88_vm0, %v50_v34 }
  0x41   :  { %198 = vmatmul.mubr.f32.gmra.mxu0 %v49_v35 }
  0x42   :  { %5456 = vmatprep.mubr.msk.f32.mxu0 %vm88_vm0, %v52_v36 }
  0x45   :  { %203 = vmatmul.mubr.f32.gmra.mxu0 %v51_v37 }
  0x46   :  { %5457 = vmatprep.mubr.msk.f32.mxu0 %vm88_vm0, %v54_v38 }
  0x49   :  { %208 = vmatmul.mubr.f32.gmra.mxu0 %v53_v39 }
  0x4a   :  { %5458 = vmatprep.mubr.msk.f32.mxu0 %vm88_vm0, %v56_v40 }
  0x4d   :  { %213 = vmatmul.mubr.f32.gmra.mxu0 %v55_v41 }
  0xf1   :  { %v179_v43 = vpop.f32.mrf.mxu0 }
  0xf2   :  { %v180_v44 = vadd.f32 %v7526_v42, %v179_v43 }
  0xf3   :  { %v181_v45 = vpop.f32.mrf.mxu0 }
  0xf4   :  { %6386 = vmatprep.subr.mxu1 %v180_v44 }
  0xf5   :  { %v184_v48 = vpop.f32.mrf.mxu0  ;;  %6387 = vmatpush3.msra.mxu1 %v180_v44 }
  0xf6   :  { %v185_v49 = vadd.f32 %v7526_v42, %v184_v48  ;;  %6389 = vmatmul.mubr.msk.f32.vlgmr.msra.gmra.mxu1 %vm295_vm1, %v280_v46 }
  0xf7   :  { %v186_v50 = vpop.f32.mrf.mxu0  ;;  %6391 = vmatprep.mubr.msk.f32.mxu1 %vm295_vm1, %v281_v47 }
  0xf8   :  { %6412 = vmatprep.subr.mxu1 %v185_v49 }
  0xf9   :  { %6413 = vmatpush3.msra.mxu1 %v185_v49  ;;  %v189_v18 = vpop.f32.mrf.mxu0 }
  0xfa   :  { %6392 = vmatmul.mubr.msk.f32.gmra.mxu1 %vm295_vm1, %v282_v51  ;;  %6438 = vmatprep.subr.mxu1 %v7660_v17  ;;  %v190_v49 = vadd.f32 %v7526_v42, %v189_v18  ;;  %v5589_v18 = vld [vmem:[%s9397_s3 + $0x180] sm:$0xff] }
  0xfb   :  { %6394 = vmatprep.mubr.msk.f32.mxu1 %vm295_vm1, %v283_v52  ;;  %v191_v19 = vpop.f32.mrf.mxu0 }
  0xfc   :  { %v5590_v19 = vld [vmem:[%s9397_s3 + $0x188] sm:$0xff] }
  0xfd   :  { %v7664_v20 = vpop.f32.mrf.mxu0 }
  0xfe   :  { %6395 = vmatmul.mubr.msk.f32.gmra.mxu1 %vm295_vm1, %v284_v53 }
  0xff   :  { %6397 = vmatprep.mubr.msk.f32.mxu1 %vm295_vm1, %v285_v54  ;;  %v196_v21 = vpop.f32.mrf.mxu0 }
 0x100   :  { %v5592_v21 = vld [vmem:[%s9397_s3 + $0x198] sm:$0xff] }
 0x101   :  { %v7668_v25 = vpop.f32.mrf.mxu0 }
 0x102   :  { %6398 = vmatmul.mubr.msk.f32.gmra.mxu1 %vm295_vm1, %v286_v55 }
 0x103   :  { %6400 = vmatprep.mubr.msk.f32.mxu1 %vm295_vm1, %v287_v56  ;;  %v201_v27 = vpop.f32.mrf.mxu0 }
 0x104   :  { %v5597_v27 = vld [vmem:[%s9397_s3 + $0x1c0] sm:$0xff] }
 0x105   :  { %v7672_v29 = vpop.f32.mrf.mxu0 }
 0x106   :  { %6401 = vmatmul.mubr.msk.f32.gmra.mxu1 %vm295_vm1, %v288_v57  ;;  %9408 = vst [vmem:[#allocation2_spill] sm:$0xff] %v7672_v29 }
 0x107   :  { %6403 = vmatprep.mubr.msk.f32.mxu1 %vm295_vm1, %v289_v58  ;;  %v206_v31 = vpop.f32.mrf.mxu0 }
 0x108   :  { %v5599_v31 = vld [vmem:[%s9397_s3 + $0x1d0] sm:$0xff] }
 0x109   :  { %v7676_v33 = vpop.f32.mrf.mxu0 }
 0x10a   :  { %6404 = vmatmul.mubr.msk.f32.gmra.mxu1 %vm295_vm1, %v290_v59 }
 0x10b   :  { %6406 = vmatprep.mubr.msk.f32.mxu1 %vm295_vm1, %v291_v60  ;;  %v211_v35 = vpop.f32.mrf.mxu0 }
 0x10c   :  { %v5602_v35 = vld [vmem:[%s9397_s3 + $0x1e8] sm:$0xff] }
 0x10d   :  { %v7680_v37 = vpop.f32.mrf.mxu0 }
 0x10e   :  { %6407 = vmatmul.mubr.msk.f32.gmra.mxu1 %vm295_vm1, %v292_v61  ;;  %9409 = vst [vmem:[#allocation3_spill] sm:$0xff] %v7680_v37 }
 0x10f   :  { %6409 = vmatprep.mubr.msk.f32.mxu1 %vm295_vm1, %v293_v62  ;;  %v216_v39 = vpop.f32.mrf.mxu0 }
 0x110   :  { %v5621_v39 = vld [vmem:[%s9399_s4 + $0x18] sm:$0xff] }
 0x112   :  { %6410 = vmatmul.mubr.msk.f32.gmra.mxu1 %vm295_vm1, %v294_v63 }
 0x113   :  { %6414 = vmatprep.mubr.msk.f32.mxu1 %vm295_vm1, %v5475_v0  ;;  %v195_v0 = vadd.f32 %v7526_v42, %v7664_v20  ;;  %v5591_v20 = vld [vmem:[%s9397_s3 + $0x190] sm:$0xff] }
 0x116   :  { %6415 = vmatmul.mubr.msk.f32.vlgmr.msra.gmra.mxu1 %vm295_vm1, %v5476_v1  ;;  %v5540_v1 = vld [vmem:[%s9397_s3 + $0x100] sm:$0xff] }
 0x117   :  { %6417 = vmatprep.mubr.msk.f32.mxu1 %vm295_vm1, %v5477_v2  ;;  %6439 = vmatpush3.msra.mxu1 %v7660_v17  ;;  %v5541_v2 = vld [vmem:[%s9397_s3 + $0x108] sm:$0xff] }
 0x118   :  { %7106 = vmatprep.subr.mxu1 %v489_v16 }
 0x11a   :  { %6418 = vmatmul.mubr.msk.f32.gmra.mxu1 %vm295_vm1, %v5478_v3  ;;  %v5542_v3 = vld [vmem:[%s9397_s3 + $0x110] sm:$0xff] }
 0x11b   :  { %6420 = vmatprep.mubr.msk.f32.mxu1 %vm295_vm1, %v5479_v4  ;;  %v5543_v4 = vld [vmem:[%s9397_s3 + $0x118] sm:$0xff] }
 0x11e   :  { %6421 = vmatmul.mubr.msk.f32.gmra.mxu1 %vm295_vm1, %v5480_v5  ;;  %v5544_v5 = vld [vmem:[%s9397_s3 + $0x120] sm:$0xff] }
 0x11f   :  { %6423 = vmatprep.mubr.msk.f32.mxu1 %vm295_vm1, %v5481_v6  ;;  %v5545_v6 = vld [vmem:[%s9397_s3 + $0x128] sm:$0xff] }
 0x122   :  { %6424 = vmatmul.mubr.msk.f32.gmra.mxu1 %vm295_vm1, %v5482_v7  ;;  %v5546_v7 = vld [vmem:[%s9397_s3 + $0x130] sm:$0xff] }
 0x123   :  { %6426 = vmatprep.mubr.msk.f32.mxu1 %vm295_vm1, %v5483_v8  ;;  %v5547_v8 = vld [vmem:[%s9397_s3 + $0x138] sm:$0xff] }
 0x126   :  { %6427 = vmatmul.mubr.msk.f32.gmra.mxu1 %vm295_vm1, %v5484_v9  ;;  %v5548_v9 = vld [vmem:[%s9397_s3 + $0x140] sm:$0xff] }
 0x127   :  { %6429 = vmatprep.mubr.msk.f32.mxu1 %vm295_vm1, %v5485_v10  ;;  %v5549_v10 = vld [vmem:[%s9397_s3 + $0x148] sm:$0xff] }
 0x12a   :  { %6430 = vmatmul.mubr.msk.f32.gmra.mxu1 %vm295_vm1, %v5486_v11  ;;  %v5550_v11 = vld [vmem:[%s9397_s3 + $0x150] sm:$0xff] }
 0x12b   :  { %6432 = vmatprep.mubr.msk.f32.mxu1 %vm295_vm1, %v5487_v12  ;;  %v5551_v12 = vld [vmem:[%s9397_s3 + $0x158] sm:$0xff] }
 0x12e   :  { %6433 = vmatmul.mubr.msk.f32.gmra.mxu1 %vm295_vm1, %v5488_v13  ;;  %v5552_v13 = vld [vmem:[%s9397_s3 + $0x160] sm:$0xff] }
 0x12f   :  { %6435 = vmatprep.mubr.msk.f32.mxu1 %vm295_vm1, %v5489_v14  ;;  %v5553_v14 = vld [vmem:[%s9397_s3 + $0x168] sm:$0xff] }
 0x132   :  { %6436 = vmatmul.mubr.msk.f32.gmra.mxu1 %vm295_vm1, %v5490_v15  ;;  %v5554_v15 = vld [vmem:[%s9397_s3 + $0x170] sm:$0xff] }
 0x1b6   :  { %v6390_v22 = vpop.f32.mrf.mxu1 }
 0x1b8   :  { %v410_v23 = vpop.f32.mrf.mxu1 }
 0x1b9   :  { %6466 = vmatprep.mubr.msk.f32.mxu0 %vm295_vm1, %v410_v23  ;;  %v5594_v23 = vld [vmem:[%s9397_s3 + $0x1a8] sm:$0xff] }
 0x1ba   :  { %v6393_v24 = vpop.f32.mrf.mxu1  ;;  %6467 = vmatmul.mubr.msk.f32.vlgmr.msra.gmra.mxu0 %vm295_vm1, %v6390_v22  ;;  %v5593_v22 = vld [vmem:[%s9397_s3 + $0x1a0] sm:$0xff] }
 0x1bc   :  { %v420_v26 = vpop.f32.mrf.mxu1 }
 0x1bd   :  { %6469 = vmatprep.mubr.msk.f32.mxu0 %vm295_vm1, %v420_v26  ;;  %v5596_v26 = vld [vmem:[%s9397_s3 + $0x1b8] sm:$0xff] }
 0x1be   :  { %v6396_v28 = vpop.f32.mrf.mxu1  ;;  %6470 = vmatmul.mubr.msk.f32.gmra.mxu0 %vm295_vm1, %v6393_v24  ;;  %v5595_v24 = vld [vmem:[%s9397_s3 + $0x1b0] sm:$0xff] }
 0x1c0   :  { %v430_v30 = vpop.f32.mrf.mxu1 }
 0x1c1   :  { %6472 = vmatprep.mubr.msk.f32.mxu0 %vm295_vm1, %v430_v30  ;;  %v5598_v30 = vld [vmem:[%s9397_s3 + $0x1c8] sm:$0xff] }
 0x1c2   :  { %v6399_v32 = vpop.f32.mrf.mxu1  ;;  %6473 = vmatmul.mubr.msk.f32.gmra.mxu0 %vm295_vm1, %v6396_v28  ;;  %v5572_v28 = vld [vmem:[%s9399_s4 + $0x10] sm:$0xff] }
 0x1c3   :  { %6516 = vmatprep.subr.mxu0 %v5572_v28 }
 0x1c4   :  { %v440_v34 = vpop.f32.mrf.mxu1  ;;  %6517 = vmatpush3.msra.mxu0 %v5572_v28 }
 0x1c5   :  { %6475 = vmatprep.mubr.msk.f32.mxu0 %vm295_vm1, %v440_v34  ;;  %v5601_v34 = vld [vmem:[%s9397_s3 + $0x1e0] sm:$0xff]  ;;  %6568 = vmatprep.subr.mxu0 %v5621_v39 }
 0x1c6   :  { %v6402_v36 = vpop.f32.mrf.mxu1  ;;  %6476 = vmatmul.mubr.msk.f32.gmra.mxu0 %vm295_vm1, %v6399_v32  ;;  %v5600_v32 = vld [vmem:[%s9397_s3 + $0x1d8] sm:$0xff] }
 0x1c8   :  { %v450_v38 = vpop.f32.mrf.mxu1 }
 0x1c9   :  { %6478 = vmatprep.mubr.msk.f32.mxu0 %vm295_vm1, %v450_v38  ;;  %v5604_v38 = vld [vmem:[%s9397_s3 + $0x1f8] sm:$0xff] }
 0x1ca   :  { %v6405_v40 = vpop.f32.mrf.mxu1  ;;  %6479 = vmatmul.mubr.msk.f32.gmra.mxu0 %vm295_vm1, %v6402_v36  ;;  %v5603_v36 = vld [vmem:[%s9397_s3 + $0x1f0] sm:$0xff] }
 0x1cc   :  { %v460_v41 = vpop.f32.mrf.mxu1 }
 0x1cd   :  { %6481 = vmatprep.mubr.msk.f32.mxu0 %vm295_vm1, %v460_v41 }
 0x1ce   :  { %v6408_v43 = vpop.f32.mrf.mxu1  ;;  %6482 = vmatmul.mubr.msk.f32.gmra.mxu0 %vm295_vm1, %v6405_v40 }
 0x1d0   :  { %v470_v44 = vpop.f32.mrf.mxu1 }
 0x1d1   :  { %6484 = vmatprep.mubr.msk.f32.mxu0 %vm295_vm1, %v470_v44 }
 0x1d2   :  { %v6411_v45 = vpop.f32.mrf.mxu1  ;;  %6485 = vmatmul.mubr.msk.f32.gmra.mxu0 %vm295_vm1, %v6408_v43 }
 0x1d4   :  { %v480_v46 = vpop.f32.mrf.mxu1 }
 0x1d6   :  { %v6416_v47 = vpop.f32.mrf.mxu1 }
 0x1d8   :  { %v621_v48 = vpop.f32.mrf.mxu1 }
 0x1d9   :  { %6440 = vmatprep.mubr.msk.f32.mxu1 %vm295_vm1, %v621_v48 }
 0x1da   :  { %v6419_v50 = vpop.f32.mrf.mxu1  ;;  %6441 = vmatmul.mubr.msk.f32.vlgmr.msra.gmra.mxu1 %vm295_vm1, %v6416_v47 }
 0x1db   :  { %7107 = vmatpush3.msra.mxu1 %v489_v16  ;;  %v5555_v16 = vld [vmem:[%s9397_s3 + $0x178] sm:$0xff] }
 0x1dc   :  { %v631_v51 = vpop.f32.mrf.mxu1  ;;  %6490 = vmatprep.subr.mxu1 %v190_v49 }
 0x1dd   :  { %6443 = vmatprep.mubr.msk.f32.mxu1 %vm295_vm1, %v631_v51 }
 0x1de   :  { %v6422_v52 = vpop.f32.mrf.mxu1  ;;  %6444 = vmatmul.mubr.msk.f32.gmra.mxu1 %vm295_vm1, %v6419_v50 }
 0x1e0   :  { %v641_v53 = vpop.f32.mrf.mxu1 }
 0x1e1   :  { %6446 = vmatprep.mubr.msk.f32.mxu1 %vm295_vm1, %v641_v53 }
 0x1e2   :  { %v6425_v54 = vpop.f32.mrf.mxu1  ;;  %6447 = vmatmul.mubr.msk.f32.gmra.mxu1 %vm295_vm1, %v6422_v52 }
 0x1e4   :  { %v651_v55 = vpop.f32.mrf.mxu1 }
 0x1e5   :  { %6449 = vmatprep.mubr.msk.f32.mxu1 %vm295_vm1, %v651_v55 }
 0x1e6   :  { %v6428_v56 = vpop.f32.mrf.mxu1  ;;  %6450 = vmatmul.mubr.msk.f32.gmra.mxu1 %vm295_vm1, %v6425_v54 }
 0x1e8   :  { %v661_v57 = vpop.f32.mrf.mxu1 }
 0x1e9   :  { %6452 = vmatprep.mubr.msk.f32.mxu1 %vm295_vm1, %v661_v57 }
 0x1ea   :  { %v6431_v58 = vpop.f32.mrf.mxu1  ;;  %6453 = vmatmul.mubr.msk.f32.gmra.mxu1 %vm295_vm1, %v6428_v56 }
 0x1ec   :  { %v671_v59 = vpop.f32.mrf.mxu1 }
 0x1ed   :  { %6455 = vmatprep.mubr.msk.f32.mxu1 %vm295_vm1, %v671_v59 }
 0x1ee   :  { %v6434_v60 = vpop.f32.mrf.mxu1  ;;  %6456 = vmatmul.mubr.msk.f32.gmra.mxu1 %vm295_vm1, %v6431_v58 }
 0x1f0   :  { %v681_v61 = vpop.f32.mrf.mxu1 }
 0x1f1   :  { %6458 = vmatprep.mubr.msk.f32.mxu1 %vm295_vm1, %v681_v61 }
 0x1f2   :  { %v6437_v62 = vpop.f32.mrf.mxu1  ;;  %6459 = vmatmul.mubr.msk.f32.gmra.mxu1 %vm295_vm1, %v6434_v60 }
 0x1f4   :  { %v691_v63 = vpop.f32.mrf.mxu1 }
 0x1f5   :  { %6461 = vmatprep.mubr.msk.f32.mxu1 %vm295_vm1, %v691_v63 }
 0x1f6   :  { %6462 = vmatmul.mubr.msk.f32.gmra.mxu1 %vm295_vm1, %v6437_v62 }
 0x1f7   :  { %6487 = vmatprep.mubr.msk.f32.mxu1 %vm295_vm1, %v480_v46 }
 0x1fa   :  { %6488 = vmatmul.mubr.msk.f32.vlgmr.msra.gmra.mxu1 %vm295_vm1, %v6411_v45 }
 0x1fb   :  { %6491 = vmatpush3.msra.mxu1 %v190_v49  ;;  %6492 = vmatprep.mubr.msk.f32.mxu1 %vm295_vm1, %v5540_v1 }
 0x1fc   :  { %6542 = vmatprep.subr.mxu1 %v195_v0 }
 0x1fe   :  { %6493 = vmatmul.mubr.msk.f32.vlgmr.msra.gmra.mxu1 %vm295_vm1, %v5541_v2 }
 0x1ff   :  { %6543 = vmatpush3.msra.mxu1 %v195_v0  ;;  %6495 = vmatprep.mubr.msk.f32.mxu1 %vm295_vm1, %v5542_v3 }
 0x202   :  { %6496 = vmatmul.mubr.msk.f32.gmra.mxu1 %vm295_vm1, %v5543_v4 }
 0x203   :  { %6498 = vmatprep.mubr.msk.f32.mxu1 %vm295_vm1, %v5544_v5 }
 0x206   :  { %6499 = vmatmul.mubr.msk.f32.gmra.mxu1 %vm295_vm1, %v5545_v6 }
 0x207   :  { %6501 = vmatprep.mubr.msk.f32.mxu1 %vm295_vm1, %v5546_v7 }
 0x20a   :  { %6502 = vmatmul.mubr.msk.f32.gmra.mxu1 %vm295_vm1, %v5547_v8 }
 0x20b   :  { %6504 = vmatprep.mubr.msk.f32.mxu1 %vm295_vm1, %v5548_v9 }
 0x20e   :  { %6505 = vmatmul.mubr.msk.f32.gmra.mxu1 %vm295_vm1, %v5549_v10 }
 0x20f   :  { %6507 = vmatprep.mubr.msk.f32.mxu1 %vm295_vm1, %v5550_v11 }
 0x212   :  { %6508 = vmatmul.mubr.msk.f32.gmra.mxu1 %vm295_vm1, %v5551_v12 }
 0x213   :  { %6510 = vmatprep.mubr.msk.f32.mxu1 %vm295_vm1, %v5552_v13 }
 0x216   :  { %6511 = vmatmul.mubr.msk.f32.gmra.mxu1 %vm295_vm1, %v5553_v14 }
 0x217   :  { %6513 = vmatprep.mubr.msk.f32.mxu1 %vm295_vm1, %v5554_v15 }
 0x21a   :  { %6514 = vmatmul.mubr.msk.f32.gmra.mxu1 %vm295_vm1, %v5555_v16 }
 0x21b   :  { %6544 = vmatprep.mubr.msk.f32.mxu1 %vm295_vm1, %v5589_v18 }
 0x21e   :  { %6545 = vmatmul.mubr.msk.f32.vlgmr.msra.gmra.mxu1 %vm295_vm1, %v5590_v19 }
 0x21f   :  { %6547 = vmatprep.mubr.msk.f32.mxu1 %vm295_vm1, %v5591_v20 }
 0x222   :  { %6548 = vmatmul.mubr.msk.f32.gmra.mxu1 %vm295_vm1, %v5592_v21 }
 0x223   :  { %6550 = vmatprep.mubr.msk.f32.mxu1 %vm295_vm1, %v5593_v22 }
 0x226   :  { %6551 = vmatmul.mubr.msk.f32.gmra.mxu1 %vm295_vm1, %v5594_v23 }
 0x227   :  { %6553 = vmatprep.mubr.msk.f32.mxu1 %vm295_vm1, %v5595_v24 }
 0x22a   :  { %6554 = vmatmul.mubr.msk.f32.gmra.mxu1 %vm295_vm1, %v5596_v26 }
 0x22b   :  { %6556 = vmatprep.mubr.msk.f32.mxu1 %vm295_vm1, %v5597_v27 }
 0x22e   :  { %6557 = vmatmul.mubr.msk.f32.gmra.mxu1 %vm295_vm1, %v5598_v30 }
 0x22f   :  { %6559 = vmatprep.mubr.msk.f32.mxu1 %vm295_vm1, %v5599_v31  ;;  %v253_v31 = vld [vmem:[%s9400_s7 + $0x18] sm:$0xff] }
 0x230   :  { %6594 = vmatprep.subr.mxu1 %v253_v31 }
 0x231   :  { %6595 = vmatpush3.msra.mxu1 %v253_v31 }
 0x232   :  { %6560 = vmatmul.mubr.msk.f32.gmra.mxu1 %vm295_vm1, %v5600_v32  ;;  %v252_v32 = vld [vmem:[%s9400_s7 + $0x10] sm:$0xff] }
 0x233   :  { %6562 = vmatprep.mubr.msk.f32.mxu1 %vm295_vm1, %v5601_v34  ;;  %6596 = vmatprep.subr.mxu1 %v252_v32  ;;  %v251_v34 = vld [vmem:[%s9400_s7 + $0x8] sm:$0xff] }
 0x234   :  { %6597 = vmatpush3.msra.mxu1 %v252_v32 }
 0x235   :  { %6598 = vmatprep.subr.mxu1 %v251_v34 }
 0x236   :  { %6563 = vmatmul.mubr.msk.f32.gmra.mxu1 %vm295_vm1, %v5602_v35  ;;  %v250_v35 = vld [vmem:[%s9400_s7] sm:$0xff] }
 0x237   :  { %6565 = vmatprep.mubr.msk.f32.mxu1 %vm295_vm1, %v5603_v36  ;;  %6599 = vmatpush3.msra.mxu1 %v251_v34  ;;  %v262_v36 = vld [vmem:[%s9401_s10 + $0x18] sm:$0xff] }
 0x238   :  { %6600 = vmatprep.subr.mxu1 %v250_v35 }
 0x239   :  { %6601 = vmatpush3.msra.mxu1 %v250_v35 }
 0x23a   :  { %6566 = vmatmul.mubr.msk.f32.gmra.mxu1 %vm295_vm1, %v5604_v38  ;;  %6682 = vmatprep.subr.mxu1 %v262_v36 }
 0x27a   :  { %v6468_v38 = vpop.f32.mrf.mxu0 }
 0x29a   :  { %v7843_v40 = vpop.f32.mrf.mxu1 }
 0x29c   :  { %v7845_v41 = vpop.f32.mrf.mxu1 }
 0x29e   :  { %v7847_v43 = vpop.f32.mrf.mxu1 }
 0x2a0   :  { %v7849_v44 = vpop.f32.mrf.mxu1 }
 0x2a2   :  { %v7851_v45 = vpop.f32.mrf.mxu1 }
 0x2a4   :  { %v7853_v46 = vpop.f32.mrf.mxu1 }
 0x2a6   :  { %v7855_v47 = vpop.f32.mrf.mxu1 }
 0x2a8   :  { %v7857_v48 = vpop.f32.mrf.mxu1 }
 0x2aa   :  { %v7859_v49 = vpop.f32.mrf.mxu1 }
 0x2ac   :  { %v7861_v50 = vpop.f32.mrf.mxu1 }
 0x2ae   :  { %v7863_v51 = vpop.f32.mrf.mxu1 }
 0x2b0   :  { %v7865_v52 = vpop.f32.mrf.mxu1 }
 0x2b2   :  { %v7867_v53 = vpop.f32.mrf.mxu1 }
 0x2b4   :  { %v7869_v54 = vpop.f32.mrf.mxu1 }
 0x2b6   :  { %v6463_v55 = vpop.f32.mrf.mxu1 }
 0x2b8   :  { %v7871_v56 = vpop.f32.mrf.mxu1 }
 0x2ba   :  { %v6489_v57 = vpop.f32.mrf.mxu1 }
 0x2bb   :  { %v7873_v58 = vadd.f32 %v6489_v57, %v6463_v55 }
 0x2bc   :  { %v7875_v59 = vpop.f32.mrf.mxu1 }
 0x2be   :  { %v6494_v60 = vpop.f32.mrf.mxu1 }
 0x2c0   :  { %v1219_v61 = vpop.f32.mrf.mxu1 }
 0x2c1   :  { %6518 = vmatprep.mubr.msk.f32.mxu0 %vm295_vm1, %v1219_v61 }
 0x2c2   :  { %v6497_v62 = vpop.f32.mrf.mxu1  ;;  %6519 = vmatmul.mubr.msk.f32.vlgmr.msra.gmra.mxu0 %vm295_vm1, %v6494_v60 }
 0x2c3   :  { %6569 = vmatpush3.msra.mxu0 %v5621_v39  ;;  %v1009_v39 = vpop.f32.mrf.mxu0 }
 0x2c4   :  { %v1229_v63 = vpop.f32.mrf.mxu1 }
 0x2c5   :  { %6521 = vmatprep.mubr.msk.f32.mxu0 %vm295_vm1, %v1229_v63  ;;  %v6471_v55 = vpop.f32.mrf.mxu0 }
 0x2c6   :  { %v6500_v0 = vpop.f32.mrf.mxu1  ;;  %6522 = vmatmul.mubr.msk.f32.gmra.mxu0 %vm295_vm1, %v6497_v62  ;;  %v1025_v34 = vadd.f32 %v6471_v55, %v7847_v43  ;;  %v260_v43 = vld [vmem:[%s9401_s10 + $0x8] sm:$0xff] }
 0x2c7   :  { %v1019_v57 = vpop.f32.mrf.mxu0 }
 0x2c8   :  { %v1239_v1 = vpop.f32.mrf.mxu1  ;;  %v1020_v31 = vadd.f32 %v1019_v57, %v7849_v44 }
 0x2c9   :  { %6524 = vmatprep.mubr.msk.f32.mxu0 %vm295_vm1, %v1239_v1  ;;  %v6474_v60 = vpop.f32.mrf.mxu0 }
 0x2ca   :  { %v6503_v2 = vpop.f32.mrf.mxu1  ;;  %6525 = vmatmul.mubr.msk.f32.gmra.mxu0 %vm295_vm1, %v6500_v0  ;;  %v1035_v55 = vadd.f32 %v6474_v60, %v7851_v45  ;;  %v7986_v60 = vadd.f32 %v7526_v42, %v7668_v25 }
 0x2cb   :  { %v1029_v61 = vpop.f32.mrf.mxu0 }
 0x2cc   :  { %v1249_v3 = vpop.f32.mrf.mxu1  ;;  %v1030_v44 = vadd.f32 %v1029_v61, %v7853_v46 }
 0x2cd   :  { %6527 = vmatprep.mubr.msk.f32.mxu0 %vm295_vm1, %v1249_v3  ;;  %v6477_v62 = vpop.f32.mrf.mxu0 }
 0x2ce   :  { %v6506_v4 = vpop.f32.mrf.mxu1  ;;  %6528 = vmatmul.mubr.msk.f32.gmra.mxu0 %vm295_vm1, %v6503_v2  ;;  %v1045_v61 = vadd.f32 %v6477_v62, %v7855_v47 }
 0x2cf   :  { %v1039_v63 = vpop.f32.mrf.mxu0 }
 0x2d0   :  { %v1259_v5 = vpop.f32.mrf.mxu1 }
 0x2d1   :  { %6530 = vmatprep.mubr.msk.f32.mxu0 %vm295_vm1, %v1259_v5  ;;  %v7924_v0 = vpop.f32.mrf.mxu0 }
 0x2d2   :  { %v6509_v6 = vpop.f32.mrf.mxu1  ;;  %6531 = vmatmul.mubr.msk.f32.gmra.mxu0 %vm295_vm1, %v6506_v4  ;;  %v1055_v62 = vadd.f32 %v7924_v0, %v7859_v49 }
 0x2d3   :  { %v7926_v1 = vpop.f32.mrf.mxu0 }
 0x2d4   :  { %v1269_v7 = vpop.f32.mrf.mxu1  ;;  %v1050_v25 = vadd.f32 %v7926_v1, %v7861_v50 }
 0x2d5   :  { %6533 = vmatprep.mubr.msk.f32.mxu0 %vm295_vm1, %v1269_v7  ;;  %v7928_v2 = vpop.f32.mrf.mxu0 }
 0x2d6   :  { %v6512_v8 = vpop.f32.mrf.mxu1  ;;  %6534 = vmatmul.mubr.msk.f32.gmra.mxu0 %vm295_vm1, %v6509_v6  ;;  %v1065_v49 = vadd.f32 %v7928_v2, %v7863_v51 }
 0x2d7   :  { %v7930_v3 = vpop.f32.mrf.mxu0 }
 0x2d8   :  { %v1279_v9 = vpop.f32.mrf.mxu1  ;;  %v1060_v50 = vadd.f32 %v7930_v3, %v7865_v52 }
 0x2d9   :  { %6536 = vmatprep.mubr.msk.f32.mxu0 %vm295_vm1, %v1279_v9  ;;  %v7932_v4 = vpop.f32.mrf.mxu0 }
 0x2da   :  { %v6515_v10 = vpop.f32.mrf.mxu1  ;;  %6537 = vmatmul.mubr.msk.f32.gmra.mxu0 %vm295_vm1, %v6512_v8  ;;  %v1075_v51 = vadd.f32 %v7932_v4, %v7867_v53 }
 0x2db   :  { %v7934_v5 = vpop.f32.mrf.mxu0 }
 0x2dc   :  { %v1289_v11 = vpop.f32.mrf.mxu1  ;;  %v1070_v52 = vadd.f32 %v7934_v5, %v7869_v54 }
 0x2dd   :  { %6539 = vmatprep.mubr.msk.f32.mxu0 %vm295_vm1, %v1289_v11 }
 0x2de   :  { %6540 = vmatmul.mubr.msk.f32.gmra.mxu0 %vm295_vm1, %v6515_v10  ;;  %v6546_v12 = vpop.f32.mrf.mxu1 }
 0x2e0   :  { %v1640_v13 = vpop.f32.mrf.mxu1 }
 0x2e1   :  { %6570 = vmatprep.mubr.msk.f32.mxu0 %vm295_vm1, %v1640_v13 }
 0x2e2   :  { %v6549_v14 = vpop.f32.mrf.mxu1  ;;  %6571 = vmatmul.mubr.msk.f32.vlgmr.msra.gmra.mxu0 %vm295_vm1, %v6546_v12 }
 0x2e4   :  { %v1650_v15 = vpop.f32.mrf.mxu1 }
 0x2e5   :  { %6573 = vmatprep.mubr.msk.f32.mxu0 %vm295_vm1, %v1650_v15 }
 0x2e6   :  { %v6552_v16 = vpop.f32.mrf.mxu1  ;;  %6574 = vmatmul.mubr.msk.f32.gmra.mxu0 %vm295_vm1, %v6549_v14 }
 0x2e8   :  { %v1660_v18 = vpop.f32.mrf.mxu1 }
 0x2e9   :  { %6576 = vmatprep.mubr.msk.f32.mxu0 %vm295_vm1, %v1660_v18 }
 0x2ea   :  { %v6555_v19 = vpop.f32.mrf.mxu1  ;;  %6577 = vmatmul.mubr.msk.f32.gmra.mxu0 %vm295_vm1, %v6552_v16 }
 0x2ec   :  { %v1670_v20 = vpop.f32.mrf.mxu1 }
 0x2ed   :  { %6579 = vmatprep.mubr.msk.f32.mxu0 %vm295_vm1, %v1670_v20 }
 0x2ee   :  { %v6558_v21 = vpop.f32.mrf.mxu1  ;;  %6580 = vmatmul.mubr.msk.f32.gmra.mxu0 %vm295_vm1, %v6555_v19 }
 0x2f0   :  { %v1680_v22 = vpop.f32.mrf.mxu1 }
 0x2f1   :  { %6582 = vmatprep.mubr.msk.f32.mxu0 %vm295_vm1, %v1680_v22 }
 0x2f2   :  { %v6561_v23 = vpop.f32.mrf.mxu1  ;;  %6583 = vmatmul.mubr.msk.f32.gmra.mxu0 %vm295_vm1, %v6558_v21 }
 0x2f4   :  { %v1690_v24 = vpop.f32.mrf.mxu1 }
 0x2f5   :  { %6585 = vmatprep.mubr.msk.f32.mxu0 %vm295_vm1, %v1690_v24  ;;  %v1015_v24 = vadd.f32 %v6468_v38, %v7843_v40  ;;  %v261_v40 = vld [vmem:[%s9401_s10 + $0x10] sm:$0xff] }
 0x2f6   :  { %v6564_v26 = vpop.f32.mrf.mxu1  ;;  %6586 = vmatmul.mubr.msk.f32.gmra.mxu0 %vm295_vm1, %v6561_v23  ;;  %v1010_v23 = vadd.f32 %v1009_v39, %v7845_v41 }
 0x2f8   :  { %v1700_v27 = vpop.f32.mrf.mxu1 }
 0x2f9   :  { %6588 = vmatprep.mubr.msk.f32.mxu0 %vm295_vm1, %v1700_v27 }
 0x2fa   :  { %v6567_v28 = vpop.f32.mrf.mxu1  ;;  %6589 = vmatmul.mubr.msk.f32.gmra.mxu0 %vm295_vm1, %v6564_v26 }
 0x2fc   :  { %v1710_v30 = vpop.f32.mrf.mxu1 }
 0x2fd   :  { %6591 = vmatprep.mubr.msk.f32.mxu0 %vm295_vm1, %v1710_v30 }
 0x2fe   :  { %6592 = vmatmul.mubr.msk.f32.gmra.mxu0 %vm295_vm1, %v6567_v28 }
 0x382   :  { %v6520_v6 = vpop.f32.mrf.mxu0 }
 0x383   :  { %v1494_v28 = vadd.f32 %v6520_v6, %v1015_v24 }
 0x384   :  { %v1414_v7 = vpop.f32.mrf.mxu0 }
 0x385   :  { %v1493_v27 = vadd.f32 %v1414_v7, %v1010_v23 }
 0x386   :  { %v6523_v8 = vpop.f32.mrf.mxu0 }
 0x387   :  { %v1496_v41 = vadd.f32 %v6523_v8, %v1025_v34 }
 0x388   :  { %v1424_v9 = vpop.f32.mrf.mxu0 }
 0x389   :  { %v1495_v29 = vadd.f32 %v1424_v9, %v1020_v31  ;;  %v1080_v31 = vadd.f32 %v7875_v59, %v7871_v56  ;;  %v2869_v56 = vld [vmem:[%s9397_s3] sm:$0xff]  ;;  %v8097_v59 = vadd.f32 %v7526_v42, %v7676_v33 }
 0x38a   :  { %v6526_v10 = vpop.f32.mrf.mxu0 }
 0x38b   :  { %v1498_v46 = vadd.f32 %v6526_v10, %v1035_v55 }
 0x38c   :  { %v1434_v11 = vpop.f32.mrf.mxu0 }
 0x38d   :  { %v1497_v7 = vadd.f32 %v1434_v11, %v1030_v44 }
 0x38e   :  { %v6529_v12 = vpop.f32.mrf.mxu0 }
 0x38f   :  { %v1500_v11 = vadd.f32 %v6529_v12, %v1045_v61 }
 0x390   :  { %v1444_v13 = vpop.f32.mrf.mxu0 }
 0x392   :  { %v7936_v14 = vpop.f32.mrf.mxu0 }
 0x393   :  { %v1502_v12 = vadd.f32 %v7936_v14, %v1055_v62 }
 0x394   :  { %v1454_v15 = vpop.f32.mrf.mxu0 }
 0x395   :  { %v1501_v23 = vadd.f32 %v1454_v15, %v1050_v25 }
 0x396   :  { %v7938_v16 = vpop.f32.mrf.mxu0 }
 0x397   :  { %v1504_v14 = vadd.f32 %v7938_v16, %v1065_v49 }
 0x398   :  { %v7940_v18 = vpop.f32.mrf.mxu0 }
 0x39a   :  { %v7942_v19 = vpop.f32.mrf.mxu0 }
 0x39c   :  { %v7944_v20 = vpop.f32.mrf.mxu0 }
 0x39e   :  { %v7946_v21 = vpop.f32.mrf.mxu0 }
 0x39f   :  { %v1508_v54 = vadd.f32 %v7946_v21, %v7873_v58  ;;  %v2870_v58 = vld [vmem:[%s9397_s3 + $0x8] sm:$0xff] }
 0x3a0   :  { %v7948_v22 = vpop.f32.mrf.mxu0 }
 0x3a1   :  { %v1507_v4 = vadd.f32 %v7948_v22, %v1080_v31  ;;  %v5638_v22 = vld [vmem:[%s9402_s8] ss:$0 sm:$0xff]  ;;  %v8132_v31 = vld [vmem:[%s9403_s9 + $0x18] sm:$0xff] }
 0x3a2   :  { %v6572_v26 = vpop.f32.mrf.mxu0 }
 0x3a3   :  { %v7956_v35 = vadd.f32 %v6572_v26, %v1494_v28  ;;  %v1503_v26 = vadd.f32 %v7940_v18, %v1060_v50  ;;  %v1505_v18 = vadd.f32 %v7944_v20, %v1070_v52 }
 0x3a4   :  { %v1835_v30 = vpop.f32.mrf.mxu0 }
 0x3a5   :  { %v7953_v32 = vadd.f32 %v1835_v30, %v1493_v27  ;;  %v1506_v30 = vadd.f32 %v7942_v19, %v1075_v51 }
 0x3a6   :  { %v6575_v37 = vpop.f32.mrf.mxu0 }
 0x3a7   :  { %6602 = vmatprep.mubr.msk.f32.mxu1 %vm1936_vm2, %v7953_v32  ;;  %v7972_v57 = vadd.f32 %v6575_v37, %v1496_v41  ;;  %v1040_v37 = vadd.f32 %v1039_v63, %v7857_v48 }
 0x3a8   :  { %v1845_v38 = vpop.f32.mrf.mxu0  ;;  %6603 = vmatmul.mubr.msk.f32.vlgmr.msra.gmra.mxu1 %vm1936_vm2, %v7956_v35 }
 0x3a9   :  { %v7966_v39 = vadd.f32 %v1845_v38, %v1495_v29  ;;  %6683 = vmatpush3.msra.mxu1 %v262_v36  ;;  %v259_v29 = vld [vmem:[%s9401_s10] sm:$0xff]  ;;  %v1499_v10 = vadd.f32 %v1444_v13, %v1040_v37 }
 0x3aa   :  { %6684 = vmatprep.subr.mxu1 %v261_v40  ;;  %v6578_v6 = vpop.f32.mrf.mxu0 }
 0x3ab   :  { %6685 = vmatpush3.msra.mxu1 %v261_v40  ;;  %6605 = vmatprep.mubr.msk.f32.mxu1 %vm1936_vm2, %v7966_v39  ;;  %v7989_v8 = vadd.f32 %v6578_v6, %v1498_v46 }
 0x3ac   :  { %6686 = vmatprep.subr.mxu1 %v260_v43  ;;  %v1855_v36 = vpop.f32.mrf.mxu0  ;;  %6606 = vmatmul.mubr.msk.f32.gmra.mxu1 %vm1936_vm2, %v7972_v57 }
 0x3ad   :  { %v7982_v45 = vadd.f32 %v1855_v36, %v1497_v7  ;;  %6687 = vmatpush3.msra.mxu1 %v260_v43 }
 0x3ae   :  { %6688 = vmatprep.subr.mxu1 %v259_v29  ;;  %v6581_v9 = vpop.f32.mrf.mxu0 }
 0x3af   :  { %6689 = vmatpush3.msra.mxu1 %v259_v29  ;;  %6608 = vmatprep.mubr.msk.f32.mxu1 %vm1936_vm2, %v7982_v45  ;;  %v8002_v63 = vadd.f32 %v6581_v9, %v1500_v11 }
 0x3b0   :  { %6746 = vmatprep.subr.mxu1 %v7986_v60  ;;  %v1865_v48 = vpop.f32.mrf.mxu0  ;;  %6609 = vmatmul.mubr.msk.f32.gmra.mxu1 %vm1936_vm2, %v7989_v8 }
 0x3b1   :  { %v7998_v47 = vadd.f32 %v1865_v48, %v1499_v10 }
 0x3b2   :  { %v6584_v13 = vpop.f32.mrf.mxu0 }
 0x3b3   :  { %6611 = vmatprep.mubr.msk.f32.mxu1 %vm1936_vm2, %v7998_v47  ;;  %v8015_v0 = vadd.f32 %v6584_v13, %v1502_v12 }
 0x3b4   :  { %v1875_v24 = vpop.f32.mrf.mxu0  ;;  %6612 = vmatmul.mubr.msk.f32.gmra.mxu1 %vm1936_vm2, %v8002_v63 }
 0x3b5   :  { %v8011_v1 = vadd.f32 %v1875_v24, %v1501_v23 }
 0x3b6   :  { %v6587_v15 = vpop.f32.mrf.mxu0 }
 0x3b7   :  { %6614 = vmatprep.mubr.msk.f32.mxu1 %vm1936_vm2, %v8011_v1  ;;  %v1925_v2 = vadd.f32 %v6587_v15, %v1504_v14 }
 0x3b8   :  { %v1885_v27 = vpop.f32.mrf.mxu0  ;;  %6615 = vmatmul.mubr.msk.f32.gmra.mxu1 %vm1936_vm2, %v8015_v0 }
 0x3b9   :  { %v1924_v3 = vadd.f32 %v1885_v27, %v1503_v26 }
 0x3ba   :  { %v6590_v28 = vpop.f32.mrf.mxu0 }
 0x3bb   :  { %6617 = vmatprep.mubr.msk.f32.mxu1 %vm1936_vm2, %v1924_v3  ;;  %v1927_v34 = vadd.f32 %v6590_v28, %v1506_v30 }
 0x3bc   :  { %v1895_v16 = vpop.f32.mrf.mxu0  ;;  %6618 = vmatmul.mubr.msk.f32.gmra.mxu1 %vm1936_vm2, %v1925_v2 }
 0x3bd   :  { %v1926_v5 = vadd.f32 %v1895_v16, %v1505_v18 }
 0x3be   :  { %v6593_v53 = vpop.f32.mrf.mxu0 }
 0x3bf   :  { %v1929_v40 = vadd.f32 %v6593_v53, %v1508_v54  ;;  %6620 = vmatprep.mubr.msk.f32.mxu1 %vm1936_vm2, %v1926_v5 }
 0x3c0   :  { %v1905_v20 = vpop.f32.mrf.mxu0  ;;  %6621 = vmatmul.mubr.msk.f32.gmra.mxu1 %vm1936_vm2, %v1927_v34 }
 0x3c1   :  { %v1928_v19 = vadd.f32 %v1905_v20, %v1507_v4  ;;  %6626 = vmatprep.subr.mxu0 %v1929_v40 }
 0x3c2   :  { %6627 = vmatpush3.msra.mxu0 %v1929_v40 }
 0x3c3   :  { %6623 = vmatprep.mubr.msk.f32.mxu1 %vm1936_vm2, %v1928_v19  ;;  %6628 = vmatprep.subr.mxu0 %v1928_v19 }
 0x3c4   :  { %6624 = vmatmul.mubr.msk.f32.gmra.mxu1 %vm1936_vm2, %v1929_v40  ;;  %6629 = vmatpush3.msra.mxu0 %v1928_v19 }
 0x3c5   :  { %6630 = vmatprep.subr.mxu0 %v1927_v34  ;;  %6690 = vmatprep.mubr.msk.f32.mxu1 %vm1936_vm2, %v7953_v32 }
 0x3c6   :  { %6631 = vmatpush3.msra.mxu0 %v1927_v34 }
 0x3c7   :  { %6632 = vmatprep.subr.mxu0 %v1926_v5 }
 0x3c8   :  { %6633 = vmatpush3.msra.mxu0 %v1926_v5  ;;  %6691 = vmatmul.mubr.msk.f32.vlgmr.msra.gmra.mxu1 %vm1936_vm2, %v7956_v35 }
 0x3c9   :  { %6747 = vmatpush3.msra.mxu1 %v7986_v60  ;;  %6634 = vmatprep.subr.mxu0 %v1925_v2 }
 0x3ca   :  { %6693 = vmatprep.mubr.msk.f32.mxu1 %vm1936_vm2, %v7966_v39  ;;  %6635 = vmatpush3.msra.mxu0 %v1925_v2 }
 0x3cb   :  { %6636 = vmatprep.subr.mxu0 %v1924_v3  ;;  %6798 = vmatprep.subr.mxu1 %v7660_v17 }
 0x3cc   :  { %6637 = vmatpush3.msra.mxu0 %v1924_v3  ;;  %6694 = vmatmul.mubr.msk.f32.gmra.mxu1 %vm1936_vm2, %v7972_v57 }
 0x3cd   :  { %6638 = vmatprep.subr.mxu0 %v8015_v0  ;;  %6696 = vmatprep.mubr.msk.f32.mxu1 %vm1936_vm2, %v7982_v45 }
 0x3ce   :  { %6639 = vmatpush3.msra.mxu0 %v8015_v0 }
 0x3cf   :  { %6640 = vmatprep.subr.mxu0 %v8011_v1 }
 0x3d0   :  { %6641 = vmatpush3.msra.mxu0 %v8011_v1  ;;  %6697 = vmatmul.mubr.msk.f32.gmra.mxu1 %vm1936_vm2, %v7989_v8 }
 0x3d1   :  { %6642 = vmatprep.subr.mxu0 %v8002_v63  ;;  %6699 = vmatprep.mubr.msk.f32.mxu1 %vm1936_vm2, %v7998_v47 }
 0x3d2   :  { %6643 = vmatpush3.msra.mxu0 %v8002_v63 }
 0x3d3   :  { %6644 = vmatprep.subr.mxu0 %v7998_v47 }
 0x3d4   :  { %6645 = vmatpush3.msra.mxu0 %v7998_v47  ;;  %6700 = vmatmul.mubr.msk.f32.gmra.mxu1 %vm1936_vm2, %v8002_v63 }
 0x3d5   :  { %6646 = vmatprep.subr.mxu0 %v7989_v8  ;;  %6702 = vmatprep.mubr.msk.f32.mxu1 %vm1936_vm2, %v8011_v1 }
 0x3d6   :  { %6647 = vmatpush3.msra.mxu0 %v7989_v8 }
 0x3d7   :  { %6648 = vmatprep.subr.mxu0 %v7982_v45 }
 0x3d8   :  { %6649 = vmatpush3.msra.mxu0 %v7982_v45  ;;  %6703 = vmatmul.mubr.msk.f32.gmra.mxu1 %vm1936_vm2, %v8015_v0 }
 0x3d9   :  { %6650 = vmatprep.subr.mxu0 %v7972_v57  ;;  %6705 = vmatprep.mubr.msk.f32.mxu1 %vm1936_vm2, %v1924_v3 }
 0x3da   :  { %6651 = vmatpush3.msra.mxu0 %v7972_v57 }
 0x3db   :  { %6652 = vmatprep.subr.mxu0 %v7966_v39 }
 0x3dc   :  { %6653 = vmatpush3.msra.mxu0 %v7966_v39  ;;  %6706 = vmatmul.mubr.msk.f32.gmra.mxu1 %vm1936_vm2, %v1925_v2 }
 0x3dd   :  { %6654 = vmatprep.subr.mxu0 %v7956_v35  ;;  %6708 = vmatprep.mubr.msk.f32.mxu1 %vm1936_vm2, %v1926_v5 }
 0x3de   :  { %6655 = vmatpush3.msra.mxu0 %v7956_v35 }
 0x3df   :  { %6656 = vmatprep.subr.mxu0 %v7953_v32 }
 0x3e0   :  { %6657 = vmatpush3.msra.mxu0 %v7953_v32  ;;  %6709 = vmatmul.mubr.msk.f32.gmra.mxu1 %vm1936_vm2, %v1927_v34 }
 0x3e1   :  { %6711 = vmatprep.mubr.msk.f32.mxu1 %vm1936_vm2, %v1928_v19  ;;  %6714 = vmatprep.subr.mxu0 %v8132_v31 }
 0x3e4   :  { %6712 = vmatmul.mubr.msk.f32.gmra.mxu1 %vm1936_vm2, %v1929_v40 }
 0x3e5   :  { %6748 = vmatprep.mubr.msk.f32.mxu1 %vm295_vm1, %v2869_v56 }
 0x3e8   :  { %6749 = vmatmul.mubr.msk.f32.vlgmr.msra.gmra.mxu1 %vm295_vm1, %v2870_v58 }
 0x3e9   :  { %6799 = vmatpush3.msra.mxu1 %v7660_v17 }
 0x3ea   :  { %6850 = vmatprep.subr.mxu1 %v8097_v59 }
 0x468   :  { %v6604_v21 = vpop.f32.mrf.mxu1 }
 0x469   :  { %v2057_v44 = vadd.f32 %v6604_v21, %v5638_v22 }
 0x46a   :  { %v2051_v32 = vpop.f32.mrf.mxu1 }
 0x46b   :  { %v2052_v35 = vadd.f32 %v5638_v22, %v2051_v32 }
 0x46c   :  { %v6607_v41 = vpop.f32.mrf.mxu1 }
 0x46d   :  { %2130 = vmax.xlane.f32.xlu0 %v2052_v35  ;;  %v2067_v43 = vadd.f32 %v6607_v41, %v5638_v22 }
 0x46e   :  { %v2061_v38 = vpop.f32.mrf.mxu1 }
 0x46f   :  { %v2062_v39 = vadd.f32 %v5638_v22, %v2061_v38 }
 0x470   :  { %v6610_v42 = vpop.f32.mrf.mxu1 }
 0x471   :  { %2132 = vmax.xlane.f32.xlu0 %v2057_v44  ;;  %2134 = vmax.xlane.f32.xlu1 %v2062_v39  ;;  %v2077_v6 = vadd.f32 %v6610_v42, %v5638_v22 }
 0x472   :  { %v2071_v33 = vpop.f32.mrf.mxu1 }
 0x473   :  { %v2072_v17 = vadd.f32 %v5638_v22, %v2071_v33 }
 0x474   :  { %v6613_v55 = vpop.f32.mrf.mxu1 }
 0x475   :  { %2136 = vmax.xlane.f32.xlu1 %v2067_v43  ;;  %2138 = vmax.xlane.f32.xlu0 %v2072_v17  ;;  %v8105_v36 = vadd.f32 %v6613_v55, %v5638_v22 }
 0x476   :  { %v2081_v57 = vpop.f32.mrf.mxu1 }
 0x477   :  { %v2082_v7 = vadd.f32 %v5638_v22, %v2081_v57 }
 0x478   :  { %v6616_v29 = vpop.f32.mrf.mxu1 }
 0x479   :  { %2140 = vmax.xlane.f32.xlu1 %v2077_v6  ;;  %2142 = vmax.xlane.f32.xlu0 %v2082_v7  ;;  %v8108_v61 = vadd.f32 %v6616_v29, %v5638_v22 }
 0x47a   :  { %v2091_v46 = vpop.f32.mrf.mxu1 }
 0x47b   :  { %v2092_v37 = vadd.f32 %v5638_v22, %v2091_v46 }
 0x47c   :  { %v6619_v45 = vpop.f32.mrf.mxu1 }
 0x47d   :  { %2144 = vmax.xlane.f32.xlu1 %v8105_v36  ;;  %2146 = vmax.xlane.f32.xlu0 %v2092_v37  ;;  %v8114_v11 = vadd.f32 %v6619_v45, %v5638_v22 }
 0x47e   :  { %v2101_v60 = vpop.f32.mrf.mxu1 }
 0x47f   :  { %v8110_v8 = vadd.f32 %v5638_v22, %v2101_v60 }
 0x480   :  { %v6622_v9 = vpop.f32.mrf.mxu1 }
 0x481   :  { %2148 = vmax.xlane.f32.xlu1 %v8108_v61  ;;  %2150 = vmax.xlane.f32.xlu0 %v8110_v8  ;;  %v8120_v62 = vadd.f32 %v6622_v9, %v5638_v22 }
 0x482   :  { %v2111_v10 = vpop.f32.mrf.mxu1 }
 0x483   :  { %v8116_v48 = vadd.f32 %v5638_v22, %v2111_v10 }
 0x484   :  { %v6625_v25 = vpop.f32.mrf.mxu1 }
 0x485   :  { %2152 = vmax.xlane.f32.xlu1 %v8114_v11  ;;  %2154 = vmax.xlane.f32.xlu0 %v8116_v48  ;;  %v8126_v13 = vadd.f32 %v6625_v25, %v5638_v22 }
 0x486   :  { %v2121_v47 = vpop.f32.mrf.mxu1 }
 0x487   :  { %v8122_v63 = vadd.f32 %v5638_v22, %v2121_v47 }
 0x489   :  { %2156 = vmax.xlane.f32.xlu1 %v8120_v62  ;;  %2158 = vmax.xlane.f32.xlu0 %v8122_v63 }
 0x48d   :  { %2160 = vmax.xlane.f32.xlu1 %v8126_v13 }
 0x4f6   :  { %v2131_v23 = vpop.xlane.xlu0 %2130 }
 0x4f7   :  { %v2162_v12 = vsub.f32 %v2052_v35, %v2131_v23 }
 0x4f9   :  { %v2178_v24 = vmul.f32 1.442695, %v2162_v12 }
 0x4fa   :  { %v2133_v50 = vpop.xlane.xlu0 %2132  ;;  %v2135_v1 = vpop.xlane.xlu1 %2134 }
 0x4fb   :  { %7110 = vpow2.f32 %v2178_v24  ;;  %v2163_v49 = vsub.f32 %v2057_v44, %v2133_v50  ;;  %v2164_v0 = vsub.f32 %v2062_v39, %v2135_v1  ;;  %v218_v24 = vld [vmem:[%s9404_s5] sm:$0xff] }
 0x4fc   :  { %v234_v50 = vld [vmem:[%s9405_s6] sm:$0xff] }
 0x4fd   :  { %v2180_v15 = vmul.f32 1.442695, %v2163_v49  ;;  %v2182_v27 = vmul.f32 1.442695, %v2164_v0 }
 0x4fe   :  { %v2137_v26 = vpop.xlane.xlu1 %2136  ;;  %v2139_v14 = vpop.xlane.xlu0 %2138 }
 0x4ff   :  { %7112 = vpow2.f32 %v2180_v15  ;;  %v2165_v52 = vsub.f32 %v2067_v43, %v2137_v26  ;;  %v2166_v3 = vsub.f32 %v2072_v17, %v2139_v14  ;;  %v219_v15 = vld [vmem:[%s9404_s5 + $0x8] sm:$0xff] }
 0x500   :  { %7114 = vpow2.f32 %v2182_v27  ;;  %v235_v26 = vld [vmem:[%s9405_s6 + $0x8] sm:$0xff] }
 0x501   :  { %v2186_v51 = vmul.f32 1.442695, %v2166_v3  ;;  %v2184_v18 = vmul.f32 1.442695, %v2165_v52 }
 0x502   :  { %v2141_v2 = vpop.xlane.xlu1 %2140  ;;  %v2143_v28 = vpop.xlane.xlu0 %2142 }
 0x503   :  { %v2167_v30 = vsub.f32 %v2077_v6, %v2141_v2  ;;  %v2168_v16 = vsub.f32 %v2082_v7, %v2143_v28  ;;  %7116 = vpow2.f32 %v2186_v51  ;;  %v220_v51 = vld [vmem:[%s9404_s5 + $0x10] sm:$0xff] }
 0x504   :  { %7118 = vpow2.f32 %v2184_v18  ;;  %v236_v2 = vld [vmem:[%s9405_s6 + $0x10] sm:$0xff] }
 0x505   :  { %v2190_v54 = vmul.f32 1.442695, %v2168_v16  ;;  %v2188_v53 = vmul.f32 1.442695, %v2167_v30  ;;  %v257_v30 = vld [vmem:[%s9403_s9 + $0x10] sm:$0xff] }
 0x506   :  { %v2145_v5 = vpop.xlane.xlu1 %2144  ;;  %v2147_v34 = vpop.xlane.xlu0 %2146 }
 0x507   :  { %v2169_v4 = vsub.f32 %v8105_v36, %v2145_v5  ;;  %v2170_v40 = vsub.f32 %v2092_v37, %v2147_v34  ;;  %7120 = vpow2.f32 %v2190_v54  ;;  %v238_v5 = vld [vmem:[%s9405_s6 + $0x20] sm:$0xff] }
 0x508   :  { %v8136_v20 = vpop.eup %7110  ;;  %7122 = vpow2.f32 %v2188_v53  ;;  %v221_v53 = vld [vmem:[%s9404_s5 + $0x18] sm:$0xff] }
 0x509   :  { %v2194_v19 = vmul.f32 1.442695, %v2170_v40  ;;  %2274 = vrot.lane.b32.xlu0 %v8136_v20, %s7301_s29  ;;  %v2192_v21 = vmul.f32 1.442695, %v2169_v4  ;;  %v2258_v49 = vmul.f32 %v8136_v20, %v218_v24  ;;  %v237_v4 = vld [vmem:[%s9405_s6 + $0x18] sm:$0xff]  ;;  %v256_v40 = vld [vmem:[%s9403_s9 + $0x8] sm:$0xff] }
 0x50a   :  { %v2149_v56 = vpop.xlane.xlu1 %2148  ;;  %v2151_v58 = vpop.xlane.xlu0 %2150 }
 0x50b   :  { %v2171_v22 = vsub.f32 %v8108_v61, %v2149_v56  ;;  %v2172_v32 = vsub.f32 %v8110_v8, %v2151_v58  ;;  %7124 = vpow2.f32 %v2194_v19  ;;  %v222_v19 = vld [vmem:[%s9404_s5 + $0x20] sm:$0xff] }
 0x50c   :  { %v8142_v35 = vpop.eup %7112  ;;  %7126 = vpow2.f32 %v2192_v21  ;;  %v255_v58 = vld [vmem:[%s9403_s9] sm:$0xff] }
 0x50d   :  { %v2198_v41 = vmul.f32 1.442695, %v2172_v32  ;;  %2276 = vrot.lane.b32.xlu1 %v8142_v35, %s7301_s29  ;;  %v2196_v39 = vmul.f32 1.442695, %v2171_v22  ;;  %v8148_v43 = vpop.eup %7114  ;;  %v2259_v52 = vmul.f32 %v8142_v35, %v219_v15  ;;  %v240_v32 = vld [vmem:[%s9405_s6 + $0x30] sm:$0xff] }
 0x50e   :  { %v2153_v38 = vpop.xlane.xlu1 %2152  ;;  %v2155_v44 = vpop.xlane.xlu0 %2154  ;;  %v2260_v16 = vmul.f32 %v8148_v43, %v220_v51 }
 0x50f   :  { %v2173_v42 = vsub.f32 %v8114_v11, %v2153_v38  ;;  %v2174_v33 = vsub.f32 %v8116_v48, %v2155_v44  ;;  %7128 = vpow2.f32 %v2198_v41  ;;  %v223_v38 = vld [vmem:[%s9404_s5 + $0x28] sm:$0xff] }
 0x510   :  { %v8150_v17 = vpop.eup %7116  ;;  %7130 = vpow2.f32 %v2196_v39  ;;  %v239_v44 = vld [vmem:[%s9405_s6 + $0x28] sm:$0xff]  ;;  %v8280_v39 = vld [vmem:[%s9398_s2] ss:$0 sm:$0xff] }
 0x511   :  { %v2202_v55 = vmul.f32 1.442695, %v2174_v33  ;;  %2278 = vrot.lane.b32.xlu1 %v8148_v43, %s7301_s29  ;;  %2282 = vrot.lane.b32.xlu0 %v8150_v17, %s7301_s29  ;;  %v2200_v7 = vmul.f32 1.442695, %v2173_v42  ;;  %v8158_v36 = vpop.eup %7118  ;;  %v2262_v41 = vmul.f32 %v8150_v17, %v222_v19  ;;  %v9410_v42 = vld [vmem:[#allocation2_spill] sm:$0xff] }
 0x512   :  { %v2157_v57 = vpop.xlane.xlu1 %2156  ;;  %v2159_v6 = vpop.xlane.xlu0 %2158  ;;  %v2261_v21 = vmul.f32 %v8158_v36, %v221_v53  ;;  %v8284_v33 = vadd.f32 %v8280_v39, %v9410_v42  ;;  %v249_v42 = vld [vmem:[%s9405_s6 + $0x78] sm:$0xff] }
 0x513   :  { %v2175_v29 = vsub.f32 %v8120_v62, %v2157_v57  ;;  %v2176_v46 = vsub.f32 %v8122_v63, %v2159_v6  ;;  %7132 = vpow2.f32 %v2202_v55 }
 0x514   :  { %v8160_v37 = vpop.eup %7120  ;;  %7134 = vpow2.f32 %v2200_v7 }
 0x515   :  { %v2206_v45 = vmul.f32 1.442695, %v2176_v46  ;;  %2280 = vrot.lane.b32.xlu1 %v8158_v36, %s7301_s29  ;;  %2286 = vrot.lane.b32.xlu0 %v8160_v37, %s7301_s29  ;;  %v2204_v61 = vmul.f32 1.442695, %v2175_v29  ;;  %v8167_v9 = vpop.eup %7122  ;;  %v242_v46 = vld [vmem:[%s9405_s6 + $0x40] sm:$0xff] }
 0x516   :  { %v2161_v60 = vpop.xlane.xlu1 %2160  ;;  %v2263_v7 = vmul.f32 %v8167_v9, %v223_v38 }
 0x517   :  { %v2177_v8 = vsub.f32 %v8126_v13, %v2161_v60  ;;  %7136 = vpow2.f32 %v2206_v45  ;;  %v225_v60 = vld [vmem:[%s9404_s5 + $0x38] sm:$0xff] }
 0x518   :  { %v8169_v10 = vpop.eup %7124  ;;  %7138 = vpow2.f32 %v2204_v61  ;;  %v241_v61 = vld [vmem:[%s9405_s6 + $0x38] sm:$0xff] }
 0x519   :  { %2284 = vrot.lane.b32.xlu1 %v8167_v9, %s7301_s29  ;;  %2290 = vrot.lane.b32.xlu0 %v8169_v10, %s7301_s29  ;;  %v2208_v11 = vmul.f32 1.442695, %v2177_v8  ;;  %v8175_v48 = vpop.eup %7126 }
 0x51b   :  { %7140 = vpow2.f32 %v2208_v11 }
 0x51c   :  { %v8177_v25 = vpop.eup %7128 }
 0x51d   :  { %2288 = vrot.lane.b32.xlu1 %v8175_v48, %s7301_s29  ;;  %2294 = vrot.lane.b32.xlu0 %v8177_v25, %s7301_s29  ;;  %v8183_v47 = vpop.eup %7130 }
 0x520   :  { %v8185_v62 = vpop.eup %7132 }
 0x521   :  { %2292 = vrot.lane.b32.xlu1 %v8183_v47, %s7301_s29  ;;  %2298 = vrot.lane.b32.xlu0 %v8185_v62, %s7301_s29  ;;  %v8191_v63 = vpop.eup %7134 }
 0x524   :  { %v8193_v13 = vpop.eup %7136 }
 0x525   :  { %2296 = vrot.lane.b32.xlu1 %v8191_v63, %s7301_s29  ;;  %2302 = vrot.lane.b32.xlu0 %v8193_v13, %s7301_s29  ;;  %v8199_v23 = vpop.eup %7138 }
 0x528   :  { %v8203_v12 = vpop.eup %7140 }
 0x529   :  { %2300 = vrot.lane.b32.xlu1 %v8199_v23, %s7301_s29 }
 0x52d   :  { %2304 = vrot.lane.b32.xlu1 %v8203_v12, %s7301_s29 }
 0x544   :  { %2210 = vadd.xlane.f32.xlu0 %v8136_v20 }
 0x548   :  { %2214 = vadd.xlane.f32.xlu0 %v8148_v43 }
 0x54c   :  { %2216 = vadd.xlane.f32.xlu0 %v8158_v36 }
 0x550   :  { %2218 = vadd.xlane.f32.xlu0 %v8150_v17  ;;  %v224_v17 = vld [vmem:[%s9404_s5 + $0x30] sm:$0xff] }
 0x551   :  { %2212 = vadd.xlane.f32.xlu1 %v8142_v35  ;;  %v2264_v45 = vmul.f32 %v8160_v37, %v224_v17 }
 0x554   :  { %2222 = vadd.xlane.f32.xlu0 %v8160_v37 }
 0x555   :  { %2220 = vadd.xlane.f32.xlu1 %v8167_v9  ;;  %v226_v9 = vld [vmem:[%s9404_s5 + $0x40] sm:$0xff] }
 0x556   :  { %v2266_v15 = vmul.f32 %v8169_v10, %v226_v9  ;;  %v2881_v9 = vld [vmem:[%s9397_s3 + $0x60] sm:$0xff] }
 0x558   :  { %2226 = vadd.xlane.f32.xlu0 %v8169_v10 }
 0x559   :  { %2224 = vadd.xlane.f32.xlu1 %v8175_v48 }
 0x55c   :  { %2230 = vadd.xlane.f32.xlu0 %v8177_v25 }
 0x55d   :  { %2228 = vadd.xlane.f32.xlu1 %v8183_v47 }
 0x560   :  { %2234 = vadd.xlane.f32.xlu0 %v8185_v62 }
 0x561   :  { %2232 = vadd.xlane.f32.xlu1 %v8191_v63 }
 0x564   :  { %2238 = vadd.xlane.f32.xlu0 %v8193_v13 }
 0x565   :  { %2236 = vadd.xlane.f32.xlu1 %v8199_v23 }
 0x569   :  { %2240 = vadd.xlane.f32.xlu1 %v8203_v12 }
 0x57b   :  { %v2275_v1 = vpop.permute.xlu0 %2274 }
 0x57c   :  { %v2306_v0 = vmul.f32 %v2275_v1, %v234_v50  ;;  %v2265_v1 = vmul.f32 %v8175_v48, %v225_v60  ;;  %v228_v48 = vld [vmem:[%s9404_s5 + $0x50] sm:$0xff]  ;;  %v2878_v60 = vld [vmem:[%s9397_s3 + $0x48] sm:$0xff] }
 0x57e   :  { %v2322_v14 = vadd.f32 %v2306_v0, %v2258_v49  ;;  %v244_v49 = vld [vmem:[%s9405_s6 + $0x50] sm:$0xff] }
 0x57f   :  { %v2277_v27 = vpop.permute.xlu1 %2276 }
 0x580   :  { %v2307_v3 = vmul.f32 %v2277_v27, %v235_v26  ;;  %6658 = vmatprep.mubr.f32.mxu0 %v2322_v14  ;;  %v227_v26 = vld [vmem:[%s9404_s5 + $0x48] sm:$0xff] }
 0x581   :  { %v243_v14 = vld [vmem:[%s9405_s6 + $0x48] sm:$0xff] }
 0x582   :  { %v2323_v28 = vadd.f32 %v2307_v3, %v2259_v52 }
 0x583   :  { %v2279_v18 = vpop.permute.xlu1 %2278  ;;  %v2283_v34 = vpop.permute.xlu0 %2282 }
 0x584   :  { %v2308_v54 = vmul.f32 %v2279_v18, %v236_v2  ;;  %6659 = vmatmul.mubr.f32.vlgmr.msra.gmra.mxu0 %v2323_v28  ;;  %v2310_v56 = vmul.f32 %v2283_v34, %v238_v5  ;;  %v2267_v2 = vmul.f32 %v8183_v47, %v227_v26  ;;  %v246_v28 = vld [vmem:[%s9405_s6 + $0x60] sm:$0xff] }
 0x585   :  { %6715 = vmatpush3.msra.mxu0 %v8132_v31  ;;  %v230_v47 = vld [vmem:[%s9404_s5 + $0x60] sm:$0xff] }
 0x586   :  { %v2324_v20 = vadd.f32 %v2308_v54, %v2260_v16  ;;  %6716 = vmatprep.subr.mxu0 %v257_v30  ;;  %v2326_v55 = vadd.f32 %v2310_v56, %v2262_v41  ;;  %v229_v16 = vld [vmem:[%s9404_s5 + $0x58] sm:$0xff]  ;;  %v2270_v56 = vmul.f32 %v8185_v62, %v230_v47 }
 0x587   :  { %6717 = vmatpush3.msra.mxu0 %v257_v30  ;;  %v2281_v31 = vpop.permute.xlu1 %2280  ;;  %v2287_v35 = vpop.permute.xlu0 %2286  ;;  %v2268_v30 = vmul.f32 %v8177_v25, %v228_v48  ;;  %v245_v54 = vld [vmem:[%s9405_s6 + $0x58] sm:$0xff] }
 0x588   :  { %v2309_v22 = vmul.f32 %v2281_v31, %v237_v4  ;;  %6718 = vmatprep.subr.mxu0 %v256_v40  ;;  %6661 = vmatprep.mubr.f32.mxu0 %v2324_v20  ;;  %v2312_v57 = vmul.f32 %v2287_v35, %v240_v32  ;;  %v248_v20 = vld [vmem:[%s9405_s6 + $0x70] sm:$0xff]  ;;  %v231_v31 = vld [vmem:[%s9404_s5 + $0x68] sm:$0xff] }
 0x589   :  { %6719 = vmatpush3.msra.mxu0 %v256_v40  ;;  %v2269_v40 = vmul.f32 %v8191_v63, %v229_v16  ;;  %v232_v63 = vld [vmem:[%s9404_s5 + $0x70] sm:$0xff]  ;;  %v2271_v41 = vmul.f32 %v8199_v23, %v231_v31 }
 0x58a   :  { %v2325_v43 = vadd.f32 %v2309_v22, %v2261_v21  ;;  %6720 = vmatprep.subr.mxu0 %v255_v58  ;;  %v2328_v11 = vadd.f32 %v2312_v57, %v2264_v45  ;;  %v2272_v38 = vmul.f32 %v8193_v13, %v232_v63  ;;  %v2871_v13 = vld [vmem:[%s9397_s3 + $0x10] sm:$0xff]  ;;  %v2877_v45 = vld [vmem:[%s9397_s3 + $0x40] sm:$0xff] }
 0x58b   :  { %6721 = vmatpush3.msra.mxu0 %v255_v58  ;;  %v2285_v6 = vpop.permute.xlu1 %2284  ;;  %v2291_v36 = vpop.permute.xlu0 %2290  ;;  %v247_v58 = vld [vmem:[%s9405_s6 + $0x68] sm:$0xff]  ;;  %6751 = vmatprep.mubr.msk.f32.mxu1 %vm295_vm1, %v2871_v13 }
 0x58c   :  { %v2311_v29 = vmul.f32 %v2285_v6, %v239_v44  ;;  %6772 = vmatprep.subr.mxu0 %v8284_v33  ;;  %6662 = vmatmul.mubr.f32.gmra.mxu0 %v2325_v43  ;;  %v2314_v24 = vmul.f32 %v2291_v36, %v242_v46  ;;  %v233_v44 = vld [vmem:[%s9404_s5 + $0x78] sm:$0xff]  ;;  %v2875_v46 = vld [vmem:[%s9397_s3 + $0x30] sm:$0xff] }
 0x58d   :  { %6664 = vmatprep.mubr.f32.mxu0 %v2326_v55  ;;  %v2273_v57 = vmul.f32 %v8203_v12, %v233_v44  ;;  %v2873_v12 = vld [vmem:[%s9397_s3 + $0x20] sm:$0xff]  ;;  %v2876_v36 = vld [vmem:[%s9397_s3 + $0x38] sm:$0xff] }
 0x58e   :  { %v2327_v8 = vadd.f32 %v2311_v29, %v2263_v7  ;;  %v2330_v52 = vadd.f32 %v2314_v24, %v2266_v15  ;;  %v2872_v7 = vld [vmem:[%s9397_s3 + $0x18] sm:$0xff]  ;;  %v2874_v29 = vld [vmem:[%s9397_s3 + $0x28] sm:$0xff]  ;;  %v2883_v24 = vld [vmem:[%s9397_s3 + $0x70] sm:$0xff] }
 0x58f   :  { %v2289_v50 = vpop.permute.xlu1 %2288  ;;  %v2295_v0 = vpop.permute.xlu0 %2294  ;;  %6752 = vmatmul.mubr.msk.f32.gmra.mxu1 %vm295_vm1, %v2872_v7 }
 0x590   :  { %v2313_v37 = vmul.f32 %v2289_v50, %v241_v61  ;;  %6665 = vmatmul.mubr.f32.gmra.mxu0 %v2327_v8  ;;  %v2316_v3 = vmul.f32 %v2295_v0, %v244_v49  ;;  %6754 = vmatprep.mubr.msk.f32.mxu1 %vm295_vm1, %v2873_v12  ;;  %v2879_v61 = vld [vmem:[%s9397_s3 + $0x50] sm:$0xff]  ;;  %v2880_v8 = vld [vmem:[%s9397_s3 + $0x58] sm:$0xff] }
 0x591   :  { %6667 = vmatprep.mubr.f32.mxu0 %v2328_v11  ;;  %v2882_v11 = vld [vmem:[%s9397_s3 + $0x68] sm:$0xff]  ;;  %v2884_v50 = vld [vmem:[%s9397_s3 + $0x78] sm:$0xff] }
 0x592   :  { %v2329_v27 = vadd.f32 %v2313_v37, %v2265_v1  ;;  %v2332_v34 = vadd.f32 %v2316_v3, %v2268_v30 }
 0x593   :  { %v2293_v51 = vpop.permute.xlu1 %2292  ;;  %v2299_v18 = vpop.permute.xlu0 %2298  ;;  %6755 = vmatmul.mubr.msk.f32.gmra.mxu1 %vm295_vm1, %v2874_v29 }
 0x594   :  { %v2315_v10 = vmul.f32 %v2293_v51, %v243_v14  ;;  %6668 = vmatmul.mubr.f32.gmra.mxu0 %v2329_v27  ;;  %v2318_v53 = vmul.f32 %v2299_v18, %v246_v28  ;;  %6757 = vmatprep.mubr.msk.f32.mxu1 %vm295_vm1, %v2875_v46 }
 0x595   :  { %6670 = vmatprep.mubr.f32.mxu0 %v2330_v52 }
 0x596   :  { %v2331_v5 = vadd.f32 %v2315_v10, %v2267_v2  ;;  %v2334_v22 = vadd.f32 %v2318_v53, %v2270_v56 }
 0x597   :  { %v2297_v4 = vpop.permute.xlu1 %2296  ;;  %v2303_v19 = vpop.permute.xlu0 %2302  ;;  %6758 = vmatmul.mubr.msk.f32.gmra.mxu1 %vm295_vm1, %v2876_v36 }
 0x598   :  { %v2317_v25 = vmul.f32 %v2297_v4, %v245_v54  ;;  %6671 = vmatmul.mubr.f32.gmra.mxu0 %v2331_v5  ;;  %v2320_v32 = vmul.f32 %v2303_v19, %v248_v20  ;;  %6760 = vmatprep.mubr.msk.f32.mxu1 %vm295_vm1, %v2877_v45 }
 0x599   :  { %6673 = vmatprep.mubr.f32.mxu0 %v2332_v34 }
 0x59a   :  { %v2333_v21 = vadd.f32 %v2317_v25, %v2269_v40  ;;  %v2336_v17 = vadd.f32 %v2320_v32, %v2272_v38 }
 0x59b   :  { %v2301_v35 = vpop.permute.xlu1 %2300  ;;  %6761 = vmatmul.mubr.msk.f32.gmra.mxu1 %vm295_vm1, %v2878_v60 }
 0x59c   :  { %v2319_v62 = vmul.f32 %v2301_v35, %v247_v58  ;;  %6674 = vmatmul.mubr.f32.gmra.mxu0 %v2333_v21  ;;  %6763 = vmatprep.mubr.msk.f32.mxu1 %vm295_vm1, %v2879_v61 }
 0x59d   :  { %6676 = vmatprep.mubr.f32.mxu0 %v2334_v22 }
 0x59e   :  { %v2335_v43 = vadd.f32 %v2319_v62, %v2271_v41 }
 0x59f   :  { %v2305_v55 = vpop.permute.xlu1 %2304  ;;  %6764 = vmatmul.mubr.msk.f32.gmra.mxu1 %vm295_vm1, %v2880_v8 }
 0x5a0   :  { %v2321_v6 = vmul.f32 %v2305_v55, %v249_v42  ;;  %6677 = vmatmul.mubr.f32.gmra.mxu0 %v2335_v43  ;;  %6766 = vmatprep.mubr.msk.f32.mxu1 %vm295_vm1, %v2881_v9 }
 0x5a1   :  { %6679 = vmatprep.mubr.f32.mxu0 %v2336_v17 }
 0x5a2   :  { %v2337_v23 = vadd.f32 %v2321_v6, %v2273_v57 }
 0x5a3   :  { %6767 = vmatmul.mubr.msk.f32.gmra.mxu1 %vm295_vm1, %v2882_v11 }
 0x5a4   :  { %6680 = vmatmul.mubr.f32.gmra.mxu0 %v2337_v23  ;;  %6769 = vmatprep.mubr.msk.f32.mxu1 %vm295_vm1, %v2883_v24 }
 0x5a7   :  { %6770 = vmatmul.mubr.msk.f32.gmra.mxu1 %vm295_vm1, %v2884_v50 }
 0x5cd   :  { %v2211_v1 = vpop.xlane.xlu0 %2210 }
 0x5ce   :  { %7142 = vrcp.f32 %v2211_v1 }
 0x5d1   :  { %v2215_v37 = vpop.xlane.xlu0 %2214 }
 0x5d5   :  { %v2217_v49 = vpop.xlane.xlu0 %2216 }
 0x5d9   :  { %v2219_v15 = vpop.xlane.xlu0 %2218 }
 0x5da   :  { %v2213_v0 = vpop.xlane.xlu1 %2212 }
 0x5db   :  { %7144 = vrcp.f32 %v2213_v0  ;;  %v7143_v51 = vpop.eup %7142  ;;  %v5704_v0 = vld [vmem:[%s9397_s3 + $0x88] sm:$0xff] }
 0x5dc   :  { %7146 = vrcp.f32 %v2215_v37 }
 0x5dd   :  { %v2223_v14 = vpop.xlane.xlu0 %2222  ;;  %7148 = vrcp.f32 %v2217_v49  ;;  %v5703_v49 = vld [vmem:[%s9397_s3 + $0x80] sm:$0xff] }
 0x5de   :  { %v2221_v26 = vpop.xlane.xlu1 %2220  ;;  %7150 = vrcp.f32 %v2219_v15  ;;  %v5705_v15 = vld [vmem:[%s9397_s3 + $0x90] sm:$0xff] }
 0x5df   :  { %7152 = vrcp.f32 %v2221_v26  ;;  %v5706_v26 = vld [vmem:[%s9397_s3 + $0x98] sm:$0xff] }
 0x5e0   :  { %7154 = vrcp.f32 %v2223_v14  ;;  %v5707_v14 = vld [vmem:[%s9397_s3 + $0xa0] sm:$0xff] }
 0x5e1   :  { %v2227_v48 = vpop.xlane.xlu0 %2226 }
 0x5e2   :  { %v2225_v27 = vpop.xlane.xlu1 %2224 }
 0x5e3   :  { %7156 = vrcp.f32 %v2225_v27  ;;  %v8446_v27 = vpop.f32.mrf.mxu1 }
 0x5e4   :  { %7158 = vrcp.f32 %v2227_v48  ;;  %v5708_v48 = vld [vmem:[%s9397_s3 + $0xa8] sm:$0xff] }
 0x5e5   :  { %v2231_v30 = vpop.xlane.xlu0 %2230 }
 0x5e6   :  { %v2229_v3 = vpop.xlane.xlu1 %2228 }
 0x5e7   :  { %7160 = vrcp.f32 %v2229_v3  ;;  %v8456_v3 = vpop.f32.mrf.mxu1 }
 0x5e8   :  { %v7145_v10 = vpop.eup %7144  ;;  %7162 = vrcp.f32 %v2231_v30 }
 0x5e9   :  { %v7147_v5 = vpop.eup %7146  ;;  %v2235_v4 = vpop.xlane.xlu0 %2234 }
 0x5ea   :  { %v2233_v16 = vpop.xlane.xlu1 %2232  ;;  %v7149_v34 = vpop.eup %7148 }
 0x5eb   :  { %v7151_v19 = vpop.eup %7150  ;;  %7164 = vrcp.f32 %v2233_v16  ;;  %v5714_v16 = vld [vmem:[%s9397_s3 + $0xd8] sm:$0xff] }
 0x5ec   :  { %7166 = vrcp.f32 %v2235_v4  ;;  %v5718_v4 = vld [vmem:[%s9397_s3 + $0xf8] sm:$0xff] }
 0x5ed   :  { %v2239_v22 = vpop.xlane.xlu0 %2238 }
 0x5ee   :  { %v2237_v20 = vpop.xlane.xlu1 %2236 }
 0x5ef   :  { %7168 = vrcp.f32 %v2237_v20 }
 0x5f0   :  { %7170 = vrcp.f32 %v2239_v22 }
 0x5f2   :  { %v2241_v41 = vpop.xlane.xlu1 %2240 }
 0x5f3   :  { %7172 = vrcp.f32 %v2241_v41 }
 0x644   :  { %v6660_v52 = vpop.f32.mrf.mxu0 }
 0x645   :  { %v2484_v18 = vmul.f32 %v7145_v10, %v6660_v52  ;;  %v5709_v52 = vld [vmem:[%s9397_s3 + $0xb0] sm:$0xff]  ;;  %v8466_v10 = vpop.f32.mrf.mxu1 }
 0x646   :  { %v2404_v2 = vpop.f32.mrf.mxu0 }
 0x647   :  { %v2483_v28 = vmul.f32 %v7143_v51, %v2404_v2  ;;  %v5710_v51 = vld [vmem:[%s9397_s3 + $0xb8] sm:$0xff]  ;;  %v5711_v2 = vld [vmem:[%s9397_s3 + $0xc0] sm:$0xff]  ;;  %v8476_v30 = vpop.f32.mrf.mxu1 }
 0x649   :  { %6722 = vmatprep.mubr.msk.f32.mxu0 %vm1936_vm2, %v2483_v28  ;;  %v5712_v28 = vld [vmem:[%s9397_s3 + $0xc8] sm:$0xff] }
 0x64a   :  { %6723 = vmatmul.mubr.msk.f32.vlgmr.msra.gmra.mxu0 %vm1936_vm2, %v2484_v18  ;;  %v5713_v18 = vld [vmem:[%s9397_s3 + $0xd0] sm:$0xff] }
 0x64b   :  { %6773 = vmatpush3.msra.mxu0 %v8284_v33  ;;  %v7153_v33 = vpop.eup %7152 }
 0x64c   :  { %v6663_v54 = vpop.f32.mrf.mxu0  ;;  %v7155_v63 = vpop.eup %7154 }
 0x64d   :  { %v2486_v40 = vmul.f32 %v7149_v34, %v6663_v54  ;;  %v7157_v35 = vpop.eup %7156  ;;  %v5715_v54 = vld [vmem:[%s9397_s3 + $0xe0] sm:$0xff]  ;;  %v5717_v34 = vld [vmem:[%s9397_s3 + $0xf0] sm:$0xff] }
 0x64e   :  { %v2414_v47 = vpop.f32.mrf.mxu0  ;;  %v7159_v42 = vpop.eup %7158 }
 0x64f   :  { %v2485_v53 = vmul.f32 %v7147_v5, %v2414_v47  ;;  %v7161_v17 = vpop.eup %7160  ;;  %v8486_v5 = vpop.f32.mrf.mxu1  ;;  %v5716_v47 = vld [vmem:[%s9397_s3 + $0xe8] sm:$0xff] }
 0x650   :  { %v6666_v25 = vpop.f32.mrf.mxu0  ;;  %v7163_v23 = vpop.eup %7162 }
 0x651   :  { %6725 = vmatprep.mubr.msk.f32.mxu0 %vm1936_vm2, %v2485_v53  ;;  %v2488_v58 = vmul.f32 %v7153_v33, %v6666_v25  ;;  %v7165_v7 = vpop.eup %7164  ;;  %v8496_v53 = vpop.f32.mrf.mxu1 }
 0x652   :  { %v2424_v56 = vpop.f32.mrf.mxu0  ;;  %6726 = vmatmul.mubr.msk.f32.gmra.mxu0 %vm1936_vm2, %v2486_v40  ;;  %v7167_v36 = vpop.eup %7166 }
 0x653   :  { %v2487_v31 = vmul.f32 %v7151_v19, %v2424_v56  ;;  %v7169_v60 = vpop.eup %7168  ;;  %v8503_v40 = vpop.f32.mrf.mxu1 }
 0x654   :  { %v6669_v21 = vpop.f32.mrf.mxu0  ;;  %v7171_v11 = vpop.eup %7170 }
 0x655   :  { %6728 = vmatprep.mubr.msk.f32.mxu0 %vm1936_vm2, %v2487_v31  ;;  %v2490_v38 = vmul.f32 %v7157_v35, %v6669_v21  ;;  %v7173_v50 = vpop.eup %7172  ;;  %v8506_v25 = vpop.f32.mrf.mxu1 }
 0x656   :  { %v2434_v32 = vpop.f32.mrf.mxu0  ;;  %6729 = vmatmul.mubr.msk.f32.gmra.mxu0 %vm1936_vm2, %v2488_v58 }
 0x657   :  { %v2489_v62 = vmul.f32 %v7155_v63, %v2434_v32  ;;  %v8508_v20 = vpop.f32.mrf.mxu1  ;;  %v3078_v32 = vld [vmem:[%s9399_s4] sm:$0xff] }
 0x658   :  { %v6672_v44 = vpop.f32.mrf.mxu0  ;;  %6824 = vmatprep.subr.mxu0 %v3078_v32 }
 0x659   :  { %6731 = vmatprep.mubr.msk.f32.mxu0 %vm1936_vm2, %v2489_v62  ;;  %v2492_v57 = vmul.f32 %v7161_v17, %v6672_v44  ;;  %v8510_v19 = vpop.f32.mrf.mxu1 }
 0x65a   :  { %v2444_v43 = vpop.f32.mrf.mxu0  ;;  %6732 = vmatmul.mubr.msk.f32.gmra.mxu0 %vm1936_vm2, %v2490_v38 }
 0x65b   :  { %v2491_v55 = vmul.f32 %v7159_v42, %v2444_v43  ;;  %v8512_v56 = vpop.f32.mrf.mxu1 }
 0x65c   :  { %v6675_v6 = vpop.f32.mrf.mxu0 }
 0x65d   :  { %6734 = vmatprep.mubr.msk.f32.mxu0 %vm1936_vm2, %v2491_v55  ;;  %v2494_v29 = vmul.f32 %v7165_v7, %v6675_v6  ;;  %v8514_v33 = vpop.f32.mrf.mxu1 }
 0x65e   :  { %v2454_v13 = vpop.f32.mrf.mxu0  ;;  %6735 = vmatmul.mubr.msk.f32.gmra.mxu0 %vm1936_vm2, %v2492_v57 }
 0x65f   :  { %v2493_v12 = vmul.f32 %v7163_v23, %v2454_v13  ;;  %v8516_v31 = vpop.f32.mrf.mxu1 }
 0x660   :  { %v6678_v46 = vpop.f32.mrf.mxu0 }
 0x661   :  { %6737 = vmatprep.mubr.msk.f32.mxu0 %vm1936_vm2, %v2493_v12  ;;  %v2496_v8 = vmul.f32 %v7169_v60, %v6678_v46  ;;  %v8518_v58 = vpop.f32.mrf.mxu1 }
 0x662   :  { %v2464_v45 = vpop.f32.mrf.mxu0  ;;  %6738 = vmatmul.mubr.msk.f32.gmra.mxu0 %vm1936_vm2, %v2494_v29  ;;  %v264_v29 = vld [vmem:[%s9406_s11 + $0x8] sm:$0xff] }
 0x663   :  { %v2495_v61 = vmul.f32 %v7167_v36, %v2464_v45  ;;  %v8520_v21 = vpop.f32.mrf.mxu1  ;;  %v263_v45 = vld [vmem:[%s9406_s11] sm:$0xff] }
 0x664   :  { %v6681_v9 = vpop.f32.mrf.mxu0 }
 0x665   :  { %6740 = vmatprep.mubr.msk.f32.mxu0 %vm1936_vm2, %v2495_v61  ;;  %v2498_v37 = vmul.f32 %v7173_v50, %v6681_v9  ;;  %v8522_v63 = vpop.f32.mrf.mxu1 }
 0x666   :  { %v2474_v24 = vpop.f32.mrf.mxu0  ;;  %6741 = vmatmul.mubr.msk.f32.gmra.mxu0 %vm1936_vm2, %v2496_v8 }
 0x667   :  { %v2497_v1 = vmul.f32 %v7171_v11, %v2474_v24  ;;  %v6750_v22 = vpop.f32.mrf.mxu1  ;;  %v266_v11 = vld [vmem:[%s9406_s11 + $0x18] sm:$0xff] }
 0x669   :  { %6743 = vmatprep.mubr.msk.f32.mxu0 %vm1936_vm2, %v2497_v1  ;;  %v2999_v35 = vpop.f32.mrf.mxu1  ;;  %v265_v1 = vld [vmem:[%s9406_s11 + $0x10] sm:$0xff] }
 0x66a   :  { %6744 = vmatmul.mubr.msk.f32.gmra.mxu0 %vm1936_vm2, %v2498_v37 }
 0x66b   :  { %6774 = vmatprep.mubr.msk.f32.mxu0 %vm295_vm1, %v5703_v49  ;;  %v6753_v41 = vpop.f32.mrf.mxu1 }
 0x66d   :  { %v3009_v62 = vpop.f32.mrf.mxu1 }
 0x66e   :  { %6775 = vmatmul.mubr.msk.f32.vlgmr.msra.gmra.mxu0 %vm295_vm1, %v5704_v0 }
 0x66f   :  { %6777 = vmatprep.mubr.msk.f32.mxu0 %vm295_vm1, %v5705_v15  ;;  %6825 = vmatpush3.msra.mxu0 %v3078_v32  ;;  %v6756_v38 = vpop.f32.mrf.mxu1  ;;  %v268_v15 = vld [vmem:[%s9406_s11 + $0x28] sm:$0xff] }
 0x671   :  { %v3019_v44 = vpop.f32.mrf.mxu1 }
 0x672   :  { %6778 = vmatmul.mubr.msk.f32.gmra.mxu0 %vm295_vm1, %v5706_v26 }
 0x673   :  { %6780 = vmatprep.mubr.msk.f32.mxu0 %vm295_vm1, %v5707_v14  ;;  %v6759_v42 = vpop.f32.mrf.mxu1 }
 0x675   :  { %v3029_v43 = vpop.f32.mrf.mxu1 }
 0x676   :  { %6781 = vmatmul.mubr.msk.f32.gmra.mxu0 %vm295_vm1, %v5708_v48  ;;  %v267_v48 = vld [vmem:[%s9406_s11 + $0x20] sm:$0xff] }
 0x677   :  { %6783 = vmatprep.mubr.msk.f32.mxu0 %vm295_vm1, %v5709_v52  ;;  %v6762_v17 = vpop.f32.mrf.mxu1 }
 0x679   :  { %v3039_v55 = vpop.f32.mrf.mxu1 }
 0x67a   :  { %6784 = vmatmul.mubr.msk.f32.gmra.mxu0 %vm295_vm1, %v5710_v51 }
 0x67b   :  { %6786 = vmatprep.mubr.msk.f32.mxu0 %vm295_vm1, %v5711_v2  ;;  %v6765_v57 = vpop.f32.mrf.mxu1  ;;  %v270_v2 = vld [vmem:[%s9406_s11 + $0x38] sm:$0xff] }
 0x67d   :  { %v3049_v6 = vpop.f32.mrf.mxu1 }
 0x67e   :  { %6787 = vmatmul.mubr.msk.f32.gmra.mxu0 %vm295_vm1, %v5712_v28 }
 0x67f   :  { %6789 = vmatprep.mubr.msk.f32.mxu0 %vm295_vm1, %v5713_v18  ;;  %v6768_v23 = vpop.f32.mrf.mxu1 }
 0x681   :  { %v3059_v13 = vpop.f32.mrf.mxu1 }
 0x682   :  { %6790 = vmatmul.mubr.msk.f32.gmra.mxu0 %vm295_vm1, %v5714_v16 }
 0x683   :  { %6792 = vmatprep.mubr.msk.f32.mxu0 %vm295_vm1, %v5715_v54  ;;  %v6771_v7 = vpop.f32.mrf.mxu1 }
 0x685   :  { %v3069_v12 = vpop.f32.mrf.mxu1 }
 0x686   :  { %6793 = vmatmul.mubr.msk.f32.gmra.mxu0 %vm295_vm1, %v5716_v47  ;;  %v272_v47 = vld [vmem:[%s9406_s11 + $0x48] sm:$0xff] }
 0x687   :  { %6795 = vmatprep.mubr.msk.f32.mxu0 %vm295_vm1, %v5717_v34 }
 0x68a   :  { %6796 = vmatmul.mubr.msk.f32.gmra.mxu0 %vm295_vm1, %v5718_v4 }
 0x68b   :  { %6826 = vmatprep.mubr.msk.f32.mxu0 %vm295_vm1, %v2999_v35  ;;  %v274_v35 = vld [vmem:[%s9406_s11 + $0x58] sm:$0xff] }
 0x68e   :  { %6827 = vmatmul.mubr.msk.f32.vlgmr.msra.gmra.mxu0 %vm295_vm1, %v6750_v22 }
 0x68f   :  { %6829 = vmatprep.mubr.msk.f32.mxu0 %vm295_vm1, %v3009_v62 }
 0x692   :  { %6830 = vmatmul.mubr.msk.f32.gmra.mxu0 %vm295_vm1, %v6753_v41 }
 0x693   :  { %6832 = vmatprep.mubr.msk.f32.mxu0 %vm295_vm1, %v3019_v44 }
 0x696   :  { %6833 = vmatmul.mubr.msk.f32.gmra.mxu0 %vm295_vm1, %v6756_v38  ;;  %v273_v38 = vld [vmem:[%s9406_s11 + $0x50] sm:$0xff] }
 0x697   :  { %6835 = vmatprep.mubr.msk.f32.mxu0 %vm295_vm1, %v3029_v43  ;;  %v276_v43 = vld [vmem:[%s9406_s11 + $0x68] sm:$0xff] }
 0x69a   :  { %6836 = vmatmul.mubr.msk.f32.gmra.mxu0 %vm295_vm1, %v6759_v42 }
 0x69b   :  { %6838 = vmatprep.mubr.msk.f32.mxu0 %vm295_vm1, %v3039_v55 }
 0x69e   :  { %6839 = vmatmul.mubr.msk.f32.gmra.mxu0 %vm295_vm1, %v6762_v17 }
 0x69f   :  { %6841 = vmatprep.mubr.msk.f32.mxu0 %vm295_vm1, %v3049_v6 }
 0x6a2   :  { %6842 = vmatmul.mubr.msk.f32.gmra.mxu0 %vm295_vm1, %v6765_v57  ;;  %v275_v57 = vld [vmem:[%s9406_s11 + $0x60] sm:$0xff] }
 0x6a3   :  { %6844 = vmatprep.mubr.msk.f32.mxu0 %vm295_vm1, %v3059_v13  ;;  %v278_v13 = vld [vmem:[%s9406_s11 + $0x78] sm:$0xff] }
 0x6a6   :  { %6845 = vmatmul.mubr.msk.f32.gmra.mxu0 %vm295_vm1, %v6768_v23 }
 0x6a7   :  { %6847 = vmatprep.mubr.msk.f32.mxu0 %vm295_vm1, %v3069_v12 }
 0x6aa   :  { %6848 = vmatmul.mubr.msk.f32.gmra.mxu0 %vm295_vm1, %v6771_v7 }
 0x70a   :  { %v6724_v46 = vpop.f32.mrf.mxu0 }
 0x70b   :  { %v2764_v36 = vadd.f32 %v6724_v46, %v8446_v27 }
 0x70c   :  { %v2758_v60 = vpop.f32.mrf.mxu0 }
 0x70d   :  { %v2838_v61 = vadd.f32 %v2764_v36, %v264_v29  ;;  %v2759_v8 = vadd.f32 %v2758_v60, %v8456_v3  ;;  %v277_v29 = vld [vmem:[%s9406_s11 + $0x70] sm:$0xff] }
 0x70f   :  { %2854 = vst [vmem:[%s9407_s12 + $0x8] sm:$0xff] %v2838_v61  ;;  %v2837_v9 = vadd.f32 %v2759_v8, %v263_v45 }
 0x711   :  { %2853 = vst [vmem:[%s9407_s12] sm:$0xff] %v2837_v9 }
 0x712   :  { %v6727_v24 = vpop.f32.mrf.mxu0 }
 0x713   :  { %v2774_v50 = vadd.f32 %v6727_v24, %v8466_v10 }
 0x714   :  { %v2768_v37 = vpop.f32.mrf.mxu0 }
 0x715   :  { %v2840_v49 = vadd.f32 %v2774_v50, %v266_v11  ;;  %v2769_v0 = vadd.f32 %v2768_v37, %v8476_v30  ;;  %v269_v30 = vld [vmem:[%s9406_s11 + $0x30] sm:$0xff] }
 0x716   :  { %v6730_v26 = vpop.f32.mrf.mxu0 }
 0x717   :  { %2856 = vst [vmem:[%s9407_s12 + $0x18] sm:$0xff] %v2840_v49  ;;  %v2839_v14 = vadd.f32 %v2769_v0, %v265_v1  ;;  %v2784_v27 = vadd.f32 %v6730_v26, %v8486_v5 }
 0x718   :  { %v2778_v52 = vpop.f32.mrf.mxu0 }
 0x719   :  { %2855 = vst [vmem:[%s9407_s12 + $0x10] sm:$0xff] %v2839_v14  ;;  %v2842_v3 = vadd.f32 %v2784_v27, %v268_v15  ;;  %v2779_v51 = vadd.f32 %v2778_v52, %v8496_v53  ;;  %v5768_v27 = vld [vmem:[%s9397_s3 + $0x100] sm:$0xff]  ;;  %v5770_v52 = vld [vmem:[%s9397_s3 + $0x110] sm:$0xff] }
 0x71a   :  { %v6733_v10 = vpop.f32.mrf.mxu0 }
 0x71b   :  { %2858 = vst [vmem:[%s9407_s12 + $0x28] sm:$0xff] %v2842_v3  ;;  %v2841_v28 = vadd.f32 %v2779_v51, %v267_v48  ;;  %v2794_v18 = vadd.f32 %v6733_v10, %v8503_v40  ;;  %v271_v40 = vld [vmem:[%s9406_s11 + $0x40] sm:$0xff]  ;;  %v5769_v48 = vld [vmem:[%s9397_s3 + $0x108] sm:$0xff]  ;;  %v5771_v3 = vld [vmem:[%s9397_s3 + $0x118] sm:$0xff] }
 0x71c   :  { %v2788_v16 = vpop.f32.mrf.mxu0  ;;  %v5772_v51 = vld [vmem:[%s9397_s3 + $0x120] sm:$0xff]  ;;  %v5773_v10 = vld [vmem:[%s9397_s3 + $0x128] sm:$0xff] }
 0x71d   :  { %2857 = vst [vmem:[%s9407_s12 + $0x20] sm:$0xff] %v2841_v28  ;;  %v2844_v54 = vadd.f32 %v2794_v18, %v270_v2  ;;  %v2789_v5 = vadd.f32 %v2788_v16, %v8506_v25  ;;  %v7239_v2 = vld [vmem:[%s9400_s7 + $0x18] sm:$0xff]  ;;  %v5774_v28 = vld [vmem:[%s9397_s3 + $0x130] sm:$0xff]  ;;  %v5777_v16 = vld [vmem:[%s9397_s3 + $0x148] sm:$0xff] }
 0x71e   :  { %v6736_v34 = vpop.f32.mrf.mxu0  ;;  %v5775_v18 = vld [vmem:[%s9397_s3 + $0x138] sm:$0xff] }
 0x71f   :  { %2860 = vst [vmem:[%s9407_s12 + $0x38] sm:$0xff] %v2844_v54  ;;  %v2843_v53 = vadd.f32 %v2789_v5, %v269_v30  ;;  %v2804_v4 = vadd.f32 %v6736_v34, %v8508_v20  ;;  %v5776_v30 = vld [vmem:[%s9397_s3 + $0x140] sm:$0xff]  ;;  %v5778_v54 = vld [vmem:[%s9397_s3 + $0x150] sm:$0xff]  ;;  %v5779_v5 = vld [vmem:[%s9397_s3 + $0x158] sm:$0xff] }
 0x720   :  { %v2798_v22 = vpop.f32.mrf.mxu0  ;;  %v5781_v34 = vld [vmem:[%s9397_s3 + $0x168] sm:$0xff] }
 0x721   :  { %2859 = vst [vmem:[%s9407_s12 + $0x30] sm:$0xff] %v2843_v53  ;;  %v2846_v25 = vadd.f32 %v2804_v4, %v272_v47  ;;  %v2799_v32 = vadd.f32 %v2798_v22, %v8510_v19  ;;  %v5780_v47 = vld [vmem:[%s9397_s3 + $0x160] sm:$0xff]  ;;  %v5782_v53 = vld [vmem:[%s9397_s3 + $0x170] sm:$0xff]  ;;  %v5783_v4 = vld [vmem:[%s9397_s3 + $0x178] sm:$0xff] }
 0x722   :  { %v6739_v41 = vpop.f32.mrf.mxu0  ;;  %v5818_v22 = vld [vmem:[%s9397_s3 + $0x188] sm:$0xff] }
 0x723   :  { %2862 = vst [vmem:[%s9407_s12 + $0x48] sm:$0xff] %v2846_v25  ;;  %v2845_v20 = vadd.f32 %v2799_v32, %v271_v40  ;;  %v2814_v62 = vadd.f32 %v6739_v41, %v8512_v56  ;;  %v5817_v40 = vld [vmem:[%s9397_s3 + $0x180] sm:$0xff]  ;;  %v5819_v25 = vld [vmem:[%s9397_s3 + $0x190] sm:$0xff]  ;;  %v5820_v32 = vld [vmem:[%s9397_s3 + $0x198] sm:$0xff] }
 0x724   :  { %v2808_v44 = vpop.f32.mrf.mxu0  ;;  %v7240_v41 = vld [vmem:[%s9400_s7 + $0x10] sm:$0xff] }
 0x725   :  { %2861 = vst [vmem:[%s9407_s12 + $0x40] sm:$0xff] %v2845_v20  ;;  %v2848_v19 = vadd.f32 %v2814_v62, %v274_v35  ;;  %v2809_v42 = vadd.f32 %v2808_v44, %v8514_v33  ;;  %v5821_v35 = vld [vmem:[%s9397_s3 + $0x1a0] sm:$0xff]  ;;  %v7241_v20 = vld [vmem:[%s9400_s7 + $0x8] sm:$0xff] }
 0x726   :  { %v6742_v17 = vpop.f32.mrf.mxu0  ;;  %v5822_v62 = vld [vmem:[%s9397_s3 + $0x1a8] sm:$0xff]  ;;  %v7242_v44 = vld [vmem:[%s9400_s7] sm:$0xff] }
 0x727   :  { %2864 = vst [vmem:[%s9407_s12 + $0x58] sm:$0xff] %v2848_v19  ;;  %v2847_v56 = vadd.f32 %v2809_v42, %v273_v38  ;;  %v2824_v55 = vadd.f32 %v6742_v17, %v8516_v31  ;;  %v5823_v38 = vld [vmem:[%s9397_s3 + $0x1b0] sm:$0xff]  ;;  %v5824_v42 = vld [vmem:[%s9397_s3 + $0x1b8] sm:$0xff] }
 0x728   :  { %v2818_v6 = vpop.f32.mrf.mxu0  ;;  %v5800_v19 = vld [vmem:[%s9399_s4 + $0x10] sm:$0xff]  ;;  %v8790_v17 = vld [vmem:[%s9401_s10 + $0x18] sm:$0xff] }
 0x729   :  { %2863 = vst [vmem:[%s9407_s12 + $0x50] sm:$0xff] %v2847_v56  ;;  %v2850_v33 = vadd.f32 %v2824_v55, %v276_v43  ;;  %v2819_v23 = vadd.f32 %v2818_v6, %v8518_v58  ;;  %6876 = vmatprep.subr.mxu0 %v5800_v19  ;;  %v5825_v43 = vld [vmem:[%s9397_s3 + $0x1c0] sm:$0xff]  ;;  %v5826_v56 = vld [vmem:[%s9397_s3 + $0x1c8] sm:$0xff]  ;;  %v5827_v55 = vld [vmem:[%s9397_s3 + $0x1d0] sm:$0xff] }
 0x72a   :  { %v6745_v7 = vpop.f32.mrf.mxu0  ;;  %6877 = vmatpush3.msra.mxu0 %v5800_v19  ;;  %v5829_v6 = vld [vmem:[%s9397_s3 + $0x1e0] sm:$0xff] }
 0x72b   :  { %2866 = vst [vmem:[%s9407_s12 + $0x68] sm:$0xff] %v2850_v33  ;;  %v2849_v31 = vadd.f32 %v2819_v23, %v275_v57  ;;  %v2834_v12 = vadd.f32 %v6745_v7, %v8520_v21  ;;  %v9411_v21 = vld [vmem:[#allocation3_spill] sm:$0xff]  ;;  %v5828_v57 = vld [vmem:[%s9397_s3 + $0x1d8] sm:$0xff]  ;;  %v5831_v23 = vld [vmem:[%s9397_s3 + $0x1f0] sm:$0xff] }
 0x72c   :  { %v2828_v46 = vpop.f32.mrf.mxu0  ;;  %v215_v8 = vadd.f32 %v8280_v39, %v9411_v21  ;;  %v5830_v33 = vld [vmem:[%s9397_s3 + $0x1e8] sm:$0xff]  ;;  %v5849_v7 = vld [vmem:[%s9399_s4 + $0x18] sm:$0xff] }
 0x72d   :  { %2865 = vst [vmem:[%s9407_s12 + $0x60] sm:$0xff] %v2849_v31  ;;  %v2852_v58 = vadd.f32 %v2834_v12, %v278_v13  ;;  %v2829_v36 = vadd.f32 %v2828_v46, %v8522_v63  ;;  %v5832_v13 = vld [vmem:[%s9397_s3 + $0x1f8] sm:$0xff]  ;;  %6928 = vmatprep.subr.mxu0 %v5849_v7 }
 0x72e   :  { %v6776_v45 = vpop.f32.mrf.mxu0 }
 0x72f   :  { %2868 = vst [vmem:[%s9407_s12 + $0x78] sm:$0xff] %v2852_v58  ;;  %v2851_v60 = vadd.f32 %v2829_v36, %v277_v29 }
 0x730   :  { %v3209_v61 = vpop.f32.mrf.mxu0 }
 0x731   :  { %2867 = vst [vmem:[%s9407_s12 + $0x70] sm:$0xff] %v2851_v60  ;;  %6800 = vmatprep.mubr.msk.f32.mxu1 %vm295_vm1, %v3209_v61 }
 0x732   :  { %v6779_v9 = vpop.f32.mrf.mxu0  ;;  %6801 = vmatmul.mubr.msk.f32.vlgmr.msra.gmra.mxu1 %vm295_vm1, %v6776_v45 }
 0x733   :  { %6851 = vmatpush3.msra.mxu1 %v8097_v59 }
 0x734   :  { %6902 = vmatprep.subr.mxu1 %v215_v8  ;;  %v3219_v63 = vpop.f32.mrf.mxu0 }
 0x735   :  { %6803 = vmatprep.mubr.msk.f32.mxu1 %vm295_vm1, %v3219_v63 }
 0x736   :  { %v6782_v11 = vpop.f32.mrf.mxu0  ;;  %6804 = vmatmul.mubr.msk.f32.gmra.mxu1 %vm295_vm1, %v6779_v9 }
 0x738   :  { %v3229_v24 = vpop.f32.mrf.mxu0 }
 0x739   :  { %6806 = vmatprep.mubr.msk.f32.mxu1 %vm295_vm1, %v3229_v24 }
 0x73a   :  { %v6785_v50 = vpop.f32.mrf.mxu0  ;;  %6807 = vmatmul.mubr.msk.f32.gmra.mxu1 %vm295_vm1, %v6782_v11 }
 0x73c   :  { %v3239_v1 = vpop.f32.mrf.mxu0 }
 0x73d   :  { %6809 = vmatprep.mubr.msk.f32.mxu1 %vm295_vm1, %v3239_v1 }
 0x73e   :  { %v6788_v39 = vpop.f32.mrf.mxu0  ;;  %6810 = vmatmul.mubr.msk.f32.gmra.mxu1 %vm295_vm1, %v6785_v50 }
 0x740   :  { %v3249_v59 = vpop.f32.mrf.mxu0 }
 0x741   :  { %6812 = vmatprep.mubr.msk.f32.mxu1 %vm295_vm1, %v3249_v59 }
 0x742   :  { %v6791_v37 = vpop.f32.mrf.mxu0  ;;  %6813 = vmatmul.mubr.msk.f32.gmra.mxu1 %vm295_vm1, %v6788_v39 }
 0x744   :  { %v3259_v49 = vpop.f32.mrf.mxu0 }
 0x745   :  { %6815 = vmatprep.mubr.msk.f32.mxu1 %vm295_vm1, %v3259_v49 }
 0x746   :  { %v6794_v0 = vpop.f32.mrf.mxu0  ;;  %6816 = vmatmul.mubr.msk.f32.gmra.mxu1 %vm295_vm1, %v6791_v37 }
 0x748   :  { %v3269_v15 = vpop.f32.mrf.mxu0 }
 0x749   :  { %6818 = vmatprep.mubr.msk.f32.mxu1 %vm295_vm1, %v3269_v15 }
 0x74a   :  { %v6797_v26 = vpop.f32.mrf.mxu0  ;;  %6819 = vmatmul.mubr.msk.f32.gmra.mxu1 %vm295_vm1, %v6794_v0 }
 0x74c   :  { %v3279_v14 = vpop.f32.mrf.mxu0 }
 0x74d   :  { %6821 = vmatprep.mubr.msk.f32.mxu1 %vm295_vm1, %v3279_v14 }
 0x74e   :  { %6822 = vmatmul.mubr.msk.f32.gmra.mxu1 %vm295_vm1, %v6797_v26 }
 0x74f   :  { %6852 = vmatprep.mubr.msk.f32.mxu1 %vm295_vm1, %v5768_v27 }
 0x752   :  { %6853 = vmatmul.mubr.msk.f32.vlgmr.msra.gmra.mxu1 %vm295_vm1, %v5769_v48 }
 0x753   :  { %6903 = vmatpush3.msra.mxu1 %v215_v8  ;;  %6855 = vmatprep.mubr.msk.f32.mxu1 %vm295_vm1, %v5770_v52 }
 0x754   :  { %6954 = vmatprep.subr.mxu1 %v7239_v2 }
 0x756   :  { %6856 = vmatmul.mubr.msk.f32.gmra.mxu1 %vm295_vm1, %v5771_v3 }
 0x757   :  { %6858 = vmatprep.mubr.msk.f32.mxu1 %vm295_vm1, %v5772_v51 }
 0x75a   :  { %6859 = vmatmul.mubr.msk.f32.gmra.mxu1 %vm295_vm1, %v5773_v10 }
 0x75b   :  { %6861 = vmatprep.mubr.msk.f32.mxu1 %vm295_vm1, %v5774_v28 }
 0x75e   :  { %6862 = vmatmul.mubr.msk.f32.gmra.mxu1 %vm295_vm1, %v5775_v18 }
 0x75f   :  { %6864 = vmatprep.mubr.msk.f32.mxu1 %vm295_vm1, %v5776_v30 }
 0x762   :  { %6865 = vmatmul.mubr.msk.f32.gmra.mxu1 %vm295_vm1, %v5777_v16 }
 0x763   :  { %6867 = vmatprep.mubr.msk.f32.mxu1 %vm295_vm1, %v5778_v54 }
 0x766   :  { %6868 = vmatmul.mubr.msk.f32.gmra.mxu1 %vm295_vm1, %v5779_v5 }
 0x767   :  { %6870 = vmatprep.mubr.msk.f32.mxu1 %vm295_vm1, %v5780_v47 }
 0x76a   :  { %6871 = vmatmul.mubr.msk.f32.gmra.mxu1 %vm295_vm1, %v5781_v34 }
 0x76b   :  { %6873 = vmatprep.mubr.msk.f32.mxu1 %vm295_vm1, %v5782_v53 }
 0x76e   :  { %6874 = vmatmul.mubr.msk.f32.gmra.mxu1 %vm295_vm1, %v5783_v4 }
 0x76f   :  { %6904 = vmatprep.mubr.msk.f32.mxu1 %vm295_vm1, %v5817_v40 }
 0x772   :  { %6905 = vmatmul.mubr.msk.f32.vlgmr.msra.gmra.mxu1 %vm295_vm1, %v5818_v22 }
 0x773   :  { %6907 = vmatprep.mubr.msk.f32.mxu1 %vm295_vm1, %v5819_v25  ;;  %6955 = vmatpush3.msra.mxu1 %v7239_v2 }
 0x774   :  { %6956 = vmatprep.subr.mxu1 %v7240_v41 }
 0x775   :  { %6957 = vmatpush3.msra.mxu1 %v7240_v41 }
 0x776   :  { %6908 = vmatmul.mubr.msk.f32.gmra.mxu1 %vm295_vm1, %v5820_v32  ;;  %6958 = vmatprep.subr.mxu1 %v7241_v20 }
 0x777   :  { %6910 = vmatprep.mubr.msk.f32.mxu1 %vm295_vm1, %v5821_v35  ;;  %6959 = vmatpush3.msra.mxu1 %v7241_v20  ;;  %v6828_v20 = vpop.f32.mrf.mxu0 }
 0x778   :  { %6960 = vmatprep.subr.mxu1 %v7242_v44 }
 0x779   :  { %6961 = vmatpush3.msra.mxu1 %v7242_v44 }
 0x77a   :  { %6911 = vmatmul.mubr.msk.f32.gmra.mxu1 %vm295_vm1, %v5822_v62  ;;  %7042 = vmatprep.subr.mxu1 %v8790_v17  ;;  %v3596_v62 = vpop.f32.mrf.mxu0 }
 0x77b   :  { %6913 = vmatprep.mubr.msk.f32.mxu1 %vm295_vm1, %v5823_v38 }
 0x77c   :  { %v6831_v38 = vpop.f32.mrf.mxu0 }
 0x77e   :  { %6914 = vmatmul.mubr.msk.f32.gmra.mxu1 %vm295_vm1, %v5824_v42  ;;  %v3606_v44 = vpop.f32.mrf.mxu0 }
 0x77f   :  { %6916 = vmatprep.mubr.msk.f32.mxu1 %vm295_vm1, %v5825_v43 }
 0x780   :  { %v6834_v19 = vpop.f32.mrf.mxu0 }
 0x782   :  { %6917 = vmatmul.mubr.msk.f32.gmra.mxu1 %vm295_vm1, %v5826_v56  ;;  %v3616_v42 = vpop.f32.mrf.mxu0 }
 0x783   :  { %6919 = vmatprep.mubr.msk.f32.mxu1 %vm295_vm1, %v5827_v55 }
 0x784   :  { %v6837_v43 = vpop.f32.mrf.mxu0 }
 0x786   :  { %6920 = vmatmul.mubr.msk.f32.gmra.mxu1 %vm295_vm1, %v5828_v57  ;;  %v3626_v56 = vpop.f32.mrf.mxu0 }
 0x787   :  { %6922 = vmatprep.mubr.msk.f32.mxu1 %vm295_vm1, %v5829_v6 }
 0x788   :  { %v8890_v55 = vpop.f32.mrf.mxu0 }
 0x78a   :  { %6923 = vmatmul.mubr.msk.f32.gmra.mxu1 %vm295_vm1, %v5830_v33  ;;  %v8892_v57 = vpop.f32.mrf.mxu0 }
 0x78b   :  { %6925 = vmatprep.mubr.msk.f32.mxu1 %vm295_vm1, %v5831_v23 }
 0x78c   :  { %v8894_v6 = vpop.f32.mrf.mxu0 }
 0x78e   :  { %6926 = vmatmul.mubr.msk.f32.gmra.mxu1 %vm295_vm1, %v5832_v13  ;;  %v8896_v33 = vpop.f32.mrf.mxu0 }
 0x790   :  { %v8898_v23 = vpop.f32.mrf.mxu0 }
 0x792   :  { %v8900_v13 = vpop.f32.mrf.mxu0 }
 0x7f2   :  { %v8826_v31 = vpop.f32.mrf.mxu1 }
 0x7f4   :  { %v8828_v12 = vpop.f32.mrf.mxu1 }
 0x7f6   :  { %v8830_v29 = vpop.f32.mrf.mxu1 }
 0x7f8   :  { %v8832_v46 = vpop.f32.mrf.mxu1 }
 0x7fa   :  { %v8834_v58 = vpop.f32.mrf.mxu1 }
 0x7fc   :  { %v8836_v36 = vpop.f32.mrf.mxu1 }
 0x7fe   :  { %v8838_v45 = vpop.f32.mrf.mxu1 }
 0x800   :  { %v8840_v60 = vpop.f32.mrf.mxu1 }
 0x802   :  { %v8842_v61 = vpop.f32.mrf.mxu1 }
 0x804   :  { %v8844_v21 = vpop.f32.mrf.mxu1 }
 0x806   :  { %v8846_v8 = vpop.f32.mrf.mxu1 }
 0x808   :  { %v8848_v9 = vpop.f32.mrf.mxu1 }
 0x80a   :  { %v8850_v63 = vpop.f32.mrf.mxu1 }
 0x80c   :  { %v8852_v11 = vpop.f32.mrf.mxu1 }
 0x80e   :  { %v8854_v24 = vpop.f32.mrf.mxu1 }
 0x810   :  { %v8856_v50 = vpop.f32.mrf.mxu1 }
 0x812   :  { %v6854_v1 = vpop.f32.mrf.mxu1 }
 0x814   :  { %v3805_v39 = vpop.f32.mrf.mxu1 }
 0x815   :  { %6878 = vmatprep.mubr.msk.f32.mxu0 %vm295_vm1, %v3805_v39 }
 0x816   :  { %v6857_v59 = vpop.f32.mrf.mxu1  ;;  %6879 = vmatmul.mubr.msk.f32.vlgmr.msra.gmra.mxu0 %vm295_vm1, %v6854_v1 }
 0x817   :  { %6929 = vmatpush3.msra.mxu0 %v5849_v7  ;;  %v8902_v7 = vpop.f32.mrf.mxu0 }
 0x818   :  { %v3815_v37 = vpop.f32.mrf.mxu1 }
 0x819   :  { %6881 = vmatprep.mubr.msk.f32.mxu0 %vm295_vm1, %v3815_v37  ;;  %v8904_v1 = vpop.f32.mrf.mxu0 }
 0x81a   :  { %v6860_v49 = vpop.f32.mrf.mxu1  ;;  %6882 = vmatmul.mubr.msk.f32.gmra.mxu0 %vm295_vm1, %v6857_v59 }
 0x81c   :  { %v3825_v0 = vpop.f32.mrf.mxu1 }
 0x81d   :  { %6884 = vmatprep.mubr.msk.f32.mxu0 %vm295_vm1, %v3825_v0 }
 0x81e   :  { %v6863_v15 = vpop.f32.mrf.mxu1  ;;  %6885 = vmatmul.mubr.msk.f32.gmra.mxu0 %vm295_vm1, %v6860_v49 }
 0x820   :  { %v3835_v26 = vpop.f32.mrf.mxu1 }
 0x821   :  { %6887 = vmatprep.mubr.msk.f32.mxu0 %vm295_vm1, %v3835_v26 }
 0x822   :  { %v6866_v14 = vpop.f32.mrf.mxu1  ;;  %6888 = vmatmul.mubr.msk.f32.gmra.mxu0 %vm295_vm1, %v6863_v15 }
 0x824   :  { %v3845_v27 = vpop.f32.mrf.mxu1 }
 0x825   :  { %6890 = vmatprep.mubr.msk.f32.mxu0 %vm295_vm1, %v3845_v27 }
 0x826   :  { %v6869_v48 = vpop.f32.mrf.mxu1  ;;  %6891 = vmatmul.mubr.msk.f32.gmra.mxu0 %vm295_vm1, %v6866_v14 }
 0x828   :  { %v3855_v52 = vpop.f32.mrf.mxu1 }
 0x829   :  { %6893 = vmatprep.mubr.msk.f32.mxu0 %vm295_vm1, %v3855_v52 }
 0x82a   :  { %v6872_v3 = vpop.f32.mrf.mxu1  ;;  %6894 = vmatmul.mubr.msk.f32.gmra.mxu0 %vm295_vm1, %v6869_v48 }
 0x82c   :  { %v3865_v51 = vpop.f32.mrf.mxu1 }
 0x82d   :  { %6896 = vmatprep.mubr.msk.f32.mxu0 %vm295_vm1, %v3865_v51 }
 0x82e   :  { %v6875_v2 = vpop.f32.mrf.mxu1  ;;  %6897 = vmatmul.mubr.msk.f32.gmra.mxu0 %vm295_vm1, %v6872_v3 }
 0x830   :  { %v3875_v10 = vpop.f32.mrf.mxu1 }
 0x831   :  { %6899 = vmatprep.mubr.msk.f32.mxu0 %vm295_vm1, %v3875_v10 }
 0x832   :  { %6900 = vmatmul.mubr.msk.f32.gmra.mxu0 %vm295_vm1, %v6875_v2  ;;  %v6906_v28 = vpop.f32.mrf.mxu1 }
 0x834   :  { %v4224_v18 = vpop.f32.mrf.mxu1 }
 0x835   :  { %6930 = vmatprep.mubr.msk.f32.mxu0 %vm295_vm1, %v4224_v18  ;;  %v3597_v18 = vadd.f32 %v3596_v62, %v8828_v12 }
 0x836   :  { %v6909_v30 = vpop.f32.mrf.mxu1  ;;  %6931 = vmatmul.mubr.msk.f32.vlgmr.msra.gmra.mxu0 %vm295_vm1, %v6906_v28 }
 0x838   :  { %v4234_v16 = vpop.f32.mrf.mxu1 }
 0x839   :  { %6933 = vmatprep.mubr.msk.f32.mxu0 %vm295_vm1, %v4234_v16 }
 0x83a   :  { %v6912_v54 = vpop.f32.mrf.mxu1  ;;  %6934 = vmatmul.mubr.msk.f32.gmra.mxu0 %vm295_vm1, %v6909_v30  ;;  %v3602_v30 = vadd.f32 %v6828_v20, %v8826_v31  ;;  %v3617_v31 = vadd.f32 %v3616_v42, %v8836_v36  ;;  %v7244_v20 = vld [vmem:[%s9401_s10 + $0x10] sm:$0xff] }
 0x83c   :  { %v4244_v5 = vpop.f32.mrf.mxu1 }
 0x83d   :  { %6936 = vmatprep.mubr.msk.f32.mxu0 %vm295_vm1, %v4244_v5 }
 0x83e   :  { %v6915_v47 = vpop.f32.mrf.mxu1  ;;  %6937 = vmatmul.mubr.msk.f32.gmra.mxu0 %vm295_vm1, %v6912_v54 }
 0x840   :  { %v4254_v34 = vpop.f32.mrf.mxu1 }
 0x841   :  { %6939 = vmatprep.mubr.msk.f32.mxu0 %vm295_vm1, %v4254_v34  ;;  %v3607_v34 = vadd.f32 %v3606_v44, %v8832_v46 }
 0x842   :  { %v6918_v53 = vpop.f32.mrf.mxu1  ;;  %6940 = vmatmul.mubr.msk.f32.gmra.mxu0 %vm295_vm1, %v6915_v47 }
 0x844   :  { %v4264_v4 = vpop.f32.mrf.mxu1 }
 0x845   :  { %6942 = vmatprep.mubr.msk.f32.mxu0 %vm295_vm1, %v4264_v4  ;;  %v3612_v4 = vadd.f32 %v6831_v38, %v8830_v29  ;;  %v3622_v29 = vadd.f32 %v6834_v19, %v8834_v58  ;;  %v3627_v58 = vadd.f32 %v3626_v56, %v8840_v60  ;;  %v3632_v19 = vadd.f32 %v6837_v43, %v8838_v45 }
 0x846   :  { %v6921_v40 = vpop.f32.mrf.mxu1  ;;  %6943 = vmatmul.mubr.msk.f32.gmra.mxu0 %vm295_vm1, %v6918_v53  ;;  %v3637_v45 = vadd.f32 %v8892_v57, %v8844_v21  ;;  %v3642_v56 = vadd.f32 %v8890_v55, %v8842_v61  ;;  %v3647_v21 = vadd.f32 %v8896_v33, %v8848_v9  ;;  %v3657_v9 = vadd.f32 %v8900_v13, %v8852_v11 }
 0x847   :  { %v3667_v11 = vadd.f32 %v8904_v1, %v8856_v50  ;;  %v9046_v50 = vld [vmem:[%s9403_s9 + $0x18] sm:$0xff] }
 0x848   :  { %v4274_v22 = vpop.f32.mrf.mxu1 }
 0x849   :  { %6945 = vmatprep.mubr.msk.f32.mxu0 %vm295_vm1, %v4274_v22 }
 0x84a   :  { %v6924_v25 = vpop.f32.mrf.mxu1  ;;  %6946 = vmatmul.mubr.msk.f32.gmra.mxu0 %vm295_vm1, %v6921_v40 }
 0x84c   :  { %v4284_v32 = vpop.f32.mrf.mxu1 }
 0x84d   :  { %6948 = vmatprep.mubr.msk.f32.mxu0 %vm295_vm1, %v4284_v32 }
 0x84e   :  { %v6927_v35 = vpop.f32.mrf.mxu1  ;;  %6949 = vmatmul.mubr.msk.f32.gmra.mxu0 %vm295_vm1, %v6924_v25 }
 0x850   :  { %v4294_v41 = vpop.f32.mrf.mxu1 }
 0x851   :  { %6951 = vmatprep.mubr.msk.f32.mxu0 %vm295_vm1, %v4294_v41 }
 0x852   :  { %6952 = vmatmul.mubr.msk.f32.gmra.mxu0 %vm295_vm1, %v6927_v35 }
 0x8d6   :  { %v6880_v39 = vpop.f32.mrf.mxu0 }
 0x8d7   :  { %v4079_v5 = vadd.f32 %v6880_v39, %v3602_v30  ;;  %v3652_v30 = vadd.f32 %v8894_v6, %v8846_v8  ;;  %v3662_v8 = vadd.f32 %v8898_v23, %v8850_v63 }
 0x8d8   :  { %v3999_v59 = vpop.f32.mrf.mxu0 }
 0x8d9   :  { %v4078_v54 = vadd.f32 %v3999_v59, %v3597_v18  ;;  %v7246_v59 = vld [vmem:[%s9401_s10] sm:$0xff] }
 0x8da   :  { %v6883_v37 = vpop.f32.mrf.mxu0 }
 0x8db   :  { %v4081_v12 = vadd.f32 %v6883_v37, %v3612_v4 }
 0x8dc   :  { %v4009_v49 = vpop.f32.mrf.mxu0 }
 0x8dd   :  { %v4080_v25 = vadd.f32 %v4009_v49, %v3607_v34 }
 0x8de   :  { %v6886_v0 = vpop.f32.mrf.mxu0 }
 0x8df   :  { %v4083_v36 = vadd.f32 %v6886_v0, %v3622_v29 }
 0x8e0   :  { %v4019_v15 = vpop.f32.mrf.mxu0 }
 0x8e1   :  { %v4082_v62 = vadd.f32 %v4019_v15, %v3617_v31 }
 0x8e2   :  { %v6889_v26 = vpop.f32.mrf.mxu0 }
 0x8e3   :  { %v4085_v49 = vadd.f32 %v6889_v26, %v3632_v19 }
 0x8e4   :  { %v4029_v14 = vpop.f32.mrf.mxu0 }
 0x8e5   :  { %v4084_v37 = vadd.f32 %v4029_v14, %v3627_v58 }
 0x8e6   :  { %v6892_v27 = vpop.f32.mrf.mxu0 }
 0x8e7   :  { %v4087_v26 = vadd.f32 %v6892_v27, %v3642_v56 }
 0x8e8   :  { %v4039_v48 = vpop.f32.mrf.mxu0 }
 0x8e9   :  { %v4086_v14 = vadd.f32 %v4039_v48, %v3637_v45 }
 0x8ea   :  { %v8906_v52 = vpop.f32.mrf.mxu0 }
 0x8eb   :  { %v4089_v27 = vadd.f32 %v8906_v52, %v3652_v30 }
 0x8ec   :  { %v8908_v3 = vpop.f32.mrf.mxu0 }
 0x8ed   :  { %v4088_v48 = vadd.f32 %v8908_v3, %v3647_v21  ;;  %v3672_v3 = vadd.f32 %v8902_v7, %v8854_v24 }
 0x8ee   :  { %v8910_v51 = vpop.f32.mrf.mxu0 }
 0x8ef   :  { %v4091_v52 = vadd.f32 %v8910_v51, %v3662_v8 }
 0x8f0   :  { %v8912_v2 = vpop.f32.mrf.mxu0 }
 0x8f2   :  { %v8914_v10 = vpop.f32.mrf.mxu0 }
 0x8f3   :  { %v4093_v13 = vadd.f32 %v8914_v10, %v3672_v3 }
 0x8f4   :  { %v8916_v28 = vpop.f32.mrf.mxu0 }
 0x8f5   :  { %v4092_v4 = vadd.f32 %v8916_v28, %v3667_v11 }
 0x8f6   :  { %v6932_v16 = vpop.f32.mrf.mxu0 }
 0x8f7   :  { %v8924_v40 = vadd.f32 %v6932_v16, %v4079_v5  ;;  %v4090_v5 = vadd.f32 %v8912_v2, %v3657_v9  ;;  %v7248_v2 = vld [vmem:[%s9402_s8] ss:$0 sm:$0xff] }
 0x8f8   :  { %v4418_v47 = vpop.f32.mrf.mxu0 }
 0x8f9   :  { %v8921_v53 = vadd.f32 %v4418_v47, %v4078_v54 }
 0x8fa   :  { %v6935_v22 = vpop.f32.mrf.mxu0 }
 0x8fb   :  { %6962 = vmatprep.mubr.msk.f32.mxu1 %vm1936_vm2, %v8921_v53  ;;  %v8935_v46 = vadd.f32 %v6935_v22, %v4081_v12 }
 0x8fc   :  { %v4428_v32 = vpop.f32.mrf.mxu0  ;;  %6963 = vmatmul.mubr.msk.f32.vlgmr.msra.gmra.mxu1 %vm1936_vm2, %v8924_v40 }
 0x8fd   :  { %v8931_v35 = vadd.f32 %v4428_v32, %v4080_v25  ;;  %7043 = vmatpush3.msra.mxu1 %v8790_v17  ;;  %v7245_v17 = vld [vmem:[%s9401_s10 + $0x8] sm:$0xff] }
 0x8fe   :  { %v6938_v41 = vpop.f32.mrf.mxu0  ;;  %7044 = vmatprep.subr.mxu1 %v7244_v20 }
 0x8ff   :  { %6965 = vmatprep.mubr.msk.f32.mxu1 %vm1936_vm2, %v8931_v35  ;;  %7045 = vmatpush3.msra.mxu1 %v7244_v20  ;;  %v8951_v42 = vadd.f32 %v6938_v41, %v4083_v36 }
 0x900   :  { %v4438_v38 = vpop.f32.mrf.mxu0  ;;  %6966 = vmatmul.mubr.msk.f32.gmra.mxu1 %vm1936_vm2, %v8935_v46  ;;  %7046 = vmatprep.subr.mxu1 %v7245_v17 }
 0x901   :  { %v8948_v44 = vadd.f32 %v4438_v38, %v4082_v62  ;;  %7047 = vmatpush3.msra.mxu1 %v7245_v17 }
 0x902   :  { %v6941_v39 = vpop.f32.mrf.mxu0  ;;  %7048 = vmatprep.subr.mxu1 %v7246_v59 }
 0x903   :  { %6968 = vmatprep.mubr.msk.f32.mxu1 %vm1936_vm2, %v8948_v44  ;;  %7049 = vmatpush3.msra.mxu1 %v7246_v59  ;;  %v8966_v0 = vadd.f32 %v6941_v39, %v4085_v49 }
 0x904   :  { %v4448_v60 = vpop.f32.mrf.mxu0  ;;  %6969 = vmatmul.mubr.msk.f32.gmra.mxu1 %vm1936_vm2, %v8951_v42 }
 0x905   :  { %v8962_v43 = vadd.f32 %v4448_v60, %v4084_v37 }
 0x906   :  { %v6944_v15 = vpop.f32.mrf.mxu0 }
 0x907   :  { %6971 = vmatprep.mubr.msk.f32.mxu1 %vm1936_vm2, %v8962_v43  ;;  %v8976_v61 = vadd.f32 %v6944_v15, %v4087_v26 }
 0x908   :  { %v4458_v18 = vpop.f32.mrf.mxu0  ;;  %6972 = vmatmul.mubr.msk.f32.gmra.mxu1 %vm1936_vm2, %v8966_v0 }
 0x909   :  { %v4505_v57 = vadd.f32 %v4458_v18, %v4086_v14 }
 0x90a   :  { %v6947_v55 = vpop.f32.mrf.mxu0 }
 0x90b   :  { %6974 = vmatprep.mubr.msk.f32.mxu1 %vm1936_vm2, %v4505_v57  ;;  %v4508_v6 = vadd.f32 %v6947_v55, %v4089_v27 }
 0x90c   :  { %v4468_v16 = vpop.f32.mrf.mxu0  ;;  %6975 = vmatmul.mubr.msk.f32.gmra.mxu1 %vm1936_vm2, %v8976_v61 }
 0x90d   :  { %v4507_v33 = vadd.f32 %v4468_v16, %v4088_v48 }
 0x90e   :  { %v6950_v54 = vpop.f32.mrf.mxu0 }
 0x90f   :  { %6977 = vmatprep.mubr.msk.f32.mxu1 %vm1936_vm2, %v4507_v33  ;;  %v4510_v23 = vadd.f32 %v6950_v54, %v4091_v52 }
 0x910   :  { %v4478_v47 = vpop.f32.mrf.mxu0  ;;  %6978 = vmatmul.mubr.msk.f32.gmra.mxu1 %vm1936_vm2, %v4508_v6 }
 0x911   :  { %v4509_v63 = vadd.f32 %v4478_v47, %v4090_v5 }
 0x912   :  { %v6953_v34 = vpop.f32.mrf.mxu0 }
 0x913   :  { %v4512_v24 = vadd.f32 %v6953_v34, %v4093_v13  ;;  %6980 = vmatprep.mubr.msk.f32.mxu1 %vm1936_vm2, %v4509_v63 }
 0x914   :  { %v4488_v7 = vpop.f32.mrf.mxu0  ;;  %6981 = vmatmul.mubr.msk.f32.gmra.mxu1 %vm1936_vm2, %v4510_v23 }
 0x915   :  { %v4511_v51 = vadd.f32 %v4488_v7, %v4092_v4  ;;  %6986 = vmatprep.subr.mxu0 %v4512_v24 }
 0x916   :  { %6987 = vmatpush3.msra.mxu0 %v4512_v24 }
 0x917   :  { %6983 = vmatprep.mubr.msk.f32.mxu1 %vm1936_vm2, %v4511_v51  ;;  %6988 = vmatprep.subr.mxu0 %v4511_v51 }
 0x918   :  { %6984 = vmatmul.mubr.msk.f32.gmra.mxu1 %vm1936_vm2, %v4512_v24  ;;  %6989 = vmatpush3.msra.mxu0 %v4511_v51 }
 0x919   :  { %6990 = vmatprep.subr.mxu0 %v4510_v23  ;;  %7050 = vmatprep.mubr.msk.f32.mxu1 %vm1936_vm2, %v8921_v53 }
 0x91a   :  { %6991 = vmatpush3.msra.mxu0 %v4510_v23 }
 0x91b   :  { %6992 = vmatprep.subr.mxu0 %v4509_v63 }
 0x91c   :  { %6993 = vmatpush3.msra.mxu0 %v4509_v63  ;;  %7051 = vmatmul.mubr.msk.f32.vlgmr.msra.gmra.mxu1 %vm1936_vm2, %v8924_v40 }
 0x91d   :  { %6994 = vmatprep.subr.mxu0 %v4508_v6  ;;  %7053 = vmatprep.mubr.msk.f32.mxu1 %vm1936_vm2, %v8931_v35 }
 0x91e   :  { %6995 = vmatpush3.msra.mxu0 %v4508_v6 }
 0x91f   :  { %6996 = vmatprep.subr.mxu0 %v4507_v33 }
 0x920   :  { %6997 = vmatpush3.msra.mxu0 %v4507_v33  ;;  %7054 = vmatmul.mubr.msk.f32.gmra.mxu1 %vm1936_vm2, %v8935_v46 }
 0x921   :  { %6998 = vmatprep.subr.mxu0 %v8976_v61  ;;  %7056 = vmatprep.mubr.msk.f32.mxu1 %vm1936_vm2, %v8948_v44 }
 0x922   :  { %6999 = vmatpush3.msra.mxu0 %v8976_v61 }
 0x923   :  { %7000 = vmatprep.subr.mxu0 %v4505_v57 }
 0x924   :  { %7001 = vmatpush3.msra.mxu0 %v4505_v57  ;;  %7057 = vmatmul.mubr.msk.f32.gmra.mxu1 %vm1936_vm2, %v8951_v42 }
 0x925   :  { %7002 = vmatprep.subr.mxu0 %v8966_v0  ;;  %7059 = vmatprep.mubr.msk.f32.mxu1 %vm1936_vm2, %v8962_v43 }
 0x926   :  { %7003 = vmatpush3.msra.mxu0 %v8966_v0 }
 0x927   :  { %7004 = vmatprep.subr.mxu0 %v8962_v43 }
 0x928   :  { %7005 = vmatpush3.msra.mxu0 %v8962_v43  ;;  %7060 = vmatmul.mubr.msk.f32.gmra.mxu1 %vm1936_vm2, %v8966_v0 }
 0x929   :  { %7006 = vmatprep.subr.mxu0 %v8951_v42  ;;  %7062 = vmatprep.mubr.msk.f32.mxu1 %vm1936_vm2, %v4505_v57 }
 0x92a   :  { %7007 = vmatpush3.msra.mxu0 %v8951_v42 }
 0x92b   :  { %7008 = vmatprep.subr.mxu0 %v8948_v44 }
 0x92c   :  { %7009 = vmatpush3.msra.mxu0 %v8948_v44  ;;  %7063 = vmatmul.mubr.msk.f32.gmra.mxu1 %vm1936_vm2, %v8976_v61 }
 0x92d   :  { %7010 = vmatprep.subr.mxu0 %v8935_v46  ;;  %7065 = vmatprep.mubr.msk.f32.mxu1 %vm1936_vm2, %v4507_v33 }
 0x92e   :  { %7011 = vmatpush3.msra.mxu0 %v8935_v46 }
 0x92f   :  { %7012 = vmatprep.subr.mxu0 %v8931_v35 }
 0x930   :  { %7013 = vmatpush3.msra.mxu0 %v8931_v35  ;;  %7066 = vmatmul.mubr.msk.f32.gmra.mxu1 %vm1936_vm2, %v4508_v6 }
 0x931   :  { %7014 = vmatprep.subr.mxu0 %v8924_v40  ;;  %7068 = vmatprep.mubr.msk.f32.mxu1 %vm1936_vm2, %v4509_v63 }
 0x932   :  { %7015 = vmatpush3.msra.mxu0 %v8924_v40 }
 0x933   :  { %7016 = vmatprep.subr.mxu0 %v8921_v53 }
 0x934   :  { %7017 = vmatpush3.msra.mxu0 %v8921_v53  ;;  %7069 = vmatmul.mubr.msk.f32.gmra.mxu1 %vm1936_vm2, %v4510_v23 }
 0x935   :  { %7071 = vmatprep.mubr.msk.f32.mxu1 %vm1936_vm2, %v4511_v51  ;;  %7074 = vmatprep.subr.mxu0 %v9046_v50 }
 0x938   :  { %7072 = vmatmul.mubr.msk.f32.gmra.mxu1 %vm1936_vm2, %v4512_v24 }
 0x9bc   :  { %v6964_v1 = vpop.f32.mrf.mxu1 }
 0x9bd   :  { %v4633_v10 = vadd.f32 %v7248_v2, %v6964_v1 }
 0x9be   :  { %v4627_v28 = vpop.f32.mrf.mxu1 }
 0x9bf   :  { %v4628_v53 = vadd.f32 %v7248_v2, %v4627_v28  ;;  %4708 = vmax.xlane.f32.xlu1 %v4633_v10 }
 0x9c0   :  { %v6967_v40 = vpop.f32.mrf.mxu1 }
 0x9c1   :  { %v4643_v22 = vadd.f32 %v7248_v2, %v6967_v40  ;;  %4706 = vmax.xlane.f32.xlu0 %v4628_v53 }
 0x9c2   :  { %v4637_v25 = vpop.f32.mrf.mxu1 }
 0x9c3   :  { %v4638_v12 = vadd.f32 %v7248_v2, %v4637_v25  ;;  %4712 = vmax.xlane.f32.xlu1 %v4643_v22 }
 0x9c4   :  { %v6970_v32 = vpop.f32.mrf.mxu1 }
 0x9c5   :  { %v4653_v31 = vadd.f32 %v7248_v2, %v6970_v32  ;;  %4710 = vmax.xlane.f32.xlu0 %v4638_v12 }
 0x9c6   :  { %v4647_v35 = vpop.f32.mrf.mxu1 }
 0x9c7   :  { %v4648_v29 = vadd.f32 %v7248_v2, %v4647_v35  ;;  %4716 = vmax.xlane.f32.xlu1 %v4653_v31 }
 0x9c8   :  { %v6973_v46 = vpop.f32.mrf.mxu1 }
 0x9c9   :  { %v4663_v41 = vadd.f32 %v7248_v2, %v6973_v46  ;;  %4714 = vmax.xlane.f32.xlu0 %v4648_v29 }
 0x9ca   :  { %v4657_v20 = vpop.f32.mrf.mxu1 }
 0x9cb   :  { %v4658_v62 = vadd.f32 %v7248_v2, %v4657_v20  ;;  %4720 = vmax.xlane.f32.xlu1 %v4663_v41 }
 0x9cc   :  { %v6976_v36 = vpop.f32.mrf.mxu1 }
 0x9cd   :  { %v9053_v38 = vadd.f32 %v7248_v2, %v6976_v36  ;;  %4718 = vmax.xlane.f32.xlu0 %v4658_v62 }
 0x9ce   :  { %v4667_v17 = vpop.f32.mrf.mxu1 }
 0x9cf   :  { %v4668_v58 = vadd.f32 %v7248_v2, %v4667_v17  ;;  %4724 = vmax.xlane.f32.xlu1 %v9053_v38 }
 0x9d0   :  { %v6979_v44 = vpop.f32.mrf.mxu1 }
 0x9d1   :  { %v9056_v19 = vadd.f32 %v7248_v2, %v6979_v44  ;;  %4722 = vmax.xlane.f32.xlu0 %v4668_v58 }
 0x9d2   :  { %v4677_v42 = vpop.f32.mrf.mxu1 }
 0x9d3   :  { %v9058_v39 = vadd.f32 %v7248_v2, %v4677_v42  ;;  %4728 = vmax.xlane.f32.xlu1 %v9056_v19 }
 0x9d4   :  { %v6982_v59 = vpop.f32.mrf.mxu1 }
 0x9d5   :  { %v9061_v37 = vadd.f32 %v7248_v2, %v6982_v59  ;;  %4726 = vmax.xlane.f32.xlu0 %v9058_v39 }
 0x9d6   :  { %v4687_v49 = vpop.f32.mrf.mxu1 }
 0x9d7   :  { %v9064_v60 = vadd.f32 %v7248_v2, %v4687_v49  ;;  %4732 = vmax.xlane.f32.xlu1 %v9061_v37 }
 0x9d8   :  { %v6985_v45 = vpop.f32.mrf.mxu1 }
 0x9d9   :  { %v9067_v43 = vadd.f32 %v7248_v2, %v6985_v45  ;;  %4730 = vmax.xlane.f32.xlu0 %v9064_v60 }
 0x9da   :  { %v4697_v56 = vpop.f32.mrf.mxu1 }
 0x9db   :  { %v9070_v0 = vadd.f32 %v7248_v2, %v4697_v56  ;;  %4736 = vmax.xlane.f32.xlu1 %v9067_v43 }
 0x9dd   :  { %4734 = vmax.xlane.f32.xlu0 %v9070_v0 }
 0xa48   :  { %v4709_v15 = vpop.xlane.xlu1 %4708 }
 0xa49   :  { %v4739_v14 = vsub.f32 %v4633_v10, %v4709_v15 }
 0xa4a   :  { %v4707_v26 = vpop.xlane.xlu0 %4706 }
 0xa4b   :  { %v4756_v18 = vmul.f32 1.442695, %v4739_v14  ;;  %v4738_v21 = vsub.f32 %v4628_v53, %v4707_v26  ;;  %v7249_v26 = vld [vmem:[%s9405_s6 + $0x8] sm:$0xff] }
 0xa4c   :  { %v4713_v57 = vpop.xlane.xlu1 %4712 }
 0xa4d   :  { %7174 = vpow2.f32 %v4756_v18  ;;  %v4754_v30 = vmul.f32 1.442695, %v4738_v21  ;;  %v4741_v61 = vsub.f32 %v4643_v22, %v4713_v57  ;;  %v7250_v57 = vld [vmem:[%s9404_s5] sm:$0xff] }
 0xa4e   :  { %v4711_v55 = vpop.xlane.xlu0 %4710 }
 0xa4f   :  { %7176 = vpow2.f32 %v4754_v30  ;;  %v4740_v48 = vsub.f32 %v4638_v12, %v4711_v55  ;;  %v4760_v9 = vmul.f32 1.442695, %v4741_v61  ;;  %v7251_v61 = vld [vmem:[%s9405_s6] sm:$0xff] }
 0xa50   :  { %v4717_v27 = vpop.xlane.xlu1 %4716 }
 0xa51   :  { %v4758_v16 = vmul.f32 1.442695, %v4740_v48  ;;  %v4743_v33 = vsub.f32 %v4653_v31, %v4717_v27  ;;  %v7252_v48 = vld [vmem:[%s9404_s5 + $0x8] sm:$0xff] }
 0xa52   :  { %v4715_v8 = vpop.xlane.xlu0 %4714 }
 0xa53   :  { %7178 = vpow2.f32 %v4758_v16  ;;  %v4742_v6 = vsub.f32 %v4648_v29, %v4715_v8  ;;  %v4764_v5 = vmul.f32 1.442695, %v4743_v33  ;;  %v7253_v8 = vld [vmem:[%s9404_s5 + $0x10] sm:$0xff] }
 0xa54   :  { %v4721_v54 = vpop.xlane.xlu1 %4720  ;;  %7180 = vpow2.f32 %v4760_v9 }
 0xa55   :  { %v4762_v3 = vmul.f32 1.442695, %v4742_v6  ;;  %v4745_v52 = vsub.f32 %v4663_v41, %v4721_v54  ;;  %v7254_v54 = vld [vmem:[%s9405_s6 + $0x10] sm:$0xff] }
 0xa56   :  { %v4719_v47 = vpop.xlane.xlu0 %4718 }
 0xa57   :  { %7182 = vpow2.f32 %v4762_v3  ;;  %v4744_v11 = vsub.f32 %v4658_v62, %v4719_v47  ;;  %v4768_v34 = vmul.f32 1.442695, %v4745_v52  ;;  %v7255_v52 = vld [vmem:[%s9404_s5 + $0x18] sm:$0xff] }
 0xa58   :  { %v4725_v13 = vpop.xlane.xlu1 %4724  ;;  %7184 = vpow2.f32 %v4764_v5 }
 0xa59   :  { %v4766_v63 = vmul.f32 1.442695, %v4744_v11  ;;  %v4747_v4 = vsub.f32 %v9053_v38, %v4725_v13 }
 0xa5a   :  { %v9074_v23 = vpop.eup %7174  ;;  %v4723_v24 = vpop.xlane.xlu0 %4722 }
 0xa5b   :  { %7186 = vpow2.f32 %v4766_v63  ;;  %v4746_v7 = vsub.f32 %v4668_v58, %v4723_v24  ;;  %4852 = vrot.lane.b32.xlu1 %v9074_v23, %s7301_s29  ;;  %v4772_v10 = vmul.f32 1.442695, %v4747_v4  ;;  %v4835_v27 = vmul.f32 %v7252_v48, %v9074_v23  ;;  %v7256_v63 = vld [vmem:[%s9403_s9 + $0x10] sm:$0xff]  ;;  %v7259_v24 = vld [vmem:[%s9405_s6 + $0x20] sm:$0xff] }
 0xa5c   :  { %v9079_v51 = vpop.eup %7176  ;;  %v4729_v1 = vpop.xlane.xlu1 %4728  ;;  %7188 = vpow2.f32 %v4768_v34  ;;  %v7273_v48 = vld [vmem:[%s9405_s6 + $0x50] sm:$0xff] }
 0xa5d   :  { %v4770_v2 = vmul.f32 1.442695, %v4746_v7  ;;  %4850 = vrot.lane.b32.xlu0 %v9079_v51, %s7301_s29  ;;  %v4749_v28 = vsub.f32 %v9056_v19, %v4729_v1  ;;  %v4834_v30 = vmul.f32 %v7250_v57, %v9079_v51 }
 0xa5e   :  { %v4727_v53 = vpop.xlane.xlu0 %4726 }
 0xa5f   :  { %7190 = vpow2.f32 %v4770_v2  ;;  %v4748_v40 = vsub.f32 %v9058_v39, %v4727_v53  ;;  %v4776_v32 = vmul.f32 1.442695, %v4749_v28  ;;  %v7261_v53 = vld [vmem:[%s9403_s9] sm:$0xff] }
 0xa60   :  { %v9085_v22 = vpop.eup %7178  ;;  %v4733_v25 = vpop.xlane.xlu1 %4732  ;;  %7192 = vpow2.f32 %v4772_v10 }
 0xa61   :  { %v4774_v12 = vmul.f32 1.442695, %v4748_v40  ;;  %4854 = vrot.lane.b32.xlu1 %v9085_v22, %s7301_s29  ;;  %v4751_v31 = vsub.f32 %v9061_v37, %v4733_v25  ;;  %v9090_v29 = vpop.eup %7180  ;;  %v4836_v6 = vmul.f32 %v7253_v8, %v9085_v22  ;;  %v7262_v40 = vld [vmem:[%s9404_s5 + $0x28] sm:$0xff]  ;;  %v7274_v8 = vld [vmem:[%s9404_s5 + $0x58] sm:$0xff] }
 0xa62   :  { %v4731_v35 = vpop.xlane.xlu0 %4730  ;;  %v4837_v47 = vmul.f32 %v7255_v52, %v9090_v29  ;;  %v7263_v25 = vld [vmem:[%s9405_s6 + $0x28] sm:$0xff]  ;;  %v7277_v52 = vld [vmem:[%s9405_s6 + $0x60] sm:$0xff] }
 0xa63   :  { %7194 = vpow2.f32 %v4774_v12  ;;  %v4750_v46 = vsub.f32 %v9064_v60, %v4731_v35  ;;  %v4780_v36 = vmul.f32 1.442695, %v4751_v31  ;;  %v7265_v35 = vld [vmem:[%s9405_s6 + $0x30] sm:$0xff] }
 0xa64   :  { %v9093_v41 = vpop.eup %7182  ;;  %v4737_v20 = vpop.xlane.xlu1 %4736  ;;  %7196 = vpow2.f32 %v4776_v32  ;;  %v7264_v32 = vld [vmem:[%s9404_s5 + $0x30] sm:$0xff] }
 0xa65   :  { %v4778_v62 = vmul.f32 1.442695, %v4750_v46  ;;  %4856 = vrot.lane.b32.xlu1 %v9090_v29, %s7301_s29  ;;  %4858 = vrot.lane.b32.xlu0 %v9093_v41, %s7301_s29  ;;  %v9099_v17 = vpop.eup %7184  ;;  %v4753_v58 = vsub.f32 %v9067_v43, %v4737_v20 }
 0xa66   :  { %v4735_v38 = vpop.xlane.xlu0 %4734 }
 0xa67   :  { %7198 = vpow2.f32 %v4778_v62  ;;  %v4752_v44 = vsub.f32 %v9070_v0, %v4735_v38  ;;  %v4784_v59 = vmul.f32 1.442695, %v4753_v58 }
 0xa68   :  { %v9103_v19 = vpop.eup %7186  ;;  %7200 = vpow2.f32 %v4780_v36  ;;  %v7266_v36 = vld [vmem:[%s9404_s5 + $0x38] sm:$0xff] }
 0xa69   :  { %v4782_v42 = vmul.f32 1.442695, %v4752_v44  ;;  %4860 = vrot.lane.b32.xlu1 %v9099_v17, %s7301_s29  ;;  %4862 = vrot.lane.b32.xlu0 %v9103_v19, %s7301_s29  ;;  %v9109_v39 = vpop.eup %7188  ;;  %v4840_v31 = vmul.f32 %v7264_v32, %v9103_v19  ;;  %v7268_v44 = vld [vmem:[%s9404_s5 + $0x40] sm:$0xff] }
 0xa6a   :  { %v4841_v38 = vmul.f32 %v7266_v36, %v9109_v39 }
 0xa6b   :  { %7202 = vpow2.f32 %v4782_v42  ;;  %v7269_v42 = vld [vmem:[%s9405_s6 + $0x40] sm:$0xff] }
 0xa6c   :  { %v9111_v37 = vpop.eup %7190  ;;  %7204 = vpow2.f32 %v4784_v59 }
 0xa6d   :  { %4864 = vrot.lane.b32.xlu1 %v9109_v39, %s7301_s29  ;;  %4866 = vrot.lane.b32.xlu0 %v9111_v37, %s7301_s29  ;;  %v9117_v49 = vpop.eup %7192 }
 0xa70   :  { %v9119_v60 = vpop.eup %7194 }
 0xa71   :  { %4868 = vrot.lane.b32.xlu1 %v9117_v49, %s7301_s29  ;;  %4870 = vrot.lane.b32.xlu0 %v9119_v60, %s7301_s29  ;;  %v9125_v45 = vpop.eup %7196 }
 0xa74   :  { %v9127_v43 = vpop.eup %7198 }
 0xa75   :  { %4872 = vrot.lane.b32.xlu1 %v9125_v45, %s7301_s29  ;;  %4874 = vrot.lane.b32.xlu0 %v9127_v43, %s7301_s29  ;;  %v9133_v56 = vpop.eup %7200 }
 0xa78   :  { %v9135_v0 = vpop.eup %7202 }
 0xa79   :  { %4876 = vrot.lane.b32.xlu1 %v9133_v56, %s7301_s29  ;;  %4878 = vrot.lane.b32.xlu0 %v9135_v0, %s7301_s29  ;;  %v9141_v15 = vpop.eup %7204 }
 0xa7d   :  { %4880 = vrot.lane.b32.xlu1 %v9141_v15, %s7301_s29 }
 0xa98   :  { %4786 = vadd.xlane.f32.xlu0 %v9079_v51  ;;  %v7260_v51 = vld [vmem:[%s9403_s9 + $0x8] sm:$0xff] }
 0xa9c   :  { %4790 = vadd.xlane.f32.xlu0 %v9085_v22  ;;  %v4839_v22 = vmul.f32 %v7262_v40, %v9099_v17 }
 0xaa0   :  { %4792 = vadd.xlane.f32.xlu0 %v9090_v29 }
 0xaa1   :  { %4788 = vadd.xlane.f32.xlu1 %v9074_v23  ;;  %v7257_v23 = vld [vmem:[%s9405_s6 + $0x18] sm:$0xff] }
 0xaa4   :  { %4794 = vadd.xlane.f32.xlu0 %v9093_v41 }
 0xaa5   :  { %4796 = vadd.xlane.f32.xlu1 %v9099_v17  ;;  %v7267_v17 = vld [vmem:[%s9405_s6 + $0x38] sm:$0xff] }
 0xaa8   :  { %4798 = vadd.xlane.f32.xlu0 %v9103_v19  ;;  %v4842_v19 = vmul.f32 %v7268_v44, %v9111_v37 }
 0xaa9   :  { %4800 = vadd.xlane.f32.xlu1 %v9109_v39 }
 0xaac   :  { %4802 = vadd.xlane.f32.xlu0 %v9111_v37  ;;  %v7271_v37 = vld [vmem:[%s9405_s6 + $0x48] sm:$0xff] }
 0xaad   :  { %4804 = vadd.xlane.f32.xlu1 %v9117_v49 }
 0xab0   :  { %4806 = vadd.xlane.f32.xlu0 %v9119_v60 }
 0xab1   :  { %4808 = vadd.xlane.f32.xlu1 %v9125_v45 }
 0xab4   :  { %4810 = vadd.xlane.f32.xlu0 %v9127_v43 }
 0xab5   :  { %4812 = vadd.xlane.f32.xlu1 %v9133_v56 }
 0xab8   :  { %4814 = vadd.xlane.f32.xlu0 %v9135_v0 }
 0xab9   :  { %4816 = vadd.xlane.f32.xlu1 %v9141_v15 }
 0xacd   :  { %v4853_v14 = vpop.permute.xlu1 %4852 }
 0xace   :  { %v4883_v18 = vmul.f32 %v7249_v26, %v4853_v14 }
 0xacf   :  { %v4851_v21 = vpop.permute.xlu0 %4850 }
 0xad0   :  { %v4882_v55 = vmul.f32 %v7251_v61, %v4851_v21  ;;  %v4899_v9 = vadd.f32 %v4883_v18, %v4835_v27  ;;  %v7270_v21 = vld [vmem:[%s9404_s5 + $0x48] sm:$0xff]  ;;  %v7272_v61 = vld [vmem:[%s9404_s5 + $0x50] sm:$0xff] }
 0xad1   :  { %v4843_v57 = vmul.f32 %v7270_v21, %v9117_v49 }
 0xad2   :  { %v4898_v16 = vadd.f32 %v4882_v55, %v4834_v30  ;;  %v4844_v55 = vmul.f32 %v7272_v61, %v9119_v60  ;;  %v7275_v60 = vld [vmem:[%s9405_s6 + $0x58] sm:$0xff] }
 0xad3   :  { %v4855_v33 = vpop.permute.xlu1 %4854 }
 0xad4   :  { %v4884_v3 = vmul.f32 %v7254_v54, %v4855_v33  ;;  %7018 = vmatprep.mubr.f32.mxu0 %v4898_v16 }
 0xad5   :  { %7019 = vmatmul.mubr.f32.vlgmr.msra.gmra.mxu0 %v4899_v9 }
 0xad6   :  { %v4900_v5 = vadd.f32 %v4884_v3, %v4836_v6  ;;  %7075 = vmatpush3.msra.mxu0 %v9046_v50  ;;  %v7258_v50 = vld [vmem:[%s9404_s5 + $0x20] sm:$0xff]  ;;  %v4845_v6 = vmul.f32 %v7274_v8, %v9125_v45 }
 0xad7   :  { %v4857_v11 = vpop.permute.xlu1 %4856  ;;  %v4859_v13 = vpop.permute.xlu0 %4858  ;;  %7076 = vmatprep.subr.mxu0 %v7256_v63  ;;  %v4838_v4 = vmul.f32 %v7258_v50, %v9093_v41  ;;  %v7276_v3 = vld [vmem:[%s9404_s5 + $0x60] sm:$0xff] }
 0xad8   :  { %v4885_v34 = vmul.f32 %v7257_v23, %v4857_v11  ;;  %v4886_v7 = vmul.f32 %v7259_v24, %v4859_v13  ;;  %7021 = vmatprep.mubr.f32.mxu0 %v4900_v5  ;;  %7077 = vmatpush3.msra.mxu0 %v7256_v63  ;;  %v4846_v5 = vmul.f32 %v7276_v3, %v9127_v43  ;;  %v7278_v23 = vld [vmem:[%s9404_s5 + $0x68] sm:$0xff] }
 0xad9   :  { %7078 = vmatprep.subr.mxu0 %v7260_v51  ;;  %v7279_v43 = vld [vmem:[%s9405_s6 + $0x68] sm:$0xff] }
 0xada   :  { %v4901_v1 = vadd.f32 %v4885_v34, %v4837_v47  ;;  %v4902_v2 = vadd.f32 %v4886_v7, %v4838_v4  ;;  %7079 = vmatpush3.msra.mxu0 %v7260_v51  ;;  %v4847_v34 = vmul.f32 %v7278_v23, %v9133_v56  ;;  %v7280_v4 = vld [vmem:[%s9404_s5 + $0x70] sm:$0xff] }
 0xadb   :  { %v4861_v10 = vpop.permute.xlu1 %4860  ;;  %v4863_v28 = vpop.permute.xlu0 %4862  ;;  %7080 = vmatprep.subr.mxu0 %v7261_v53  ;;  %v4848_v24 = vmul.f32 %v7280_v4, %v9135_v0  ;;  %v7281_v7 = vld [vmem:[%s9405_s6 + $0x70] sm:$0xff]  ;;  %v7283_v0 = vld [vmem:[%s9405_s6 + $0x78] sm:$0xff] }
 0xadc   :  { %v4887_v12 = vmul.f32 %v7263_v25, %v4861_v10  ;;  %v4888_v29 = vmul.f32 %v7265_v35, %v4863_v28  ;;  %7022 = vmatmul.mubr.f32.gmra.mxu0 %v4901_v1  ;;  %v7282_v10 = vld [vmem:[%s9404_s5 + $0x78] sm:$0xff] }
 0xadd   :  { %7024 = vmatprep.mubr.f32.mxu0 %v4902_v2  ;;  %7081 = vmatpush3.msra.mxu0 %v7261_v53  ;;  %v4849_v28 = vmul.f32 %v7282_v10, %v9141_v15 }
 0xade   :  { %v4903_v46 = vadd.f32 %v4887_v12, %v4839_v22  ;;  %v4904_v41 = vadd.f32 %v4888_v29, %v4840_v31 }
 0xadf   :  { %v4865_v20 = vpop.permute.xlu1 %4864  ;;  %v4867_v62 = vpop.permute.xlu0 %4866 }
 0xae0   :  { %v4889_v58 = vmul.f32 %v7267_v17, %v4865_v20  ;;  %v4890_v59 = vmul.f32 %v7269_v42, %v4867_v62  ;;  %7025 = vmatmul.mubr.f32.gmra.mxu0 %v4903_v46 }
 0xae1   :  { %7027 = vmatprep.mubr.f32.mxu0 %v4904_v41 }
 0xae2   :  { %v4905_v14 = vadd.f32 %v4889_v58, %v4841_v38  ;;  %v4906_v39 = vadd.f32 %v4890_v59, %v4842_v19 }
 0xae3   :  { %v4869_v26 = vpop.permute.xlu1 %4868  ;;  %v4871_v18 = vpop.permute.xlu0 %4870 }
 0xae4   :  { %v4891_v30 = vmul.f32 %v7271_v37, %v4869_v26  ;;  %v4892_v27 = vmul.f32 %v7273_v48, %v4871_v18  ;;  %7028 = vmatmul.mubr.f32.gmra.mxu0 %v4905_v14 }
 0xae5   :  { %7030 = vmatprep.mubr.f32.mxu0 %v4906_v39 }
 0xae6   :  { %v4907_v16 = vadd.f32 %v4891_v30, %v4843_v57  ;;  %v4908_v49 = vadd.f32 %v4892_v27, %v4844_v55 }
 0xae7   :  { %v4873_v9 = vpop.permute.xlu1 %4872  ;;  %v4875_v33 = vpop.permute.xlu0 %4874 }
 0xae8   :  { %v4893_v54 = vmul.f32 %v7275_v60, %v4873_v9  ;;  %v4894_v47 = vmul.f32 %v7277_v52, %v4875_v33  ;;  %7031 = vmatmul.mubr.f32.gmra.mxu0 %v4907_v16 }
 0xae9   :  { %7033 = vmatprep.mubr.f32.mxu0 %v4908_v49 }
 0xaea   :  { %v4909_v11 = vadd.f32 %v4893_v54, %v4845_v6  ;;  %v4910_v45 = vadd.f32 %v4894_v47, %v4846_v5 }
 0xaeb   :  { %v4877_v13 = vpop.permute.xlu1 %4876  ;;  %v4879_v63 = vpop.permute.xlu0 %4878 }
 0xaec   :  { %v4895_v50 = vmul.f32 %v7279_v43, %v4877_v13  ;;  %v4896_v51 = vmul.f32 %v7281_v7, %v4879_v63  ;;  %7034 = vmatmul.mubr.f32.gmra.mxu0 %v4909_v11 }
 0xaed   :  { %7036 = vmatprep.mubr.f32.mxu0 %v4910_v45 }
 0xaee   :  { %v4911_v1 = vadd.f32 %v4895_v50, %v4847_v34  ;;  %v4912_v56 = vadd.f32 %v4896_v51, %v4848_v24 }
 0xaef   :  { %v4881_v2 = vpop.permute.xlu1 %4880 }
 0xaf0   :  { %v4897_v53 = vmul.f32 %v7283_v0, %v4881_v2  ;;  %7037 = vmatmul.mubr.f32.gmra.mxu0 %v4911_v1 }
 0xaf1   :  { %7039 = vmatprep.mubr.f32.mxu0 %v4912_v56 }
 0xaf2   :  { %v4913_v40 = vadd.f32 %v4897_v53, %v4849_v28 }
 0xaf4   :  { %7040 = vmatmul.mubr.f32.gmra.mxu0 %v4913_v40 }
 0xb21   :  { %v4787_v22 = vpop.xlane.xlu0 %4786 }
 0xb22   :  { %7206 = vrcp.f32 %v4787_v22  ;;  %v7052_v22 = vpop.f32.mrf.mxu1 }
 0xb25   :  { %v4791_v25 = vpop.xlane.xlu0 %4790 }
 0xb29   :  { %v4793_v12 = vpop.xlane.xlu0 %4792 }
 0xb2a   :  { %v4789_v32 = vpop.xlane.xlu1 %4788 }
 0xb2b   :  { %7208 = vrcp.f32 %v4789_v32 }
 0xb2c   :  { %7210 = vrcp.f32 %v4791_v25  ;;  %v5141_v25 = vpop.f32.mrf.mxu1 }
 0xb2d   :  { %v4795_v31 = vpop.xlane.xlu0 %4794  ;;  %7212 = vrcp.f32 %v4793_v12 }
 0xb2e   :  { %v4797_v35 = vpop.xlane.xlu1 %4796  ;;  %7214 = vrcp.f32 %v4795_v31  ;;  %v7055_v12 = vpop.f32.mrf.mxu1 }
 0xb2f   :  { %7216 = vrcp.f32 %v4797_v35  ;;  %v7207_v62 = vpop.eup %7206 }
 0xb30   :  { %v5151_v32 = vpop.f32.mrf.mxu1 }
 0xb31   :  { %v4799_v29 = vpop.xlane.xlu0 %4798 }
 0xb32   :  { %v4801_v46 = vpop.xlane.xlu1 %4800  ;;  %7218 = vrcp.f32 %v4799_v29  ;;  %v7058_v31 = vpop.f32.mrf.mxu1 }
 0xb33   :  { %7220 = vrcp.f32 %v4801_v46 }
 0xb34   :  { %v5161_v35 = vpop.f32.mrf.mxu1 }
 0xb35   :  { %v4803_v15 = vpop.xlane.xlu0 %4802 }
 0xb36   :  { %v4805_v41 = vpop.xlane.xlu1 %4804  ;;  %7222 = vrcp.f32 %v4803_v15  ;;  %v7061_v29 = vpop.f32.mrf.mxu1 }
 0xb37   :  { %7224 = vrcp.f32 %v4805_v41 }
 0xb38   :  { %v7209_v38 = vpop.eup %7208  ;;  %v5171_v15 = vpop.f32.mrf.mxu1 }
 0xb39   :  { %v4807_v44 = vpop.xlane.xlu0 %4806  ;;  %v7211_v59 = vpop.eup %7210 }
 0xb3a   :  { %v4809_v19 = vpop.xlane.xlu1 %4808  ;;  %v7213_v39 = vpop.eup %7212  ;;  %7226 = vrcp.f32 %v4807_v44 }
 0xb3b   :  { %v7215_v30 = vpop.eup %7214  ;;  %7228 = vrcp.f32 %v4809_v19 }
 0xb3c   :  { %v7217_v55 = vpop.eup %7216 }
 0xb3d   :  { %v4811_v18 = vpop.xlane.xlu0 %4810 }
 0xb3e   :  { %v4813_v37 = vpop.xlane.xlu1 %4812  ;;  %7230 = vrcp.f32 %v4811_v18 }
 0xb3f   :  { %v7219_v49 = vpop.eup %7218  ;;  %7232 = vrcp.f32 %v4813_v37 }
 0xb40   :  { %v7221_v8 = vpop.eup %7220 }
 0xb41   :  { %v4815_v9 = vpop.xlane.xlu0 %4814 }
 0xb42   :  { %v4817_v6 = vpop.xlane.xlu1 %4816  ;;  %7234 = vrcp.f32 %v4815_v9  ;;  %v7289_v9 = vld [vmem:[%s9406_s11 + $0x20] sm:$0xff] }
 0xb43   :  { %v7223_v5 = vpop.eup %7222  ;;  %7236 = vrcp.f32 %v4817_v6 }
 0xb44   :  { %v7225_v47 = vpop.eup %7224 }
 0xb47   :  { %v7227_v63 = vpop.eup %7226 }
 0xb48   :  { %v7229_v34 = vpop.eup %7228 }
 0xb4b   :  { %v7231_v24 = vpop.eup %7230 }
 0xb4c   :  { %v7233_v51 = vpop.eup %7232 }
 0xb4f   :  { %v7235_v10 = vpop.eup %7234 }
 0xb50   :  { %v7237_v0 = vpop.eup %7236 }
 0xb95   :  { %v7020_v20 = vpop.f32.mrf.mxu0 }
 0xb96   :  { %v5060_v58 = vmul.f32 %v7209_v38, %v7020_v20 }
 0xb97   :  { %v4980_v36 = vpop.f32.mrf.mxu0 }
 0xb98   :  { %v5059_v17 = vmul.f32 %v7207_v62, %v4980_v36  ;;  %v7284_v62 = vld [vmem:[%s9406_s11 + $0x8] sm:$0xff] }
 0xb9a   :  { %7082 = vmatprep.mubr.msk.f32.mxu0 %vm1936_vm2, %v5059_v17  ;;  %v7064_v17 = vpop.f32.mrf.mxu1 }
 0xb9b   :  { %7083 = vmatmul.mubr.msk.f32.vlgmr.msra.gmra.mxu0 %vm1936_vm2, %v5060_v58  ;;  %v7285_v58 = vld [vmem:[%s9406_s11] sm:$0xff] }
 0xb9c   :  { %v7023_v42 = vpop.f32.mrf.mxu0 }
 0xb9d   :  { %v5062_v21 = vmul.f32 %v7213_v39, %v7023_v42  ;;  %v7286_v39 = vld [vmem:[%s9406_s11 + $0x18] sm:$0xff] }
 0xb9e   :  { %v4990_v14 = vpop.f32.mrf.mxu0 }
 0xb9f   :  { %v5061_v26 = vmul.f32 %v7211_v59, %v4990_v14  ;;  %v5181_v59 = vpop.f32.mrf.mxu1 }
 0xba0   :  { %v7026_v57 = vpop.f32.mrf.mxu0 }
 0xba1   :  { %7085 = vmatprep.mubr.msk.f32.mxu0 %vm1936_vm2, %v5061_v26  ;;  %v5064_v27 = vmul.f32 %v7217_v55, %v7026_v57  ;;  %v7287_v57 = vld [vmem:[%s9406_s11 + $0x10] sm:$0xff] }
 0xba2   :  { %v5000_v61 = vpop.f32.mrf.mxu0  ;;  %7086 = vmatmul.mubr.msk.f32.gmra.mxu0 %vm1936_vm2, %v5062_v21 }
 0xba3   :  { %v5063_v48 = vmul.f32 %v7215_v30, %v5000_v61  ;;  %v7067_v61 = vpop.f32.mrf.mxu1 }
 0xba4   :  { %v7029_v16 = vpop.f32.mrf.mxu0 }
 0xba5   :  { %7088 = vmatprep.mubr.msk.f32.mxu0 %vm1936_vm2, %v5063_v48  ;;  %v5066_v54 = vmul.f32 %v7221_v8, %v7029_v16  ;;  %v7288_v48 = vld [vmem:[%s9406_s11 + $0x28] sm:$0xff]  ;;  %v5191_v6 = vpop.f32.mrf.mxu1 }
 0xba6   :  { %v5010_v33 = vpop.f32.mrf.mxu0  ;;  %7089 = vmatmul.mubr.msk.f32.gmra.mxu0 %vm1936_vm2, %v5064_v27 }
 0xba7   :  { %v5065_v60 = vmul.f32 %v7219_v49, %v5010_v33 }
 0xba8   :  { %v7032_v3 = vpop.f32.mrf.mxu0 }
 0xba9   :  { %7091 = vmatprep.mubr.msk.f32.mxu0 %vm1936_vm2, %v5065_v60  ;;  %v5068_v45 = vmul.f32 %v7225_v47, %v7032_v3  ;;  %v7291_v47 = vld [vmem:[%s9406_s11 + $0x30] sm:$0xff] }
 0xbaa   :  { %v5020_v52 = vpop.f32.mrf.mxu0  ;;  %7092 = vmatmul.mubr.msk.f32.gmra.mxu0 %vm1936_vm2, %v5066_v54  ;;  %v7290_v54 = vld [vmem:[%s9406_s11 + $0x38] sm:$0xff] }
 0xbab   :  { %v5067_v11 = vmul.f32 %v7223_v5, %v5020_v52 }
 0xbac   :  { %v7035_v13 = vpop.f32.mrf.mxu0 }
 0xbad   :  { %7094 = vmatprep.mubr.msk.f32.mxu0 %vm1936_vm2, %v5067_v11  ;;  %v5070_v50 = vmul.f32 %v7229_v34, %v7035_v13  ;;  %v7070_v13 = vpop.f32.mrf.mxu1 }
 0xbae   :  { %v5030_v23 = vpop.f32.mrf.mxu0  ;;  %7095 = vmatmul.mubr.msk.f32.gmra.mxu0 %vm1936_vm2, %v5068_v45 }
 0xbaf   :  { %v5069_v43 = vmul.f32 %v7227_v63, %v5030_v23  ;;  %v7292_v23 = vld [vmem:[%s9406_s11 + $0x48] sm:$0xff] }
 0xbb0   :  { %v7038_v4 = vpop.f32.mrf.mxu0 }
 0xbb1   :  { %7097 = vmatprep.mubr.msk.f32.mxu0 %vm1936_vm2, %v5069_v43  ;;  %v5072_v56 = vmul.f32 %v7233_v51, %v7038_v4  ;;  %v7293_v4 = vld [vmem:[%s9406_s11 + $0x40] sm:$0xff]  ;;  %v5201_v51 = vpop.f32.mrf.mxu1 }
 0xbb2   :  { %v5040_v7 = vpop.f32.mrf.mxu0  ;;  %7098 = vmatmul.mubr.msk.f32.gmra.mxu0 %vm1936_vm2, %v5070_v50 }
 0xbb3   :  { %v5071_v1 = vmul.f32 %v7231_v24, %v5040_v7 }
 0xbb4   :  { %v7041_v2 = vpop.f32.mrf.mxu0 }
 0xbb5   :  { %7100 = vmatprep.mubr.msk.f32.mxu0 %vm1936_vm2, %v5071_v1  ;;  %v5074_v40 = vmul.f32 %v7237_v0, %v7041_v2  ;;  %v7295_v0 = vld [vmem:[%s9406_s11 + $0x50] sm:$0xff] }
 0xbb6   :  { %v5050_v28 = vpop.f32.mrf.mxu0  ;;  %7101 = vmatmul.mubr.msk.f32.gmra.mxu0 %vm1936_vm2, %v5072_v56  ;;  %v7294_v56 = vld [vmem:[%s9406_s11 + $0x58] sm:$0xff] }
 0xbb7   :  { %v5073_v53 = vmul.f32 %v7235_v10, %v5050_v28 }
 0xbb9   :  { %7103 = vmatprep.mubr.msk.f32.mxu0 %vm1936_vm2, %v5073_v53 }
 0xbba   :  { %7104 = vmatmul.mubr.msk.f32.gmra.mxu0 %vm1936_vm2, %v5074_v40 }
 0xc5b   :  { %v7084_v46 = vpop.f32.mrf.mxu0 }
 0xc5c   :  { %v5340_v41 = vadd.f32 %v7084_v46, %v7052_v22  ;;  %v7073_v22 = vpop.f32.mrf.mxu1 }
 0xc5d   :  { %v5334_v20 = vpop.f32.mrf.mxu0 }
 0xc5e   :  { %v5414_v36 = vadd.f32 %v7284_v62, %v5340_v41  ;;  %v5335_v38 = vadd.f32 %v5334_v20, %v5141_v25  ;;  %v5211_v41 = vpop.f32.mrf.mxu1  ;;  %v7298_v62 = vld [vmem:[%s9406_s11 + $0x78] sm:$0xff] }
 0xc60   :  { %5915 = vst [vmem:[%s9407_s12 + $0x88] sm:$0xff] %v5414_v36  ;;  %v5413_v44 = vadd.f32 %v7285_v58, %v5335_v38 }
 0xc62   :  { %5914 = vst [vmem:[%s9407_s12 + $0x80] sm:$0xff] %v5413_v44  ;;  %v7087_v19 = vpop.f32.mrf.mxu0 }
 0xc63   :  { %v5350_v42 = vadd.f32 %v7087_v19, %v7055_v12  ;;  %v7296_v12 = vld [vmem:[%s9406_s11 + $0x68] sm:$0xff] }
 0xc64   :  { %v5344_v14 = vpop.f32.mrf.mxu0 }
 0xc65   :  { %v5416_v26 = vadd.f32 %v7286_v39, %v5350_v42  ;;  %v5345_v18 = vadd.f32 %v5344_v14, %v5151_v32 }
 0xc66   :  { %v7090_v21 = vpop.f32.mrf.mxu0 }
 0xc67   :  { %5917 = vst [vmem:[%s9407_s12 + $0x98] sm:$0xff] %v5416_v26  ;;  %v5415_v37 = vadd.f32 %v7287_v57, %v5345_v18  ;;  %v5360_v30 = vadd.f32 %v7090_v21, %v7058_v31 }
 0xc68   :  { %v5354_v55 = vpop.f32.mrf.mxu0 }
 0xc69   :  { %5916 = vst [vmem:[%s9407_s12 + $0x90] sm:$0xff] %v5415_v37  ;;  %v5418_v27 = vadd.f32 %v7288_v48, %v5360_v30  ;;  %v5355_v16 = vadd.f32 %v5354_v55, %v5161_v35 }
 0xc6a   :  { %v7093_v49 = vpop.f32.mrf.mxu0 }
 0xc6b   :  { %5919 = vst [vmem:[%s9407_s12 + $0xa8] sm:$0xff] %v5418_v27  ;;  %v5417_v33 = vadd.f32 %v7289_v9, %v5355_v16  ;;  %v5370_v8 = vadd.f32 %v7093_v49, %v7061_v29  ;;  %v7297_v29 = vld [vmem:[%s9406_s11 + $0x60] sm:$0xff] }
 0xc6c   :  { %v5364_v60 = vpop.f32.mrf.mxu0 }
 0xc6d   :  { %5918 = vst [vmem:[%s9407_s12 + $0xa0] sm:$0xff] %v5417_v33  ;;  %v5420_v3 = vadd.f32 %v7290_v54, %v5370_v8  ;;  %v5365_v5 = vadd.f32 %v5364_v60, %v5171_v15 }
 0xc6e   :  { %v7096_v52 = vpop.f32.mrf.mxu0 }
 0xc6f   :  { %5921 = vst [vmem:[%s9407_s12 + $0xb8] sm:$0xff] %v5420_v3  ;;  %v5419_v11 = vadd.f32 %v7291_v47, %v5365_v5  ;;  %v5380_v45 = vadd.f32 %v7096_v52, %v7064_v17  ;;  %v7299_v17 = vld [vmem:[%s9406_s11 + $0x70] sm:$0xff] }
 0xc70   :  { %v5374_v63 = vpop.f32.mrf.mxu0 }
 0xc71   :  { %5920 = vst [vmem:[%s9407_s12 + $0xb0] sm:$0xff] %v5419_v11  ;;  %v5422_v34 = vadd.f32 %v7292_v23, %v5380_v45  ;;  %v5375_v43 = vadd.f32 %v5374_v63, %v5181_v59 }
 0xc72   :  { %v7099_v50 = vpop.f32.mrf.mxu0 }
 0xc73   :  { %5923 = vst [vmem:[%s9407_s12 + $0xc8] sm:$0xff] %v5422_v34  ;;  %v5421_v24 = vadd.f32 %v7293_v4, %v5375_v43  ;;  %v5390_v7 = vadd.f32 %v7099_v50, %v7067_v61 }
 0xc74   :  { %v5384_v1 = vpop.f32.mrf.mxu0 }
 0xc75   :  { %5922 = vst [vmem:[%s9407_s12 + $0xc0] sm:$0xff] %v5421_v24  ;;  %v5424_v2 = vadd.f32 %v7294_v56, %v5390_v7  ;;  %v5385_v10 = vadd.f32 %v5384_v1, %v5191_v6 }
 0xc76   :  { %v7102_v28 = vpop.f32.mrf.mxu0 }
 0xc77   :  { %5925 = vst [vmem:[%s9407_s12 + $0xd8] sm:$0xff] %v5424_v2  ;;  %v5423_v53 = vadd.f32 %v7295_v0, %v5385_v10  ;;  %v5400_v40 = vadd.f32 %v7102_v28, %v7070_v13 }
 0xc78   :  { %v5394_v25 = vpop.f32.mrf.mxu0 }
 0xc79   :  { %5924 = vst [vmem:[%s9407_s12 + $0xd0] sm:$0xff] %v5423_v53  ;;  %v5426_v32 = vadd.f32 %v7296_v12, %v5400_v40  ;;  %v5395_v31 = vadd.f32 %v5394_v25, %v5201_v51 }
 0xc7a   :  { %v7105_v35 = vpop.f32.mrf.mxu0 }
 0xc7b   :  { %5927 = vst [vmem:[%s9407_s12 + $0xe8] sm:$0xff] %v5426_v32  ;;  %v5425_v46 = vadd.f32 %v7297_v29, %v5395_v31  ;;  %v5410_v15 = vadd.f32 %v7105_v35, %v7073_v22 }
 0xc7c   :  { %v5404_v20 = vpop.f32.mrf.mxu0 }
 0xc7d   :  { %5926 = vst [vmem:[%s9407_s12 + $0xe0] sm:$0xff] %v5425_v46  ;;  %v5428_v36 = vadd.f32 %v7298_v62, %v5410_v15  ;;  %v5405_v38 = vadd.f32 %v5404_v20, %v5211_v41 }
 0xc7f   :  { %5929 = vst [vmem:[%s9407_s12 + $0xf8] sm:$0xff] %v5428_v36  ;;  %v5427_v58 = vadd.f32 %v7299_v17, %v5405_v38 }
 0xc81   :  { %5928 = vst [vmem:[%s9407_s12 + $0xf0] sm:$0xff] %v5427_v58 }

</bundles_post_ra>
